<compile_context>
chip_gen: v7x
topology: tpu7x:2x2x1
jax: 0.10.0
libtpu: 0.0.40
codegen_flags: <defaults>
</compile_context>

<pallas_src>
import functools
import math

import jax
import jax.numpy as jnp
from jax.experimental import pallas as pl
from jax.experimental.pallas import tpu as pltpu


# ----------------------------- Pallas kernel -----------------------------

def _decoder_stack_kernel(
        x0_ref, enc_ref, dmask_ref, edmask_ref,
        attn_w_ref,     # (8, D, D) bf16: [self q,k,v,o, cross q,k,v,o] for this layer
        vec_ref,        # (15, D) f32: 8 attn biases, ln1 g/b, ln2 g/b, ln3 g/b, ff_b2
        ffw1_ref,       # (D, Dff) bf16
        ffb1_ref,       # (1, Dff) f32
        ffw2_ref,       # (Dff, D) bf16
        wout_ref,       # (D, V) bf16
        bout_ref,       # (1, V) f32
        logits_ref,     # (B*L, V) f32  (written only on last layer)
        attn_dec_ref,   # (H, L, L) f32  (batch 0 only)
        attn_ed_ref,    # (H, L, Le) f32 (batch 0 only)
        x_ref,          # VMEM scratch (B*L, D) f32 -- activation carry across layers
        *, B, L, Le, n_heads, inv_scale, eps):
    layer = pl.program_id(0)
    n_layers = pl.num_programs(0)
    D = x_ref.shape[-1]
    H = n_heads
    dh = D // H

    @pl.when(layer == 0)
    def _():
        x_ref[...] = x0_ref[...]

    def layer_norm(y, g, b):
        mean = jnp.mean(y, axis=-1, keepdims=True)
        var = jnp.mean(jnp.square(y - mean), axis=-1, keepdims=True)
        return (y - mean) * jax.lax.rsqrt(var + eps) * g + b

    def split_heads(t, rows, b):
        # (B*rows, D) f32 -> per-batch (H, rows, dh)
        tb = t[b * rows:(b + 1) * rows, :]
        return jnp.transpose(tb.reshape(rows, H, dh), (1, 0, 2))

    def mha(x_rows, kv_rows, Lq, Lk, mask_ref, wi, attn_out_ref):
        # wi = 0 for self-attention weights, 4 for cross-attention weights.
        xb = x_rows.astype(jnp.bfloat16)
        kvb = kv_rows.astype(jnp.bfloat16)
        q = jnp.dot(xb, attn_w_ref[wi + 0],
                    preferred_element_type=jnp.float32) + vec_ref[wi + 0:wi + 1, :]
        k = jnp.dot(kvb, attn_w_ref[wi + 1],
                    preferred_element_type=jnp.float32) + vec_ref[wi + 1:wi + 2, :]
        v = jnp.dot(kvb, attn_w_ref[wi + 2],
                    preferred_element_type=jnp.float32) + vec_ref[wi + 2:wi + 3, :]
        n_mask_b = mask_ref.shape[0]
        ctx_rows = []
        for b in range(B):                      # B is small & static -> unrolled
            qh = split_heads(q, Lq, b).astype(jnp.bfloat16)   # (H, Lq, dh)
            kh = split_heads(k, Lk, b).astype(jnp.bfloat16)   # (H, Lk, dh)
            vh = split_heads(v, Lk, b).astype(jnp.bfloat16)   # (H, Lk, dh)
            # One batched matmul over all heads (no per-head lane slicing).
            s = jnp.einsum('hqd,hkd->hqk', qh, kh,
                           preferred_element_type=jnp.float32) * inv_scale
            mb = mask_ref[min(b, n_mask_b - 1)]               # (Lq, Lk) int32
            s = jnp.where(mb[None, :, :] != 0, jnp.float32(-1e10), s)
            m = jnp.max(s, axis=-1, keepdims=True)
            e = jnp.exp(s - m)
            w = e * pl.reciprocal(jnp.sum(e, axis=-1, keepdims=True), approx=True)
            if b == 0:
                attn_out_ref[...] = w                         # batch 0 only
            ctx = jnp.einsum('hqk,hkd->hqd', w.astype(jnp.bfloat16), vh,
                             preferred_element_type=jnp.float32)   # (H, Lq, dh)
            ctx_rows.append(jnp.transpose(ctx, (1, 0, 2)).reshape(Lq, D))
        ctx_all = jnp.concatenate(ctx_rows, axis=0).astype(jnp.bfloat16)  # (B*Lq, D)
        return (jnp.dot(ctx_all, attn_w_ref[wi + 3],
                        preferred_element_type=jnp.float32)
                + vec_ref[wi + 3:wi + 4, :])

    x = x_ref[...]                              # (B*L, D) f32
    enc = enc_ref[...]                          # (B*Le, D) f32

    # --- self attention + LN ---
    res = mha(x, x, L, L, dmask_ref, 0, attn_dec_ref)
    x = layer_norm(x + res, vec_ref[8:9, :], vec_ref[9:10, :])

    # --- encoder-decoder attention + LN ---
    res = mha(x, enc, L, Le, edmask_ref, 4, attn_ed_ref)
    x = layer_norm(x + res, vec_ref[10:11, :], vec_ref[11:12, :])

    # --- feed forward + LN ---
    h = jnp.dot(x.astype(jnp.bfloat16), ffw1_ref[...],
                preferred_element_type=jnp.float32) + ffb1_ref[...]
    h = jnp.maximum(h, 0.0)
    res = (jnp.dot(h.astype(jnp.bfloat16), ffw2_ref[...],
                   preferred_element_type=jnp.float32) + vec_ref[14:15, :])
    x = layer_norm(x + res, vec_ref[12:13, :], vec_ref[13:14, :])

    x_ref[...] = x                              # carry to next layer

    # --- fused vocab projection epilogue (lane-dense (B*L, V) output) ---
    @pl.when(layer == n_layers - 1)
    def _():
        logits_ref[...] = (jnp.dot(x.astype(jnp.bfloat16), wout_ref[...],
                                   preferred_element_type=jnp.float32)
                           + bout_ref[...])


# ----------------------------- Wrapper -----------------------------

@functools.partial(jax.jit, static_argnames=("n_heads",))
def decoder_forward(params, trg, enc_out, dec_mask, enc_dec_mask, *, n_heads):
    d_model = params['emb'].shape[1]
    B, L = trg.shape
    Le = enc_out.shape[1]
    n_layers = params['attn_w'].shape[0]
    Dff = params['ff_w1'].shape[-1]
    V = params['w_out'].shape[1]
    H = n_heads

    # Embedding + positional embedding (gather is glue, done in plain JAX).
    pos = jnp.arange(L)
    x = (jnp.float32(math.sqrt(d_model)) * params['emb'][trg]
         + params['pos_emb'][pos][None, :, :])
    x = x.reshape(B * L, d_model)                 # flat rows for fat matmuls
    enc_flat = enc_out.reshape(B * Le, d_model).astype(jnp.float32)

    inv_scale = 1.0 / float(math.sqrt(d_model / n_heads))
    Bm_d = dec_mask.shape[0]
    Bm_e = enc_dec_mask.shape[0]

    kern = functools.partial(_decoder_stack_kernel, B=B, L=L, Le=Le,
                             n_heads=n_heads, inv_scale=inv_scale, eps=1e-5)

    in_specs = [
        pl.BlockSpec((B * L, d_model), lambda l: (0, 0)),            # x0
        pl.BlockSpec((B * Le, d_model), lambda l: (0, 0)),           # enc_out
        pl.BlockSpec((Bm_d, None, L, L), lambda l: (0, 0, 0, 0)),    # dec_mask
        pl.BlockSpec((Bm_e, None, L, Le), lambda l: (0, 0, 0, 0)),   # enc_dec_mask
        pl.BlockSpec((None, 8, d_model, d_model), lambda l: (l, 0, 0, 0)),  # attn_w
        pl.BlockSpec((None, 15, d_model), lambda l: (l, 0, 0)),      # vecs
        pl.BlockSpec((None, d_model, Dff), lambda l: (l, 0, 0)),     # ff_w1
        pl.BlockSpec((None, 1, Dff), lambda l: (l, 0, 0)),           # ff_b1
        pl.BlockSpec((None, Dff, d_model), lambda l: (l, 0, 0)),     # ff_w2
        pl.BlockSpec((d_model, V), lambda l: (0, 0)),                # w_out
        pl.BlockSpec((1, V), lambda l: (0, 0)),                      # b_out
    ]
    out_specs = (
        pl.BlockSpec((B * L, V), lambda l: (0, 0)),                  # logits
        pl.BlockSpec((None, H, L, L), lambda l: (l, 0, 0, 0)),       # attn_dec (b=0)
        pl.BlockSpec((None, H, L, Le), lambda l: (l, 0, 0, 0)),      # attn_enc_dec (b=0)
    )
    out_shape = (
        jax.ShapeDtypeStruct((B * L, V), jnp.float32),
        jax.ShapeDtypeStruct((n_layers, H, L, L), jnp.float32),
        jax.ShapeDtypeStruct((n_layers, H, L, Le), jnp.float32),
    )

    logits_flat, atten_decs, atten_enc_decs = pl.pallas_call(
        kern,
        out_shape=out_shape,
        grid=(n_layers,),
        in_specs=in_specs,
        out_specs=out_specs,
        scratch_shapes=[pltpu.VMEM((B * L, d_model), jnp.float32)],
        compiler_params=pltpu.CompilerParams(
            dimension_semantics=("arbitrary",)),
    )(x, enc_flat, dec_mask, enc_dec_mask,
      params['attn_w'], params['vecs'], params['ff_w1'], params['ff_b1'],
      params['ff_w2'], params['w_out'], params['b_out'])

    logits = logits_flat.reshape(B, L, V)
    return logits, atten_decs, atten_enc_decs


# ----------------------------- Parameter init -----------------------------

def init_params(key, vocab_size, max_len, d_model, d_ff, n_heads, n_layers):
    ks = jax.random.split(key, 6)

    def w(k, shape):
        return 0.02 * jax.random.normal(k, shape, jnp.float32)

    # Matmul weights stored in bf16 (MXU-native, half the DMA bytes).
    attn_w = w(ks[0], (n_layers, 8, d_model, d_model)).astype(jnp.bfloat16)
    ff_w1 = w(ks[1], (n_layers, d_model, d_ff)).astype(jnp.bfloat16)
    ff_w2 = w(ks[2], (n_layers, d_ff, d_model)).astype(jnp.bfloat16)
    w_out = w(ks[3], (d_model, vocab_size)).astype(jnp.bfloat16)

    # vec rows: 0-3 self q/k/v/o biases, 4-7 cross q/k/v/o biases,
    #           8/9 ln1 gamma/beta, 10/11 ln2 gamma/beta, 12/13 ln3 gamma/beta,
    #           14 ff_b2   (all kept in f32)
    vecs = jnp.zeros((n_layers, 15, d_model), jnp.float32)
    vecs = vecs.at[:, 8].set(1.0).at[:, 10].set(1.0).at[:, 12].set(1.0)

    return {
        'emb': w(ks[4], (vocab_size, d_model)),
        'pos_emb': w(ks[5], (max_len, d_model)),
        'attn_w': attn_w,
        'vecs': vecs,
        'ff_w1': ff_w1,
        'ff_b1': jnp.zeros((n_layers, 1, d_ff), jnp.float32),
        'ff_w2': ff_w2,
        'w_out': w_out,
        'b_out': jnp.zeros((1, vocab_size), jnp.float32),
    }


# ----------------------------- Main -----------------------------

if __name__ == "__main__":
    B = 2
    L_dec = 8
    L_enc = 8
    d_model = 32
    d_ff = 64
    n_heads = 4
    n_layers = 3
    max_len = 16
    vocab_size = 128   # synthetic stand-in for MarianTokenizer vocab_size

    root = jax.random.PRNGKey(0)
    k_p, k_trg, k_enc = jax.random.split(root, 3)

    params = init_params(k_p, vocab_size, max_len, d_model, d_ff,
                         n_heads, n_layers)

    trg = jax.random.randint(k_trg, (B, L_dec), 0, vocab_size, dtype=jnp.int32)
    enc_out = jax.random.normal(k_enc, (B, L_enc, d_model), jnp.float32)

    # Masks are head-invariant; 1 == masked position (== torch bool-mask fill).
    # Causal mask is batch-invariant -> stored (1, 1, L, L) so it stays
    # VMEM-resident (no per-batch re-DMA).
    causal = jnp.triu(jnp.ones((L_dec, L_dec), jnp.int32), k=1)
    dec_mask = causal[None, None].astype(jnp.int32)                 # (1,1,L,L)

    # enc-dec padding mask: batch 1 has its last two encoder positions masked.
    enc_dec_mask = jnp.zeros((B, 1, L_dec, L_enc), jnp.int32)
    enc_dec_mask = enc_dec_mask.at[1, :, :, -2:].set(1)

    logits, atten_decs, atten_enc_decs = decoder_forward(
        params, trg, enc_out, dec_mask, enc_dec_mask, n_heads=n_heads)

    jax.block_until_ready((logits, atten_decs, atten_enc_decs))

    assert logits.shape == (B, L_dec, vocab_size)
    assert atten_decs.shape == (n_layers, n_heads, L_dec, L_dec)
    assert atten_enc_decs.shape == (n_layers, n_heads, L_dec, L_enc)

    print("KERNEL_OK")
</pallas_src>

<mosaic_0001>
module attributes {stable_mosaic.version = 11 : i64} {
  func.func @_decoder_stack_kernel(%arg0: i32, %arg1: memref<16x32xf32, #tpu.memory_space<vmem>>, %arg2: memref<16x32xf32, #tpu.memory_space<vmem>>, %arg3: memref<1x1x8x8xi32, #tpu.memory_space<vmem>>, %arg4: memref<2x1x8x8xi32, #tpu.memory_space<vmem>>, %arg5: memref<1x8x32x32xbf16, #tpu.memory_space<vmem>>, %arg6: memref<1x15x32xf32, #tpu.memory_space<vmem>>, %arg7: memref<1x32x64xbf16, #tpu.memory_space<vmem>>, %arg8: memref<1x1x64xf32, #tpu.memory_space<vmem>>, %arg9: memref<1x64x32xbf16, #tpu.memory_space<vmem>>, %arg10: memref<32x128xbf16, #tpu.memory_space<vmem>>, %arg11: memref<1x128xf32, #tpu.memory_space<vmem>>, %arg12: memref<16x128xf32, #tpu.memory_space<vmem>>, %arg13: memref<1x4x8x8xf32, #tpu.memory_space<vmem>>, %arg14: memref<1x4x8x8xf32, #tpu.memory_space<vmem>>, %arg15: memref<16x32xf32, #tpu.memory_space<vmem>>) attributes {dimension_semantics = [#tpu.dimension_semantics<arbitrary>], iteration_bounds = array<i64: 3>, scalar_prefetch = 0 : i64, scratch_operands = 1 : i64, tpu.core_type = #tpu.core_type<tc>, window_params = [{pipeline_mode = #tpu.pipeline_mode<synchronous>, transform_indices = @transform_0, window_bounds = array<i64: 16, 32>}, {pipeline_mode = #tpu.pipeline_mode<synchronous>, transform_indices = @transform_1, window_bounds = array<i64: 16, 32>}, {pipeline_mode = #tpu.pipeline_mode<synchronous>, transform_indices = @transform_2, window_bounds = array<i64: 1, 1, 8, 8>}, {pipeline_mode = #tpu.pipeline_mode<synchronous>, transform_indices = @transform_3, window_bounds = array<i64: 2, 1, 8, 8>}, {transform_indices = @transform_4, window_bounds = array<i64: 1, 8, 32, 32>}, {transform_indices = @transform_5, window_bounds = array<i64: 1, 15, 32>}, {transform_indices = @transform_6, window_bounds = array<i64: 1, 32, 64>}, {transform_indices = @transform_7, window_bounds = array<i64: 1, 1, 64>}, {transform_indices = @transform_8, window_bounds = array<i64: 1, 64, 32>}, {pipeline_mode = #tpu.pipeline_mode<synchronous>, transform_indices = @transform_9, window_bounds = array<i64: 32, 128>}, {pipeline_mode = #tpu.pipeline_mode<synchronous>, transform_indices = @transform_10, window_bounds = array<i64: 1, 128>}, {pipeline_mode = #tpu.pipeline_mode<synchronous>, transform_indices = @transform_11, window_bounds = array<i64: 16, 128>}, {transform_indices = @transform_12, window_bounds = array<i64: 1, 4, 8, 8>}, {transform_indices = @transform_13, window_bounds = array<i64: 1, 4, 8, 8>}]} {
    %c0_i32 = arith.constant 0 : i32
    %0 = arith.cmpi eq, %arg0, %c0_i32 : i32
    %1 = arith.extui %0 : i1 to i32
    %c0_i32_0 = arith.constant 0 : i32
    %2 = arith.cmpi ne, %1, %c0_i32_0 : i32
    scf.if %2 {
      %c0_156 = arith.constant 0 : index
      %c0_157 = arith.constant 0 : index
      %330 = vector.load %arg1[%c0_156, %c0_157] : memref<16x32xf32, #tpu.memory_space<vmem>>, vector<16x32xf32>
      %c0_158 = arith.constant 0 : index
      %c0_159 = arith.constant 0 : index
      %331 = vector.load %arg15[%c0_158, %c0_159] : memref<16x32xf32, #tpu.memory_space<vmem>>, vector<16x32xf32>
      tpu.vector_store %arg15[%c0_158, %c0_159], %330 {strides = array<i32>} : memref<16x32xf32, #tpu.memory_space<vmem>>, vector<16x32xf32>,
    } else {
    }
    %c0 = arith.constant 0 : index
    %c0_1 = arith.constant 0 : index
    %3 = vector.load %arg15[%c0, %c0_1] : memref<16x32xf32, #tpu.memory_space<vmem>>, vector<16x32xf32>
    %c0_2 = arith.constant 0 : index
    %c0_3 = arith.constant 0 : index
    %4 = vector.load %arg2[%c0_2, %c0_3] : memref<16x32xf32, #tpu.memory_space<vmem>>, vector<16x32xf32>
    %5 = arith.truncf %3 : vector<16x32xf32> to vector<16x32xbf16>
    %6 = arith.truncf %3 : vector<16x32xf32> to vector<16x32xbf16>
    %c0_4 = arith.constant 0 : index
    %c0_5 = arith.constant 0 : index
    %c0_6 = arith.constant 0 : index
    %c0_7 = arith.constant 0 : index
    %7 = vector.load %arg5[%c0_4, %c0_5, %c0_6, %c0_7] : memref<1x8x32x32xbf16, #tpu.memory_space<vmem>>, vector<1x1x32x32xbf16>
    %8 = vector.shape_cast %7 : vector<1x1x32x32xbf16> to vector<32x32xbf16>
    %cst = arith.constant dense<0.000000e+00> : vector<16x32xf32>
    %9 = tpu.matmul %5, %8, %cst {dimension_numbers = #tpu.dot_dimension_numbers<[1], [0], [0], [1], [0, 0, 1, 1], [], []>} : vector<16x32xbf16>, vector<32x32xbf16>, vector<16x32xf32> -> vector<16x32xf32>
    %c0_8 = arith.constant 0 : index
    %c0_9 = arith.constant 0 : index
    %c0_10 = arith.constant 0 : index
    %10 = vector.load %arg6[%c0_8, %c0_9, %c0_10] : memref<1x15x32xf32, #tpu.memory_space<vmem>>, vector<1x1x32xf32>
    %11 = vector.shape_cast %10 : vector<1x1x32xf32> to vector<1x32xf32>
    %12 = vector.broadcast %11 : vector<1x32xf32> to vector<16x32xf32>
    %13 = arith.addf %9, %12 : vector<16x32xf32>
    %c0_11 = arith.constant 0 : index
    %c1 = arith.constant 1 : index
    %c0_12 = arith.constant 0 : index
    %c0_13 = arith.constant 0 : index
    %14 = vector.load %arg5[%c0_11, %c1, %c0_12, %c0_13] : memref<1x8x32x32xbf16, #tpu.memory_space<vmem>>, vector<1x1x32x32xbf16>
    %15 = vector.shape_cast %14 : vector<1x1x32x32xbf16> to vector<32x32xbf16>
    %cst_14 = arith.constant dense<0.000000e+00> : vector<16x32xf32>
    %16 = tpu.matmul %6, %15, %cst_14 {dimension_numbers = #tpu.dot_dimension_numbers<[1], [0], [0], [1], [0, 0, 1, 1], [], []>} : vector<16x32xbf16>, vector<32x32xbf16>, vector<16x32xf32> -> vector<16x32xf32>
    %c0_15 = arith.constant 0 : index
    %c1_16 = arith.constant 1 : index
    %c0_17 = arith.constant 0 : index
    %17 = vector.load %arg6[%c0_15, %c1_16, %c0_17] : memref<1x15x32xf32, #tpu.memory_space<vmem>>, vector<1x1x32xf32>
    %18 = vector.shape_cast %17 : vector<1x1x32xf32> to vector<1x32xf32>
    %19 = vector.broadcast %18 : vector<1x32xf32> to vector<16x32xf32>
    %20 = arith.addf %16, %19 : vector<16x32xf32>
    %c0_18 = arith.constant 0 : index
    %c2 = arith.constant 2 : index
    %c0_19 = arith.constant 0 : index
    %c0_20 = arith.constant 0 : index
    %21 = vector.load %arg5[%c0_18, %c2, %c0_19, %c0_20] : memref<1x8x32x32xbf16, #tpu.memory_space<vmem>>, vector<1x1x32x32xbf16>
    %22 = vector.shape_cast %21 : vector<1x1x32x32xbf16> to vector<32x32xbf16>
    %cst_21 = arith.constant dense<0.000000e+00> : vector<16x32xf32>
    %23 = tpu.matmul %6, %22, %cst_21 {dimension_numbers = #tpu.dot_dimension_numbers<[1], [0], [0], [1], [0, 0, 1, 1], [], []>} : vector<16x32xbf16>, vector<32x32xbf16>, vector<16x32xf32> -> vector<16x32xf32>
    %c0_22 = arith.constant 0 : index
    %c2_23 = arith.constant 2 : index
    %c0_24 = arith.constant 0 : index
    %24 = vector.load %arg6[%c0_22, %c2_23, %c0_24] : memref<1x15x32xf32, #tpu.memory_space<vmem>>, vector<1x1x32xf32>
    %25 = vector.shape_cast %24 : vector<1x1x32xf32> to vector<1x32xf32>
    %26 = vector.broadcast %25 : vector<1x32xf32> to vector<16x32xf32>
    %27 = arith.addf %23, %26 : vector<16x32xf32>
    %28 = vector.extract_strided_slice %13 {offsets = [0, 0], sizes = [8, 32], strides = [1, 1]} : vector<16x32xf32> to vector<8x32xf32>
    %29 = vector.shape_cast %28 : vector<8x32xf32> to vector<8x4x8xf32>
    %30 = tpu.transpose %29, [1, 0, 2] : vector<8x4x8xf32> -> vector<4x8x8xf32>
    %31 = arith.truncf %30 : vector<4x8x8xf32> to vector<4x8x8xbf16>
    %32 = vector.extract_strided_slice %20 {offsets = [0, 0], sizes = [8, 32], strides = [1, 1]} : vector<16x32xf32> to vector<8x32xf32>
    %33 = vector.shape_cast %32 : vector<8x32xf32> to vector<8x4x8xf32>
    %34 = tpu.transpose %33, [1, 0, 2] : vector<8x4x8xf32> -> vector<4x8x8xf32>
    %35 = arith.truncf %34 : vector<4x8x8xf32> to vector<4x8x8xbf16>
    %36 = vector.extract_strided_slice %27 {offsets = [0, 0], sizes = [8, 32], strides = [1, 1]} : vector<16x32xf32> to vector<8x32xf32>
    %37 = vector.shape_cast %36 : vector<8x32xf32> to vector<8x4x8xf32>
    %38 = tpu.transpose %37, [1, 0, 2] : vector<8x4x8xf32> -> vector<4x8x8xf32>
    %39 = arith.truncf %38 : vector<4x8x8xf32> to vector<4x8x8xbf16>
    "tpu.trace_start"() <{level = 10 : i32, message = "hqd,hkd->hqk"}> : () -> ()
    %cst_25 = arith.constant dense<0.000000e+00> : vector<4x8x8xf32>
    %40 = tpu.matmul %31, %35, %cst_25 {dimension_numbers = #tpu.dot_dimension_numbers<[2], [2], [1], [1], [0, 0, 0, 1, 1, 1], [0], [0]>} : vector<4x8x8xbf16>, vector<4x8x8xbf16>, vector<4x8x8xf32> -> vector<4x8x8xf32>
    "tpu.trace_stop"() : () -> ()
    %cst_26 = arith.constant 0.353553385 : f32
    %41 = vector.broadcast %cst_26 : f32 to vector<4x8x8xf32>
    %42 = arith.mulf %40, %41 : vector<4x8x8xf32>
    %c0_27 = arith.constant 0 : index
    %c0_28 = arith.constant 0 : index
    %c0_29 = arith.constant 0 : index
    %c0_30 = arith.constant 0 : index
    %43 = vector.load %arg3[%c0_27, %c0_28, %c0_29, %c0_30] : memref<1x1x8x8xi32, #tpu.memory_space<vmem>>, vector<1x1x8x8xi32>
    %44 = vector.shape_cast %43 : vector<1x1x8x8xi32> to vector<8x8xi32>
    %45 = vector.shape_cast %44 : vector<8x8xi32> to vector<1x8x8xi32>
    %c0_i32_31 = arith.constant 0 : i32
    %46 = vector.broadcast %c0_i32_31 : i32 to vector<1x8x8xi32>
    %47 = arith.cmpi ne, %45, %46 : vector<1x8x8xi32>
    %cst_32 = arith.constant -1.000000e+10 : f32
    %48 = vector.shape_cast %47 : vector<1x8x8xi1> to vector<1x8x8xi1>
    %49 = vector.broadcast %48 : vector<1x8x8xi1> to vector<4x8x8xi1>
    %50 = vector.broadcast %cst_32 : f32 to vector<4x8x8xf32>
    %51 = arith.select %49, %50, %42 : vector<4x8x8xi1>, vector<4x8x8xf32>
    %cst_33 = arith.constant dense<0xFF800000> : vector<4x8xf32>
    %52 = vector.multi_reduction <maximumf>, %51, %cst_33 [2] : vector<4x8x8xf32> to vector<4x8xf32>
    %53 = vector.shape_cast %52 : vector<4x8xf32> to vector<4x8x1xf32>
    %54 = vector.broadcast %53 : vector<4x8x1xf32> to vector<4x8x8xf32>
    %55 = arith.subf %51, %54 : vector<4x8x8xf32>
    %56 = math.exp %55 : vector<4x8x8xf32>
    %cst_34 = arith.constant dense<0.000000e+00> : vector<4x8xf32>
    %57 = vector.multi_reduction <add>, %56, %cst_34 [2] : vector<4x8x8xf32> to vector<4x8xf32>
    %58 = vector.shape_cast %57 : vector<4x8xf32> to vector<4x8x1xf32>
    %59 = tpu.reciprocal %58 {approx = true} : vector<4x8x1xf32> -> vector<4x8x1xf32>
    %60 = vector.broadcast %59 : vector<4x8x1xf32> to vector<4x8x8xf32>
    %61 = arith.mulf %56, %60 : vector<4x8x8xf32>
    %c0_35 = arith.constant 0 : index
    %c0_36 = arith.constant 0 : index
    %c0_37 = arith.constant 0 : index
    %c0_38 = arith.constant 0 : index
    %62 = vector.load %arg13[%c0_35, %c0_36, %c0_37, %c0_38] : memref<1x4x8x8xf32, #tpu.memory_space<vmem>>, vector<1x4x8x8xf32>
    %63 = vector.shape_cast %62 : vector<1x4x8x8xf32> to vector<4x8x8xf32>
    %64 = vector.shape_cast %61 : vector<4x8x8xf32> to vector<1x4x8x8xf32>
    tpu.vector_store %arg13[%c0_35, %c0_36, %c0_37, %c0_38], %64 {strides = array<i32>} : memref<1x4x8x8xf32, #tpu.memory_space<vmem>>, vector<1x4x8x8xf32>,
    %65 = arith.truncf %61 : vector<4x8x8xf32> to vector<4x8x8xbf16>
    "tpu.trace_start"() <{level = 10 : i32, message = "hqk,hkd->hqd"}> : () -> ()
    %cst_39 = arith.constant dense<0.000000e+00> : vector<4x8x8xf32>
    %66 = tpu.matmul %65, %39, %cst_39 {dimension_numbers = #tpu.dot_dimension_numbers<[2], [1], [1], [2], [0, 0, 0, 1, 1, 2], [0], [0]>} : vector<4x8x8xbf16>, vector<4x8x8xbf16>, vector<4x8x8xf32> -> vector<4x8x8xf32>
    "tpu.trace_stop"() : () -> ()
    %67 = tpu.transpose %66, [1, 0, 2] : vector<4x8x8xf32> -> vector<8x4x8xf32>
    %68 = vector.shape_cast %67 : vector<8x4x8xf32> to vector<8x32xf32>
    %69 = vector.extract_strided_slice %13 {offsets = [8, 0], sizes = [8, 32], strides = [1, 1]} : vector<16x32xf32> to vector<8x32xf32>
    %70 = vector.shape_cast %69 : vector<8x32xf32> to vector<8x4x8xf32>
    %71 = tpu.transpose %70, [1, 0, 2] : vector<8x4x8xf32> -> vector<4x8x8xf32>
    %72 = arith.truncf %71 : vector<4x8x8xf32> to vector<4x8x8xbf16>
    %73 = vector.extract_strided_slice %20 {offsets = [8, 0], sizes = [8, 32], strides = [1, 1]} : vector<16x32xf32> to vector<8x32xf32>
    %74 = vector.shape_cast %73 : vector<8x32xf32> to vector<8x4x8xf32>
    %75 = tpu.transpose %74, [1, 0, 2] : vector<8x4x8xf32> -> vector<4x8x8xf32>
    %76 = arith.truncf %75 : vector<4x8x8xf32> to vector<4x8x8xbf16>
    %77 = vector.extract_strided_slice %27 {offsets = [8, 0], sizes = [8, 32], strides = [1, 1]} : vector<16x32xf32> to vector<8x32xf32>
    %78 = vector.shape_cast %77 : vector<8x32xf32> to vector<8x4x8xf32>
    %79 = tpu.transpose %78, [1, 0, 2] : vector<8x4x8xf32> -> vector<4x8x8xf32>
    %80 = arith.truncf %79 : vector<4x8x8xf32> to vector<4x8x8xbf16>
    "tpu.trace_start"() <{level = 10 : i32, message = "hqd,hkd->hqk"}> : () -> ()
    %cst_40 = arith.constant dense<0.000000e+00> : vector<4x8x8xf32>
    %81 = tpu.matmul %72, %76, %cst_40 {dimension_numbers = #tpu.dot_dimension_numbers<[2], [2], [1], [1], [0, 0, 0, 1, 1, 1], [0], [0]>} : vector<4x8x8xbf16>, vector<4x8x8xbf16>, vector<4x8x8xf32> -> vector<4x8x8xf32>
    "tpu.trace_stop"() : () -> ()
    %cst_41 = arith.constant 0.353553385 : f32
    %82 = vector.broadcast %cst_41 : f32 to vector<4x8x8xf32>
    %83 = arith.mulf %81, %82 : vector<4x8x8xf32>
    %c0_42 = arith.constant 0 : index
    %c0_43 = arith.constant 0 : index
    %c0_44 = arith.constant 0 : index
    %c0_45 = arith.constant 0 : index
    %84 = vector.load %arg3[%c0_42, %c0_43, %c0_44, %c0_45] : memref<1x1x8x8xi32, #tpu.memory_space<vmem>>, vector<1x1x8x8xi32>
    %85 = vector.shape_cast %84 : vector<1x1x8x8xi32> to vector<8x8xi32>
    %86 = vector.shape_cast %85 : vector<8x8xi32> to vector<1x8x8xi32>
    %c0_i32_46 = arith.constant 0 : i32
    %87 = vector.broadcast %c0_i32_46 : i32 to vector<1x8x8xi32>
    %88 = arith.cmpi ne, %86, %87 : vector<1x8x8xi32>
    %cst_47 = arith.constant -1.000000e+10 : f32
    %89 = vector.shape_cast %88 : vector<1x8x8xi1> to vector<1x8x8xi1>
    %90 = vector.broadcast %89 : vector<1x8x8xi1> to vector<4x8x8xi1>
    %91 = vector.broadcast %cst_47 : f32 to vector<4x8x8xf32>
    %92 = arith.select %90, %91, %83 : vector<4x8x8xi1>, vector<4x8x8xf32>
    %cst_48 = arith.constant dense<0xFF800000> : vector<4x8xf32>
    %93 = vector.multi_reduction <maximumf>, %92, %cst_48 [2] : vector<4x8x8xf32> to vector<4x8xf32>
    %94 = vector.shape_cast %93 : vector<4x8xf32> to vector<4x8x1xf32>
    %95 = vector.broadcast %94 : vector<4x8x1xf32> to vector<4x8x8xf32>
    %96 = arith.subf %92, %95 : vector<4x8x8xf32>
    %97 = math.exp %96 : vector<4x8x8xf32>
    %cst_49 = arith.constant dense<0.000000e+00> : vector<4x8xf32>
    %98 = vector.multi_reduction <add>, %97, %cst_49 [2] : vector<4x8x8xf32> to vector<4x8xf32>
    %99 = vector.shape_cast %98 : vector<4x8xf32> to vector<4x8x1xf32>
    %100 = tpu.reciprocal %99 {approx = true} : vector<4x8x1xf32> -> vector<4x8x1xf32>
    %101 = vector.broadcast %100 : vector<4x8x1xf32> to vector<4x8x8xf32>
    %102 = arith.mulf %97, %101 : vector<4x8x8xf32>
    %103 = arith.truncf %102 : vector<4x8x8xf32> to vector<4x8x8xbf16>
    "tpu.trace_start"() <{level = 10 : i32, message = "hqk,hkd->hqd"}> : () -> ()
    %cst_50 = arith.constant dense<0.000000e+00> : vector<4x8x8xf32>
    %104 = tpu.matmul %103, %80, %cst_50 {dimension_numbers = #tpu.dot_dimension_numbers<[2], [1], [1], [2], [0, 0, 0, 1, 1, 2], [0], [0]>} : vector<4x8x8xbf16>, vector<4x8x8xbf16>, vector<4x8x8xf32> -> vector<4x8x8xf32>
    "tpu.trace_stop"() : () -> ()
    %105 = tpu.transpose %104, [1, 0, 2] : vector<4x8x8xf32> -> vector<8x4x8xf32>
    %106 = vector.shape_cast %105 : vector<8x4x8xf32> to vector<8x32xf32>
    %107 = tpu.concatenate %68, %106 in 0 : vector<8x32xf32>, vector<8x32xf32> -> vector<16x32xf32>
    %108 = arith.truncf %107 : vector<16x32xf32> to vector<16x32xbf16>
    %c0_51 = arith.constant 0 : index
    %c3 = arith.constant 3 : index
    %c0_52 = arith.constant 0 : index
    %c0_53 = arith.constant 0 : index
    %109 = vector.load %arg5[%c0_51, %c3, %c0_52, %c0_53] : memref<1x8x32x32xbf16, #tpu.memory_space<vmem>>, vector<1x1x32x32xbf16>
    %110 = vector.shape_cast %109 : vector<1x1x32x32xbf16> to vector<32x32xbf16>
    %cst_54 = arith.constant dense<0.000000e+00> : vector<16x32xf32>
    %111 = tpu.matmul %108, %110, %cst_54 {dimension_numbers = #tpu.dot_dimension_numbers<[1], [0], [0], [1], [0, 0, 1, 1], [], []>} : vector<16x32xbf16>, vector<32x32xbf16>, vector<16x32xf32> -> vector<16x32xf32>
    %c0_55 = arith.constant 0 : index
    %c3_56 = arith.constant 3 : index
    %c0_57 = arith.constant 0 : index
    %112 = vector.load %arg6[%c0_55, %c3_56, %c0_57] : memref<1x15x32xf32, #tpu.memory_space<vmem>>, vector<1x1x32xf32>
    %113 = vector.shape_cast %112 : vector<1x1x32xf32> to vector<1x32xf32>
    %114 = vector.broadcast %113 : vector<1x32xf32> to vector<16x32xf32>
    %115 = arith.addf %111, %114 : vector<16x32xf32>
    %116 = arith.addf %3, %115 : vector<16x32xf32>
    %c0_58 = arith.constant 0 : index
    %c8 = arith.constant 8 : index
    %c0_59 = arith.constant 0 : index
    %117 = vector.load %arg6[%c0_58, %c8, %c0_59] : memref<1x15x32xf32, #tpu.memory_space<vmem>>, vector<1x1x32xf32>
    %118 = vector.shape_cast %117 : vector<1x1x32xf32> to vector<1x32xf32>
    %c0_60 = arith.constant 0 : index
    %c9 = arith.constant 9 : index
    %c0_61 = arith.constant 0 : index
    %119 = vector.load %arg6[%c0_60, %c9, %c0_61] : memref<1x15x32xf32, #tpu.memory_space<vmem>>, vector<1x1x32xf32>
    %120 = vector.shape_cast %119 : vector<1x1x32xf32> to vector<1x32xf32>
    %cst_62 = arith.constant dense<0.000000e+00> : vector<16xf32>
    %121 = vector.multi_reduction <add>, %116, %cst_62 [1] : vector<16x32xf32> to vector<16xf32>
    %122 = vector.shape_cast %121 : vector<16xf32> to vector<16x1xf32>
    %cst_63 = arith.constant 3.200000e+01 : f32
    %123 = vector.broadcast %cst_63 : f32 to vector<16x1xf32>
    %124 = arith.divf %122, %123 : vector<16x1xf32>
    %125 = vector.broadcast %124 : vector<16x1xf32> to vector<16x32xf32>
    %126 = arith.subf %116, %125 : vector<16x32xf32>
    %127 = arith.mulf %126, %126 : vector<16x32xf32>
    %cst_64 = arith.constant dense<0.000000e+00> : vector<16xf32>
    %128 = vector.multi_reduction <add>, %127, %cst_64 [1] : vector<16x32xf32> to vector<16xf32>
    %129 = vector.shape_cast %128 : vector<16xf32> to vector<16x1xf32>
    %cst_65 = arith.constant 3.200000e+01 : f32
    %130 = vector.broadcast %cst_65 : f32 to vector<16x1xf32>
    %131 = arith.divf %129, %130 : vector<16x1xf32>
    %132 = vector.broadcast %124 : vector<16x1xf32> to vector<16x32xf32>
    %133 = arith.subf %116, %132 : vector<16x32xf32>
    %cst_66 = arith.constant 9.99999974E-6 : f32
    %134 = vector.broadcast %cst_66 : f32 to vector<16x1xf32>
    %135 = arith.addf %131, %134 : vector<16x1xf32>
    %136 = math.rsqrt %135 : vector<16x1xf32>
    %137 = vector.broadcast %136 : vector<16x1xf32> to vector<16x32xf32>
    %138 = arith.mulf %133, %137 : vector<16x32xf32>
    %139 = vector.broadcast %118 : vector<1x32xf32> to vector<16x32xf32>
    %140 = arith.mulf %138, %139 : vector<16x32xf32>
    %141 = vector.broadcast %120 : vector<1x32xf32> to vector<16x32xf32>
    %142 = arith.addf %140, %141 : vector<16x32xf32>
    %143 = arith.truncf %142 : vector<16x32xf32> to vector<16x32xbf16>
    %144 = arith.truncf %4 : vector<16x32xf32> to vector<16x32xbf16>
    %c0_67 = arith.constant 0 : index
    %c4 = arith.constant 4 : index
    %c0_68 = arith.constant 0 : index
    %c0_69 = arith.constant 0 : index
    %145 = vector.load %arg5[%c0_67, %c4, %c0_68, %c0_69] : memref<1x8x32x32xbf16, #tpu.memory_space<vmem>>, vector<1x1x32x32xbf16>
    %146 = vector.shape_cast %145 : vector<1x1x32x32xbf16> to vector<32x32xbf16>
    %cst_70 = arith.constant dense<0.000000e+00> : vector<16x32xf32>
    %147 = tpu.matmul %143, %146, %cst_70 {dimension_numbers = #tpu.dot_dimension_numbers<[1], [0], [0], [1], [0, 0, 1, 1], [], []>} : vector<16x32xbf16>, vector<32x32xbf16>, vector<16x32xf32> -> vector<16x32xf32>
    %c0_71 = arith.constant 0 : index
    %c4_72 = arith.constant 4 : index
    %c0_73 = arith.constant 0 : index
    %148 = vector.load %arg6[%c0_71, %c4_72, %c0_73] : memref<1x15x32xf32, #tpu.memory_space<vmem>>, vector<1x1x32xf32>
    %149 = vector.shape_cast %148 : vector<1x1x32xf32> to vector<1x32xf32>
    %150 = vector.broadcast %149 : vector<1x32xf32> to vector<16x32xf32>
    %151 = arith.addf %147, %150 : vector<16x32xf32>
    %c0_74 = arith.constant 0 : index
    %c5 = arith.constant 5 : index
    %c0_75 = arith.constant 0 : index
    %c0_76 = arith.constant 0 : index
    %152 = vector.load %arg5[%c0_74, %c5, %c0_75, %c0_76] : memref<1x8x32x32xbf16, #tpu.memory_space<vmem>>, vector<1x1x32x32xbf16>
    %153 = vector.shape_cast %152 : vector<1x1x32x32xbf16> to vector<32x32xbf16>
    %cst_77 = arith.constant dense<0.000000e+00> : vector<16x32xf32>
    %154 = tpu.matmul %144, %153, %cst_77 {dimension_numbers = #tpu.dot_dimension_numbers<[1], [0], [0], [1], [0, 0, 1, 1], [], []>} : vector<16x32xbf16>, vector<32x32xbf16>, vector<16x32xf32> -> vector<16x32xf32>
    %c0_78 = arith.constant 0 : index
    %c5_79 = arith.constant 5 : index
    %c0_80 = arith.constant 0 : index
    %155 = vector.load %arg6[%c0_78, %c5_79, %c0_80] : memref<1x15x32xf32, #tpu.memory_space<vmem>>, vector<1x1x32xf32>
    %156 = vector.shape_cast %155 : vector<1x1x32xf32> to vector<1x32xf32>
    %157 = vector.broadcast %156 : vector<1x32xf32> to vector<16x32xf32>
    %158 = arith.addf %154, %157 : vector<16x32xf32>
    %c0_81 = arith.constant 0 : index
    %c6 = arith.constant 6 : index
    %c0_82 = arith.constant 0 : index
    %c0_83 = arith.constant 0 : index
    %159 = vector.load %arg5[%c0_81, %c6, %c0_82, %c0_83] : memref<1x8x32x32xbf16, #tpu.memory_space<vmem>>, vector<1x1x32x32xbf16>
    %160 = vector.shape_cast %159 : vector<1x1x32x32xbf16> to vector<32x32xbf16>
    %cst_84 = arith.constant dense<0.000000e+00> : vector<16x32xf32>
    %161 = tpu.matmul %144, %160, %cst_84 {dimension_numbers = #tpu.dot_dimension_numbers<[1], [0], [0], [1], [0, 0, 1, 1], [], []>} : vector<16x32xbf16>, vector<32x32xbf16>, vector<16x32xf32> -> vector<16x32xf32>
    %c0_85 = arith.constant 0 : index
    %c6_86 = arith.constant 6 : index
    %c0_87 = arith.constant 0 : index
    %162 = vector.load %arg6[%c0_85, %c6_86, %c0_87] : memref<1x15x32xf32, #tpu.memory_space<vmem>>, vector<1x1x32xf32>
    %163 = vector.shape_cast %162 : vector<1x1x32xf32> to vector<1x32xf32>
    %164 = vector.broadcast %163 : vector<1x32xf32> to vector<16x32xf32>
    %165 = arith.addf %161, %164 : vector<16x32xf32>
    %166 = vector.extract_strided_slice %151 {offsets = [0, 0], sizes = [8, 32], strides = [1, 1]} : vector<16x32xf32> to vector<8x32xf32>
    %167 = vector.shape_cast %166 : vector<8x32xf32> to vector<8x4x8xf32>
    %168 = tpu.transpose %167, [1, 0, 2] : vector<8x4x8xf32> -> vector<4x8x8xf32>
    %169 = arith.truncf %168 : vector<4x8x8xf32> to vector<4x8x8xbf16>
    %170 = vector.extract_strided_slice %158 {offsets = [0, 0], sizes = [8, 32], strides = [1, 1]} : vector<16x32xf32> to vector<8x32xf32>
    %171 = vector.shape_cast %170 : vector<8x32xf32> to vector<8x4x8xf32>
    %172 = tpu.transpose %171, [1, 0, 2] : vector<8x4x8xf32> -> vector<4x8x8xf32>
    %173 = arith.truncf %172 : vector<4x8x8xf32> to vector<4x8x8xbf16>
    %174 = vector.extract_strided_slice %165 {offsets = [0, 0], sizes = [8, 32], strides = [1, 1]} : vector<16x32xf32> to vector<8x32xf32>
    %175 = vector.shape_cast %174 : vector<8x32xf32> to vector<8x4x8xf32>
    %176 = tpu.transpose %175, [1, 0, 2] : vector<8x4x8xf32> -> vector<4x8x8xf32>
    %177 = arith.truncf %176 : vector<4x8x8xf32> to vector<4x8x8xbf16>
    "tpu.trace_start"() <{level = 10 : i32, message = "hqd,hkd->hqk"}> : () -> ()
    %cst_88 = arith.constant dense<0.000000e+00> : vector<4x8x8xf32>
    %178 = tpu.matmul %169, %173, %cst_88 {dimension_numbers = #tpu.dot_dimension_numbers<[2], [2], [1], [1], [0, 0, 0, 1, 1, 1], [0], [0]>} : vector<4x8x8xbf16>, vector<4x8x8xbf16>, vector<4x8x8xf32> -> vector<4x8x8xf32>
    "tpu.trace_stop"() : () -> ()
    %cst_89 = arith.constant 0.353553385 : f32
    %179 = vector.broadcast %cst_89 : f32 to vector<4x8x8xf32>
    %180 = arith.mulf %178, %179 : vector<4x8x8xf32>
    %c0_90 = arith.constant 0 : index
    %c0_91 = arith.constant 0 : index
    %c0_92 = arith.constant 0 : index
    %c0_93 = arith.constant 0 : index
    %181 = vector.load %arg4[%c0_90, %c0_91, %c0_92, %c0_93] : memref<2x1x8x8xi32, #tpu.memory_space<vmem>>, vector<1x1x8x8xi32>
    %182 = vector.shape_cast %181 : vector<1x1x8x8xi32> to vector<8x8xi32>
    %183 = vector.shape_cast %182 : vector<8x8xi32> to vector<1x8x8xi32>
    %c0_i32_94 = arith.constant 0 : i32
    %184 = vector.broadcast %c0_i32_94 : i32 to vector<1x8x8xi32>
    %185 = arith.cmpi ne, %183, %184 : vector<1x8x8xi32>
    %cst_95 = arith.constant -1.000000e+10 : f32
    %186 = vector.shape_cast %185 : vector<1x8x8xi1> to vector<1x8x8xi1>
    %187 = vector.broadcast %186 : vector<1x8x8xi1> to vector<4x8x8xi1>
    %188 = vector.broadcast %cst_95 : f32 to vector<4x8x8xf32>
    %189 = arith.select %187, %188, %180 : vector<4x8x8xi1>, vector<4x8x8xf32>
    %cst_96 = arith.constant dense<0xFF800000> : vector<4x8xf32>
    %190 = vector.multi_reduction <maximumf>, %189, %cst_96 [2] : vector<4x8x8xf32> to vector<4x8xf32>
    %191 = vector.shape_cast %190 : vector<4x8xf32> to vector<4x8x1xf32>
    %192 = vector.broadcast %191 : vector<4x8x1xf32> to vector<4x8x8xf32>
    %193 = arith.subf %189, %192 : vector<4x8x8xf32>
    %194 = math.exp %193 : vector<4x8x8xf32>
    %cst_97 = arith.constant dense<0.000000e+00> : vector<4x8xf32>
    %195 = vector.multi_reduction <add>, %194, %cst_97 [2] : vector<4x8x8xf32> to vector<4x8xf32>
    %196 = vector.shape_cast %195 : vector<4x8xf32> to vector<4x8x1xf32>
    %197 = tpu.reciprocal %196 {approx = true} : vector<4x8x1xf32> -> vector<4x8x1xf32>
    %198 = vector.broadcast %197 : vector<4x8x1xf32> to vector<4x8x8xf32>
    %199 = arith.mulf %194, %198 : vector<4x8x8xf32>
    %c0_98 = arith.constant 0 : index
    %c0_99 = arith.constant 0 : index
    %c0_100 = arith.constant 0 : index
    %c0_101 = arith.constant 0 : index
    %200 = vector.load %arg14[%c0_98, %c0_99, %c0_100, %c0_101] : memref<1x4x8x8xf32, #tpu.memory_space<vmem>>, vector<1x4x8x8xf32>
    %201 = vector.shape_cast %200 : vector<1x4x8x8xf32> to vector<4x8x8xf32>
    %202 = vector.shape_cast %199 : vector<4x8x8xf32> to vector<1x4x8x8xf32>
    tpu.vector_store %arg14[%c0_98, %c0_99, %c0_100, %c0_101], %202 {strides = array<i32>} : memref<1x4x8x8xf32, #tpu.memory_space<vmem>>, vector<1x4x8x8xf32>,
    %203 = arith.truncf %199 : vector<4x8x8xf32> to vector<4x8x8xbf16>
    "tpu.trace_start"() <{level = 10 : i32, message = "hqk,hkd->hqd"}> : () -> ()
    %cst_102 = arith.constant dense<0.000000e+00> : vector<4x8x8xf32>
    %204 = tpu.matmul %203, %177, %cst_102 {dimension_numbers = #tpu.dot_dimension_numbers<[2], [1], [1], [2], [0, 0, 0, 1, 1, 2], [0], [0]>} : vector<4x8x8xbf16>, vector<4x8x8xbf16>, vector<4x8x8xf32> -> vector<4x8x8xf32>
    "tpu.trace_stop"() : () -> ()
    %205 = tpu.transpose %204, [1, 0, 2] : vector<4x8x8xf32> -> vector<8x4x8xf32>
    %206 = vector.shape_cast %205 : vector<8x4x8xf32> to vector<8x32xf32>
    %207 = vector.extract_strided_slice %151 {offsets = [8, 0], sizes = [8, 32], strides = [1, 1]} : vector<16x32xf32> to vector<8x32xf32>
    %208 = vector.shape_cast %207 : vector<8x32xf32> to vector<8x4x8xf32>
    %209 = tpu.transpose %208, [1, 0, 2] : vector<8x4x8xf32> -> vector<4x8x8xf32>
    %210 = arith.truncf %209 : vector<4x8x8xf32> to vector<4x8x8xbf16>
    %211 = vector.extract_strided_slice %158 {offsets = [8, 0], sizes = [8, 32], strides = [1, 1]} : vector<16x32xf32> to vector<8x32xf32>
    %212 = vector.shape_cast %211 : vector<8x32xf32> to vector<8x4x8xf32>
    %213 = tpu.transpose %212, [1, 0, 2] : vector<8x4x8xf32> -> vector<4x8x8xf32>
    %214 = arith.truncf %213 : vector<4x8x8xf32> to vector<4x8x8xbf16>
    %215 = vector.extract_strided_slice %165 {offsets = [8, 0], sizes = [8, 32], strides = [1, 1]} : vector<16x32xf32> to vector<8x32xf32>
    %216 = vector.shape_cast %215 : vector<8x32xf32> to vector<8x4x8xf32>
    %217 = tpu.transpose %216, [1, 0, 2] : vector<8x4x8xf32> -> vector<4x8x8xf32>
    %218 = arith.truncf %217 : vector<4x8x8xf32> to vector<4x8x8xbf16>
    "tpu.trace_start"() <{level = 10 : i32, message = "hqd,hkd->hqk"}> : () -> ()
    %cst_103 = arith.constant dense<0.000000e+00> : vector<4x8x8xf32>
    %219 = tpu.matmul %210, %214, %cst_103 {dimension_numbers = #tpu.dot_dimension_numbers<[2], [2], [1], [1], [0, 0, 0, 1, 1, 1], [0], [0]>} : vector<4x8x8xbf16>, vector<4x8x8xbf16>, vector<4x8x8xf32> -> vector<4x8x8xf32>
    "tpu.trace_stop"() : () -> ()
    %cst_104 = arith.constant 0.353553385 : f32
    %220 = vector.broadcast %cst_104 : f32 to vector<4x8x8xf32>
    %221 = arith.mulf %219, %220 : vector<4x8x8xf32>
    %c1_105 = arith.constant 1 : index
    %c0_106 = arith.constant 0 : index
    %c0_107 = arith.constant 0 : index
    %c0_108 = arith.constant 0 : index
    %222 = vector.load %arg4[%c1_105, %c0_106, %c0_107, %c0_108] : memref<2x1x8x8xi32, #tpu.memory_space<vmem>>, vector<1x1x8x8xi32>
    %223 = vector.shape_cast %222 : vector<1x1x8x8xi32> to vector<8x8xi32>
    %224 = vector.shape_cast %223 : vector<8x8xi32> to vector<1x8x8xi32>
    %c0_i32_109 = arith.constant 0 : i32
    %225 = vector.broadcast %c0_i32_109 : i32 to vector<1x8x8xi32>
    %226 = arith.cmpi ne, %224, %225 : vector<1x8x8xi32>
    %cst_110 = arith.constant -1.000000e+10 : f32
    %227 = vector.shape_cast %226 : vector<1x8x8xi1> to vector<1x8x8xi1>
    %228 = vector.broadcast %227 : vector<1x8x8xi1> to vector<4x8x8xi1>
    %229 = vector.broadcast %cst_110 : f32 to vector<4x8x8xf32>
    %230 = arith.select %228, %229, %221 : vector<4x8x8xi1>, vector<4x8x8xf32>
    %cst_111 = arith.constant dense<0xFF800000> : vector<4x8xf32>
    %231 = vector.multi_reduction <maximumf>, %230, %cst_111 [2] : vector<4x8x8xf32> to vector<4x8xf32>
    %232 = vector.shape_cast %231 : vector<4x8xf32> to vector<4x8x1xf32>
    %233 = vector.broadcast %232 : vector<4x8x1xf32> to vector<4x8x8xf32>
    %234 = arith.subf %230, %233 : vector<4x8x8xf32>
    %235 = math.exp %234 : vector<4x8x8xf32>
    %cst_112 = arith.constant dense<0.000000e+00> : vector<4x8xf32>
    %236 = vector.multi_reduction <add>, %235, %cst_112 [2] : vector<4x8x8xf32> to vector<4x8xf32>
    %237 = vector.shape_cast %236 : vector<4x8xf32> to vector<4x8x1xf32>
    %238 = tpu.reciprocal %237 {approx = true} : vector<4x8x1xf32> -> vector<4x8x1xf32>
    %239 = vector.broadcast %238 : vector<4x8x1xf32> to vector<4x8x8xf32>
    %240 = arith.mulf %235, %239 : vector<4x8x8xf32>
    %241 = arith.truncf %240 : vector<4x8x8xf32> to vector<4x8x8xbf16>
    "tpu.trace_start"() <{level = 10 : i32, message = "hqk,hkd->hqd"}> : () -> ()
    %cst_113 = arith.constant dense<0.000000e+00> : vector<4x8x8xf32>
    %242 = tpu.matmul %241, %218, %cst_113 {dimension_numbers = #tpu.dot_dimension_numbers<[2], [1], [1], [2], [0, 0, 0, 1, 1, 2], [0], [0]>} : vector<4x8x8xbf16>, vector<4x8x8xbf16>, vector<4x8x8xf32> -> vector<4x8x8xf32>
    "tpu.trace_stop"() : () -> ()
    %243 = tpu.transpose %242, [1, 0, 2] : vector<4x8x8xf32> -> vector<8x4x8xf32>
    %244 = vector.shape_cast %243 : vector<8x4x8xf32> to vector<8x32xf32>
    %245 = tpu.concatenate %206, %244 in 0 : vector<8x32xf32>, vector<8x32xf32> -> vector<16x32xf32>
    %246 = arith.truncf %245 : vector<16x32xf32> to vector<16x32xbf16>
    %c0_114 = arith.constant 0 : index
    %c7 = arith.constant 7 : index
    %c0_115 = arith.constant 0 : index
    %c0_116 = arith.constant 0 : index
    %247 = vector.load %arg5[%c0_114, %c7, %c0_115, %c0_116] : memref<1x8x32x32xbf16, #tpu.memory_space<vmem>>, vector<1x1x32x32xbf16>
    %248 = vector.shape_cast %247 : vector<1x1x32x32xbf16> to vector<32x32xbf16>
    %cst_117 = arith.constant dense<0.000000e+00> : vector<16x32xf32>
    %249 = tpu.matmul %246, %248, %cst_117 {dimension_numbers = #tpu.dot_dimension_numbers<[1], [0], [0], [1], [0, 0, 1, 1], [], []>} : vector<16x32xbf16>, vector<32x32xbf16>, vector<16x32xf32> -> vector<16x32xf32>
    %c0_118 = arith.constant 0 : index
    %c7_119 = arith.constant 7 : index
    %c0_120 = arith.constant 0 : index
    %250 = vector.load %arg6[%c0_118, %c7_119, %c0_120] : memref<1x15x32xf32, #tpu.memory_space<vmem>>, vector<1x1x32xf32>
    %251 = vector.shape_cast %250 : vector<1x1x32xf32> to vector<1x32xf32>
    %252 = vector.broadcast %251 : vector<1x32xf32> to vector<16x32xf32>
    %253 = arith.addf %249, %252 : vector<16x32xf32>
    %254 = arith.addf %142, %253 : vector<16x32xf32>
    %c0_121 = arith.constant 0 : index
    %c10 = arith.constant 10 : index
    %c0_122 = arith.constant 0 : index
    %255 = vector.load %arg6[%c0_121, %c10, %c0_122] : memref<1x15x32xf32, #tpu.memory_space<vmem>>, vector<1x1x32xf32>
    %256 = vector.shape_cast %255 : vector<1x1x32xf32> to vector<1x32xf32>
    %c0_123 = arith.constant 0 : index
    %c11 = arith.constant 11 : index
    %c0_124 = arith.constant 0 : index
    %257 = vector.load %arg6[%c0_123, %c11, %c0_124] : memref<1x15x32xf32, #tpu.memory_space<vmem>>, vector<1x1x32xf32>
    %258 = vector.shape_cast %257 : vector<1x1x32xf32> to vector<1x32xf32>
    %cst_125 = arith.constant dense<0.000000e+00> : vector<16xf32>
    %259 = vector.multi_reduction <add>, %254, %cst_125 [1] : vector<16x32xf32> to vector<16xf32>
    %260 = vector.shape_cast %259 : vector<16xf32> to vector<16x1xf32>
    %cst_126 = arith.constant 3.200000e+01 : f32
    %261 = vector.broadcast %cst_126 : f32 to vector<16x1xf32>
    %262 = arith.divf %260, %261 : vector<16x1xf32>
    %263 = vector.broadcast %262 : vector<16x1xf32> to vector<16x32xf32>
    %264 = arith.subf %254, %263 : vector<16x32xf32>
    %265 = arith.mulf %264, %264 : vector<16x32xf32>
    %cst_127 = arith.constant dense<0.000000e+00> : vector<16xf32>
    %266 = vector.multi_reduction <add>, %265, %cst_127 [1] : vector<16x32xf32> to vector<16xf32>
    %267 = vector.shape_cast %266 : vector<16xf32> to vector<16x1xf32>
    %cst_128 = arith.constant 3.200000e+01 : f32
    %268 = vector.broadcast %cst_128 : f32 to vector<16x1xf32>
    %269 = arith.divf %267, %268 : vector<16x1xf32>
    %270 = vector.broadcast %262 : vector<16x1xf32> to vector<16x32xf32>
    %271 = arith.subf %254, %270 : vector<16x32xf32>
    %cst_129 = arith.constant 9.99999974E-6 : f32
    %272 = vector.broadcast %cst_129 : f32 to vector<16x1xf32>
    %273 = arith.addf %269, %272 : vector<16x1xf32>
    %274 = math.rsqrt %273 : vector<16x1xf32>
    %275 = vector.broadcast %274 : vector<16x1xf32> to vector<16x32xf32>
    %276 = arith.mulf %271, %275 : vector<16x32xf32>
    %277 = vector.broadcast %256 : vector<1x32xf32> to vector<16x32xf32>
    %278 = arith.mulf %276, %277 : vector<16x32xf32>
    %279 = vector.broadcast %258 : vector<1x32xf32> to vector<16x32xf32>
    %280 = arith.addf %278, %279 : vector<16x32xf32>
    %281 = arith.truncf %280 : vector<16x32xf32> to vector<16x32xbf16>
    %c0_130 = arith.constant 0 : index
    %c0_131 = arith.constant 0 : index
    %c0_132 = arith.constant 0 : index
    %282 = vector.load %arg7[%c0_130, %c0_131, %c0_132] : memref<1x32x64xbf16, #tpu.memory_space<vmem>>, vector<1x32x64xbf16>
    %283 = vector.shape_cast %282 : vector<1x32x64xbf16> to vector<32x64xbf16>
    %cst_133 = arith.constant dense<0.000000e+00> : vector<16x64xf32>
    %284 = tpu.matmul %281, %283, %cst_133 {dimension_numbers = #tpu.dot_dimension_numbers<[1], [0], [0], [1], [0, 0, 1, 1], [], []>} : vector<16x32xbf16>, vector<32x64xbf16>, vector<16x64xf32> -> vector<16x64xf32>
    %c0_134 = arith.constant 0 : index
    %c0_135 = arith.constant 0 : index
    %c0_136 = arith.constant 0 : index
    %285 = vector.load %arg8[%c0_134, %c0_135, %c0_136] : memref<1x1x64xf32, #tpu.memory_space<vmem>>, vector<1x1x64xf32>
    %286 = vector.shape_cast %285 : vector<1x1x64xf32> to vector<1x64xf32>
    %287 = vector.broadcast %286 : vector<1x64xf32> to vector<16x64xf32>
    %288 = arith.addf %284, %287 : vector<16x64xf32>
    %cst_137 = arith.constant 0.000000e+00 : f32
    %289 = vector.broadcast %cst_137 : f32 to vector<16x64xf32>
    %290 = arith.maximumf %288, %289 : vector<16x64xf32>
    %291 = arith.truncf %290 : vector<16x64xf32> to vector<16x64xbf16>
    %c0_138 = arith.constant 0 : index
    %c0_139 = arith.constant 0 : index
    %c0_140 = arith.constant 0 : index
    %292 = vector.load %arg9[%c0_138, %c0_139, %c0_140] : memref<1x64x32xbf16, #tpu.memory_space<vmem>>, vector<1x64x32xbf16>
    %293 = vector.shape_cast %292 : vector<1x64x32xbf16> to vector<64x32xbf16>
    %cst_141 = arith.constant dense<0.000000e+00> : vector<16x32xf32>
    %294 = tpu.matmul %291, %293, %cst_141 {dimension_numbers = #tpu.dot_dimension_numbers<[1], [0], [0], [1], [0, 0, 1, 1], [], []>} : vector<16x64xbf16>, vector<64x32xbf16>, vector<16x32xf32> -> vector<16x32xf32>
    %c0_142 = arith.constant 0 : index
    %c14 = arith.constant 14 : index
    %c0_143 = arith.constant 0 : index
    %295 = vector.load %arg6[%c0_142, %c14, %c0_143] : memref<1x15x32xf32, #tpu.memory_space<vmem>>, vector<1x1x32xf32>
    %296 = vector.shape_cast %295 : vector<1x1x32xf32> to vector<1x32xf32>
    %297 = vector.broadcast %296 : vector<1x32xf32> to vector<16x32xf32>
    %298 = arith.addf %294, %297 : vector<16x32xf32>
    %299 = arith.addf %280, %298 : vector<16x32xf32>
    %c0_144 = arith.constant 0 : index
    %c12 = arith.constant 12 : index
    %c0_145 = arith.constant 0 : index
    %300 = vector.load %arg6[%c0_144, %c12, %c0_145] : memref<1x15x32xf32, #tpu.memory_space<vmem>>, vector<1x1x32xf32>
    %301 = vector.shape_cast %300 : vector<1x1x32xf32> to vector<1x32xf32>
    %c0_146 = arith.constant 0 : index
    %c13 = arith.constant 13 : index
    %c0_147 = arith.constant 0 : index
    %302 = vector.load %arg6[%c0_146, %c13, %c0_147] : memref<1x15x32xf32, #tpu.memory_space<vmem>>, vector<1x1x32xf32>
    %303 = vector.shape_cast %302 : vector<1x1x32xf32> to vector<1x32xf32>
    %cst_148 = arith.constant dense<0.000000e+00> : vector<16xf32>
    %304 = vector.multi_reduction <add>, %299, %cst_148 [1] : vector<16x32xf32> to vector<16xf32>
    %305 = vector.shape_cast %304 : vector<16xf32> to vector<16x1xf32>
    %cst_149 = arith.constant 3.200000e+01 : f32
    %306 = vector.broadcast %cst_149 : f32 to vector<16x1xf32>
    %307 = arith.divf %305, %306 : vector<16x1xf32>
    %308 = vector.broadcast %307 : vector<16x1xf32> to vector<16x32xf32>
    %309 = arith.subf %299, %308 : vector<16x32xf32>
    %310 = arith.mulf %309, %309 : vector<16x32xf32>
    %cst_150 = arith.constant dense<0.000000e+00> : vector<16xf32>
    %311 = vector.multi_reduction <add>, %310, %cst_150 [1] : vector<16x32xf32> to vector<16xf32>
    %312 = vector.shape_cast %311 : vector<16xf32> to vector<16x1xf32>
    %cst_151 = arith.constant 3.200000e+01 : f32
    %313 = vector.broadcast %cst_151 : f32 to vector<16x1xf32>
    %314 = arith.divf %312, %313 : vector<16x1xf32>
    %315 = vector.broadcast %307 : vector<16x1xf32> to vector<16x32xf32>
    %316 = arith.subf %299, %315 : vector<16x32xf32>
    %cst_152 = arith.constant 9.99999974E-6 : f32
    %317 = vector.broadcast %cst_152 : f32 to vector<16x1xf32>
    %318 = arith.addf %314, %317 : vector<16x1xf32>
    %319 = math.rsqrt %318 : vector<16x1xf32>
    %320 = vector.broadcast %319 : vector<16x1xf32> to vector<16x32xf32>
    %321 = arith.mulf %316, %320 : vector<16x32xf32>
    %322 = vector.broadcast %301 : vector<1x32xf32> to vector<16x32xf32>
    %323 = arith.mulf %321, %322 : vector<16x32xf32>
    %324 = vector.broadcast %303 : vector<1x32xf32> to vector<16x32xf32>
    %325 = arith.addf %323, %324 : vector<16x32xf32>
    %c0_153 = arith.constant 0 : index
    %c0_154 = arith.constant 0 : index
    %326 = vector.load %arg15[%c0_153, %c0_154] : memref<16x32xf32, #tpu.memory_space<vmem>>, vector<16x32xf32>
    tpu.vector_store %arg15[%c0_153, %c0_154], %325 {strides = array<i32>} : memref<16x32xf32, #tpu.memory_space<vmem>>, vector<16x32xf32>,
    %c2_i32 = arith.constant 2 : i32
    %327 = arith.cmpi eq, %arg0, %c2_i32 : i32
    %328 = arith.extui %327 : i1 to i32
    %c0_i32_155 = arith.constant 0 : i32
    %329 = arith.cmpi ne, %328, %c0_i32_155 : i32
    scf.if %329 {
      %330 = arith.truncf %325 : vector<16x32xf32> to vector<16x32xbf16>
      %c0_156 = arith.constant 0 : index
      %c0_157 = arith.constant 0 : index
      %331 = vector.load %arg10[%c0_156, %c0_157] : memref<32x128xbf16, #tpu.memory_space<vmem>>, vector<32x128xbf16>
      %cst_158 = arith.constant dense<0.000000e+00> : vector<16x128xf32>
      %332 = tpu.matmul %330, %331, %cst_158 {dimension_numbers = #tpu.dot_dimension_numbers<[1], [0], [0], [1], [0, 0, 1, 1], [], []>} : vector<16x32xbf16>, vector<32x128xbf16>, vector<16x128xf32> -> vector<16x128xf32>
      %c0_159 = arith.constant 0 : index
      %c0_160 = arith.constant 0 : index
      %333 = vector.load %arg11[%c0_159, %c0_160] : memref<1x128xf32, #tpu.memory_space<vmem>>, vector<1x128xf32>
      %334 = vector.broadcast %333 : vector<1x128xf32> to vector<16x128xf32>
      %335 = arith.addf %332, %334 : vector<16x128xf32>
      %c0_161 = arith.constant 0 : index
      %c0_162 = arith.constant 0 : index
      %336 = vector.load %arg12[%c0_161, %c0_162] : memref<16x128xf32, #tpu.memory_space<vmem>>, vector<16x128xf32>
      tpu.vector_store %arg12[%c0_161, %c0_162], %335 {strides = array<i32>} : memref<16x128xf32, #tpu.memory_space<vmem>>, vector<16x128xf32>,
    } else {
    }
    return
  }
  func.func @transform_0(%arg0: i32) -> (i32, i32) {
    %c0_i32 = arith.constant 0 : i32
    %c0_i32_0 = arith.constant 0 : i32
    %c0_i32_1 = arith.constant 0 : i32
    return %c0_i32, %c0_i32_0 : i32, i32
  }
  func.func @transform_1(%arg0: i32) -> (i32, i32) {
    %c0_i32 = arith.constant 0 : i32
    %c0_i32_0 = arith.constant 0 : i32
    %c0_i32_1 = arith.constant 0 : i32
    return %c0_i32, %c0_i32_0 : i32, i32
  }
  func.func @transform_2(%arg0: i32) -> (i32, i32, i32, i32) {
    %c0_i32 = arith.constant 0 : i32
    %c0_i32_0 = arith.constant 0 : i32
    %c0_i32_1 = arith.constant 0 : i32
    %c0_i32_2 = arith.constant 0 : i32
    %c0_i32_3 = arith.constant 0 : i32
    return %c0_i32, %c0_i32_0, %c0_i32_1, %c0_i32_2 : i32, i32, i32, i32
  }
  func.func @transform_3(%arg0: i32) -> (i32, i32, i32, i32) {
    %c0_i32 = arith.constant 0 : i32
    %c0_i32_0 = arith.constant 0 : i32
    %c0_i32_1 = arith.constant 0 : i32
    %c0_i32_2 = arith.constant 0 : i32
    %c0_i32_3 = arith.constant 0 : i32
    return %c0_i32, %c0_i32_0, %c0_i32_1, %c0_i32_2 : i32, i32, i32, i32
  }
  func.func @transform_4(%arg0: i32) -> (i32, i32, i32, i32) {
    %c0_i32 = arith.constant 0 : i32
    %c0_i32_0 = arith.constant 0 : i32
    %c0_i32_1 = arith.constant 0 : i32
    %c0_i32_2 = arith.constant 0 : i32
    return %arg0, %c0_i32, %c0_i32_0, %c0_i32_1 : i32, i32, i32, i32
  }
  func.func @transform_5(%arg0: i32) -> (i32, i32, i32) {
    %c0_i32 = arith.constant 0 : i32
    %c0_i32_0 = arith.constant 0 : i32
    %c0_i32_1 = arith.constant 0 : i32
    return %arg0, %c0_i32, %c0_i32_0 : i32, i32, i32
  }
  func.func @transform_6(%arg0: i32) -> (i32, i32, i32) {
    %c0_i32 = arith.constant 0 : i32
    %c0_i32_0 = arith.constant 0 : i32
    %c0_i32_1 = arith.constant 0 : i32
    return %arg0, %c0_i32, %c0_i32_0 : i32, i32, i32
  }
  func.func @transform_7(%arg0: i32) -> (i32, i32, i32) {
    %c0_i32 = arith.constant 0 : i32
    %c0_i32_0 = arith.constant 0 : i32
    %c0_i32_1 = arith.constant 0 : i32
    return %arg0, %c0_i32, %c0_i32_0 : i32, i32, i32
  }
  func.func @transform_8(%arg0: i32) -> (i32, i32, i32) {
    %c0_i32 = arith.constant 0 : i32
    %c0_i32_0 = arith.constant 0 : i32
    %c0_i32_1 = arith.constant 0 : i32
    return %arg0, %c0_i32, %c0_i32_0 : i32, i32, i32
  }
  func.func @transform_9(%arg0: i32) -> (i32, i32) {
    %c0_i32 = arith.constant 0 : i32
    %c0_i32_0 = arith.constant 0 : i32
    %c0_i32_1 = arith.constant 0 : i32
    return %c0_i32, %c0_i32_0 : i32, i32
  }
  func.func @transform_10(%arg0: i32) -> (i32, i32) {
    %c0_i32 = arith.constant 0 : i32
    %c0_i32_0 = arith.constant 0 : i32
    %c0_i32_1 = arith.constant 0 : i32
    return %c0_i32, %c0_i32_0 : i32, i32
  }
  func.func @transform_11(%arg0: i32) -> (i32, i32) {
    %c0_i32 = arith.constant 0 : i32
    %c0_i32_0 = arith.constant 0 : i32
    %c0_i32_1 = arith.constant 0 : i32
    return %c0_i32, %c0_i32_0 : i32, i32
  }
  func.func @transform_12(%arg0: i32) -> (i32, i32, i32, i32) {
    %c0_i32 = arith.constant 0 : i32
    %c0_i32_0 = arith.constant 0 : i32
    %c0_i32_1 = arith.constant 0 : i32
    %c0_i32_2 = arith.constant 0 : i32
    return %arg0, %c0_i32, %c0_i32_0, %c0_i32_1 : i32, i32, i32, i32
  }
  func.func @transform_13(%arg0: i32) -> (i32, i32, i32, i32) {
    %c0_i32 = arith.constant 0 : i32
    %c0_i32_0 = arith.constant 0 : i32
    %c0_i32_1 = arith.constant 0 : i32
    %c0_i32_2 = arith.constant 0 : i32
    return %arg0, %c0_i32, %c0_i32_0, %c0_i32_1 : i32, i32, i32, i32
  }
}

</mosaic_0001>

<bundles_post_ra>
// kernel: decoder_forward.1
= control target key start
LH: loop header
LB: loop body
LE: loop exit
PB: predicated region body
PF: predicated region fallthrough
CT: control target
= control target key end

     0   :  { %s7920_s0 = inlined_call_operand.vmem [shape: f32[16,32], index: 0, kind: input, shape index: {}]   ;;  %s7921_s1 = inlined_call_operand.vmem [shape: f32[16,32], index: 1, kind: input, shape index: {}]   ;;  %s7922_s2 = inlined_call_operand.vmem [shape: s32[1,1,8,8], index: 2, kind: input, shape index: {}]   ;;  %s7923_s3 = inlined_call_operand.vmem [shape: s32[2,1,8,8], index: 3, kind: input, shape index: {}]   ;;  %s7924_s4 = inlined_call_operand.vmem [shape: bf16[3,8,32,32], index: 4, kind: input, shape index: {}]   ;;  %s7925_s5 = inlined_call_operand.vmem [shape: f32[3,15,32], index: 5, kind: input, shape index: {}]   ;;  %s7926_s6 = inlined_call_operand.vmem [shape: bf16[3,32,64], index: 6, kind: input, shape index: {}]   ;;  %s7927_s7 = inlined_call_operand.vmem [shape: f32[3,1,64], index: 7, kind: input, shape index: {}]   ;;  %s7928_s8 = inlined_call_operand.vmem [shape: bf16[3,64,32], index: 8, kind: input, shape index: {}]   ;;  %s7929_s9 = inlined_call_operand.vmem [shape: bf16[32,128], index: 9, kind: input, shape index: {}]   ;;  %s7930_s10 = inlined_call_operand.hbm [shape: f32[1,128], index: 10, kind: input, shape index: {}]   ;;  %s7931_s11 = inlined_call_operand.hbm [shape: f32[16,128], index: 11, kind: output, shape index: {0}]   ;;  %s7932_s12 = inlined_call_operand.hbm [shape: f32[3,4,8,8], index: 12, kind: output, shape index: {1}]   ;;  %s7933_s13 = inlined_call_operand.hbm [shape: f32[3,4,8,8], index: 13, kind: output, shape index: {2}]  }
   0x1   :  { %7949 = sst [smem:[#allocation19_spill]] %s7930_s10 }
   0x2   :  { %7950 = sst [smem:[#allocation20_spill]] %s7931_s11 }
   0x3   :  { %7951 = sst [smem:[#allocation21_spill]] %s7932_s12 }
   0x4   :  { %7952 = sst [smem:[#allocation22_spill]] %s7933_s13 }
   0x5   :  { %19 = vsyncpa [#allocation4], 0 }
   0x6   :  { %20 = vsyncpa [#allocation5], 0 }
   0x7   :  { %21 = vsyncpa [#allocation8], 0 }
   0x8   :  { %23 = vsyncpa [#allocation8 + $0x1], 0  ;;  %s6774_s25 = smov 0   ;;  %s6776_s26 = smov 0  }
   0x9   :  { %s6778_s27 = smov 0   ;;  %s6780_s28 = smov 0  }
   0xa LB: > { %7953 = sst [smem:[#allocation13_spill]] %s6677_s26  ;;  %s6793_s29 = sadd.s32 4294967295, %s6685_s28   ;;  %s6685_s28 = sphi %s6780_s28, %s7980_s28   ;;  %s6681_s27 = sphi %s6778_s27, %s7983_s27   ;;  %s6677_s26 = sphi %s6776_s26, %s7982_s26   ;;  %s6673_s25 = sphi %s6774_s25, %s7981_s25  }
   0xb   : > { %7954 = sst [smem:[#allocation14_spill]] %s6681_s27  ;;  %s7934_s30 = sadd.s32 4294967294, %s6685_s28  }
   0xc   : > { %7955 = sst [smem:[#allocation15_spill]] %s6685_s28  ;;  %s6797_s14 = sadd.s32 1, %s6685_s28  }
   0xd   : > { %7956 = sst [smem:[#allocation16_spill]] %s6797_s14  ;;  %s313_s15 = sadd.s32 1, %s6681_s27 }
   0xe   : > { %s310_s16 = ssub.s32 %s6685_s28, %s6797_s14  ;;  %p323_p0 = scmp.ne.s32.totalorder %s6681_s27, %s6677_s26 }
   0xf   : > { %p311_p1 = scmp.eq.s32.totalorder %s310_s16, 0  ;;  %p7936_p2 = scmp.eq.s32.totalorder %s6793_s29, 2 }
  0x10   : > { %p329_p3 = scmp.ne.s32.totalorder %s6677_s26, %s6673_s25  ;;  %p330_p4 = scmp.eq.s32.totalorder %s7934_s30, 2 }
  0x11   : > { %s6809_s17 = scalar_select %p311_p1, %s6681_s27, %s313_s15  }
  0x12   : > { %p6813_p5 = por %p7936_p2, %p323_p0  ;;  %p6817_p6 = por %p330_p4, %p329_p3 }
  0x13   : > { %7957 = sst [smem:[#allocation17_spill]] %s6809_s17  ;;  %p5765_p7 = scmp.ge.s32.totalorder %s6685_s28, 1 }
  0x14   : > { %s7958_s18 = scalar_select %p6813_p5, 1, 0 }
  0x15   : > { %s7959_s19 = scalar_select %p6817_p6, 1, 0 }
  0x16   : > { %p363_p8 = scmp.lt.s32.totalorder %s6685_s28, 4  ;;  %p7937_p10 = scmp.eq.s32.totalorder %s6793_s29, 0 }
  0x17   : > { %7960 = sst [smem:[#allocation18_spill]] %s7959_s19  ;;  %s6687_s21 = smov [#allocation3]  }
  0x18   : > { %p6825_p11 = pnand %p5765_p7, %p363_p8  ;;  %s391_s22 = sshll.u32 %s6687_s21, 4  ;;  %s392_s22 = int_to_ptr.vmem [resolvable:$true] %s391_s22 }
  0x19   : > { %s7963_s10 = sld [smem:[#allocation19_spill]] }
  0x1a   : > { %s7961_s20 = scalar_select %p6825_p11, 1, 0 }
  0x1b   : > { %p6338_p12 = pneg %p6825_p11 }
  0x1d   : > { %p6833_p13 = pnand %p7937_p10, %p6338_p12 }
  0x1f   : > { %s6533_s15 = scalar_lea.hbm %s7963_s10, 16  ;;  %p6535_p1 = pneg %p6833_p13 }
  0x20   : > { %p6534_p0 = scmp.ne.s32.totalorder %s7963_s10, %s6533_s15  ;;  %p6540_p7 = scmp.lt.u32.totalorder %s6533_s15, %s7963_s10 }
  0x22   : > { %p6536_p3 = pnand %p6535_p1, %p6534_p0 }
  0x24   : > { %p6537_p4 = pneg %p6536_p3 }
  0x26   : > { %p6542_p8 = pnand %p6540_p7, %p6537_p4 }
  0x28   : > { %6545 = shalt.err (!%p6542_p8)
}
  0x29   : > { %s6546_s27 = scalar_lea.vmem %s392_s22, 16  ;;  %s6553_s24 = scalar_lea.vmem %s392_s22, 32 }
  0x2a   : > { %p6547_p12 = scmp.ne.s32.totalorder %s392_s22, %s6546_s27  ;;  %p6554_p10 = scmp.lt.s32.totalorder %s392_s22, %s392_s22 }
  0x2b   : > { %p6555_p6 = scmp.lt.s32.totalorder %s6553_s24, %s6546_s27 }
  0x2c   : > { %p6549_p2 = pnand %p6547_p12, %p6535_p1 }
  0x2d   : > { %p6556_p5 = por %p6555_p6, %p6554_p10 }
  0x2e   : > { %p6550_p9 = pneg %p6549_p2 }
  0x30   : > { %p6557_p11 = pnand %p6556_p5, %p6550_p9 }
  0x32   : > { %6560 = shalt.err (!%p6557_p11)
}
  0x33   : > { %6341 = dma.hbm_to_vmem [thread:$0]  (!%p6833_p13), %s7963_s10, 16, %s392_s22, [#allocation4]  }
  0x34   : > { %p7964_p0 = scmp.ne.s32.totalorder %s7961_s20, 0 }
  0x35   : > { %p7965_p3 = scmp.eq.s32.totalorder (!%p7964_p0), %s6793_s29, 0 }
  0x36   : > { %442 = sbr.rel (%p7964_p0) target bundleno = 5909 (0x1715), region = 64 }
  0x3d   : > { %6660 = dma.done.wait (%p7965_p3), [#allocation4], 16   ;;  %p7966_p2 = pmov %p7965_p3 }
  0x3e   : > { %s499_s27 = sand.u32 1, %s6677_s26   ;;  %p509_p5 = scmp.lt.s32.totalorder %s6793_s29, 2 }
  0x3f   : > { %6662 = vsyncadd (%p7966_p2), [#allocation4], 4294967280  ;;  %s5770_s17 = sshll.u32 %s499_s27, 5  ;;  %p7967_p6 = scmp.ne.s32.totalorder %s6793_s29, 0 }
  0x40   : > { %s6862_s23 = scalar_select %p509_p5, %s6793_s29, 2 }
  0x41   : > { %s6891_s15 = scalar_lea.vmem [#allocation7], %s5770_s17  ;;  %s6893_s16 = scalar_lea.vmem [#allocation9], %s5770_s17  ;;  %v537_v0 = vld [vmem:[%s7920_s0] sm:$0xff] (!%p7967_p6)  ;;  %vm539_vm0 = vcmask (!%p7967_p6), 261120   ;;  %v538_v1 = vld [vmem:[%s7920_s0 + $0x8] sm:$0xff] (!%p7967_p6) }
  0x42   : > { %s5937_s20 = sshll.u32 %s6862_s23, 7  ;;  %s5938_s22 = sshll.u32 %s6862_s23, 4  ;;  %540 = vst.msk [vmem:[#allocation2] sm:$0xff] (!%p7967_p6), %vm539_vm0, %v537_v0  ;;  %541 = vst.msk [vmem:[#allocation2 + $0x8] sm:$0xff] (!%p7967_p6), %vm539_vm0, %v538_v1 }
  0x43   : > { %s6869_s21 = scalar_lea.vmem %s7924_s4, %s5937_s20  ;;  %s6874_s25 = scalar_lea.vmem %s7925_s5, %s5938_s22 }
  0x44   : > { %s6879_s26 = scalar_lea.vmem %s7926_s6, %s5938_s22  ;;  %s526_s28 = scalar_lea.vmem %s7927_s7, %s6862_s23 }
  0x45   : > { %s5940_s11 = sshll.u32 %s6862_s23, 5  ;;  %536 = sbr.rel (%p7967_p6) target bundleno = 76 (0x4c), region = 72 }
  0x46   : > { %s6889_s20 = scalar_lea.vmem %s7928_s8, %s5940_s11 }
  0x4c PF: > { %v6431_v2 = vld [vmem:[%s6869_s21 + $0x10] sm:$0xff]   ;;  %v6688_v3 = vmov 0.0   ;;  %v6432_v4 = vld [vmem:[%s6869_s21] sm:$0xff]   ;;  %v6433_v5 = vld [vmem:[%s6869_s21 + $0x18] sm:$0xff]   ;;  %vm6689_vm1 = vmmov 0   ;;  %vm568_vm2 = vcmask 261120   ;;  %v754_v28 = vlaneseq }
  0x4d   : > { %6050 = vmatprep.subr.bf16.mxu1 %v6688_v3  ;;  %6042 = vmatprep.subr.bf16.mxu0 %v6688_v3  ;;  %v542_v6 = vld [vmem:[#allocation2] sm:$0xff]  ;;  %v543_v7 = vld [vmem:[#allocation2 + $0x8] sm:$0xff]  ;;  %s6690_s11 = smov 104   ;;  %s6691_s12 = smov 120   ;;  %v6693_v26 = vmov 1983009808  }
  0x4e   : > { %6051 = vmatpush3.bf16.msra.mxu1 %v6431_v2  ;;  %6054 = vmatprep.mubr.msk.bf16.mxu1 %vm6689_vm1, %v6688_v3  ;;  %v6434_v8 = vld [vmem:[%s6869_s21 + $0x8] sm:$0xff]   ;;  %v546_v9 = vpack.c.bf16 %v543_v7, %v542_v6  ;;  %v5789_v10 = vld [vmem:[%s6874_s25 + $0x1] ss:$0 sm:$0xff]  ;;  %v5781_v12 = vld [vmem:[%s6874_s25] ss:$0 sm:$0xff]  ;;  %s6692_s13 = smov 112   ;;  %v752_v27 = vunpack.c.l.s4 %v6693_v26 }
  0x4f   : > { %6052 = vmatprep.subr.bf16.mxu1 %v6688_v3  ;;  %6043 = vmatpush3.bf16.msra.mxu0 %v6432_v4  ;;  %v6435_v16 = vld [vmem:[%s6869_s21 + $0x20] sm:$0xff]   ;;  %v6436_v25 = vld [vmem:[%s6869_s21 + $0x28] sm:$0xff]   ;;  %v6694_v29 = vmov 1934713408   ;;  %v755_v32 = vshrl.u32 %v754_v28, 7  ;;  %vm1189_vm3 = vcmask 64512  }
  0x50   : > { %6044 = vmatprep.subr.bf16.mxu0 %v6688_v3  ;;  %6046 = vmatprep.mubr.msk.bf16.mxu0 %vm6689_vm1, %v6688_v3  ;;  %v784_v30 = vunpack.c.l.s4 %v6694_v29  ;;  %v753_v31 = vunpack.c.0.s8 %v752_v27  ;;  %vm1441_vm5 = vcmask 1043456   ;;  %s6695_s30 = smov 16   ;;  %s6696_s27 = smov 8   ;;  %vm1772_vm6 = vcmask 130048  }
  0x51   : > { %s6697_s10 = smov 24   ;;  %vm1774_vm7 = vcmask 195584   ;;  %vm5392_vm10 = vcmask 523264   ;;  %p5922_p9 = scmp.ne.s32.totalorder %s6793_s29, 2 }
  0x52   : > { %6053 = vmatpush3.bf16.msra.mxu1 %v6433_v5  ;;  %v785_v35 = vunpack.c.0.s8 %v784_v30  ;;  %v6942_v36 = vsub.s32 %v753_v31, %v755_v32  ;;  %vm6699_vm11 = vmmov (!%p5922_p9), 0  }
  0x53   : > { %6045 = vmatpush3.bf16.msra.mxu0 %v6434_v8  ;;  %6066 = vmatprep.subr.bf16.mxu1 %v6688_v3 }
  0x54   : > { %6058 = vmatprep.subr.bf16.mxu0 %v6688_v3  ;;  %v6944_v43 = vsub.s32 %v785_v35, %v755_v32 }
  0x55   : > { %6055 = vmatmul.mubr.msk.bf16.vlgmr.msra.gmra.mrb[0].mxu1 %vm568_vm2, %v546_v9 }
  0x56   : > { %6047 = vmatmul.mubr.msk.bf16.vlgmr.msra.gmra.mrb[0].mxu0 %vm568_vm2, %v546_v9  ;;  %6068 = vmatprep.mubr.msk.bf16.mxu1 %vm6689_vm1, %v6688_v3 }
  0x57   : > { %6062 = vmatprep.mubr.msk.bf16.mxu0 %vm6689_vm1, %v6688_v3  ;;  %6059 = vmatpush3.bf16.msra.mxu0 %v6435_v16 }
  0x58   : > { %6060 = vmatprep.subr.bf16.mxu0 %v6688_v3 }
  0x5b   : > { %6061 = vmatpush3.bf16.msra.mxu0 %v6436_v25 }
  0x5c   : > { %6072 = vmatprep.subr.bf16.mxu0 %v6688_v3 }
  0x5e   : > { %6063 = vmatmul.mubr.msk.bf16.vlgmr.msra.gmra.mrb[4].mxu0 %vm568_vm2, %v546_v9 }
  0x5f   : > { %6074 = vmatprep.mubr.msk.bf16.mxu0 %vm6689_vm1, %v6688_v3 }
 0x128   : > { %v669_v11 = vpop.f32.mrb[0].mxu1 }
 0x129   : > { %v670_v13 = vadd.f32 %v5789_v10, %v669_v11  ;;  %v6056_v14 = vpop.f32.mrb[1].mxu1  ;;  %v606_v15 = vpop.f32.mrb[0].mxu0 }
 0x12a   : > { %v672_v17 = vpop.f32.mrb[2].mxu1  ;;  %v6048_v18 = vpop.f32.mrb[1].mxu0  ;;  %v607_v21 = vadd.f32 %v5781_v12, %v606_v15 }
 0x12b   : > { %v6926_v19 = vadd.f32 %v5789_v10, %v672_v17  ;;  %896 = vrot.lane.b32.xlu1 %v670_v13, %s6690_s11  ;;  %890 = vrot.lane.b32.xlu0 %v670_v13, %s6691_s12  ;;  %v6057_v20 = vpop.f32.mrb[3].mxu1  ;;  %v609_v22 = vpop.f32.mrb[2].mxu0 }
 0x12c   : > { %v6930_v23 = vadd.f32 %v5781_v12, %v609_v22  ;;  %v6049_v24 = vpop.f32.mrb[3].mxu0 }
 0x12f   : > { %893 = vrot.lane.b32.xlu0 %v670_v13, %s6692_s13  ;;  %740 = vrot.lane.b32.xlu1 %v607_v21, %s6691_s12 }
 0x133   : > { %743 = vrot.lane.b32.xlu0 %v607_v21, %s6692_s13  ;;  %746 = vrot.lane.b32.xlu1 %v607_v21, %s6690_s11 }
 0x19d   : > { %v897_v33 = vpop.permute.xlu1 %896  ;;  %v891_v34 = vpop.permute.xlu0 %890 }
 0x19e   : > { %v915_v37 = vcombine.low %v891_v34, %v897_v33  ;;  %v916_v38 = vcombine.high %v891_v34, %v897_v33 }
 0x1a0   : > { %v923_v44 = vrot.slane %v915_v37, %v6942_v36  ;;  %v930_v45 = vrot.slane %v916_v38, %v6942_v36 }
 0x1a1   : > { %v894_v39 = vpop.permute.xlu0 %893  ;;  %v741_v40 = vpop.permute.xlu1 %740 }
 0x1a2   : > { %v899_v41 = vcombine.low %v670_v13, %v894_v39  ;;  %v900_v42 = vcombine.high %v670_v13, %v894_v39 }
 0x1a4   : > { %v907_v46 = vrot.slane %v899_v41, %v6942_v36  ;;  %v914_v47 = vrot.slane %v900_v42, %v6942_v36 }
 0x1a5   : > { %v744_v48 = vpop.permute.xlu0 %743  ;;  %v747_v49 = vpop.permute.xlu1 %746 }
 0x1a6   : > { %v931_v50 = vcombine.low %v907_v46, %v923_v44  ;;  %v932_v51 = vcombine.high %v907_v46, %v923_v44  ;;  %v947_v52 = vcombine.low %v914_v47, %v930_v45  ;;  %v948_v53 = vcombine.high %v914_v47, %v930_v45 }
 0x1a7   : > { %v749_v54 = vcombine.low %v607_v21, %v744_v48  ;;  %v750_v55 = vcombine.high %v607_v21, %v744_v48  ;;  %v765_v56 = vcombine.low %v741_v40, %v747_v49  ;;  %v766_v57 = vcombine.high %v741_v40, %v747_v49 }
 0x1a8   : > { %v939_v58 = vrot.slane %v931_v50, %v6944_v43  ;;  %v946_v59 = vrot.slane %v932_v51, %v6944_v43  ;;  %v955_v60 = vrot.slane %v947_v52, %v6944_v43  ;;  %v962_v61 = vrot.slane %v948_v53, %v6944_v43 }
 0x1a9   : > { %v757_v62 = vrot.slane %v749_v54, %v6942_v36  ;;  %v764_v63 = vrot.slane %v750_v55, %v6942_v36  ;;  %v773_v0 = vrot.slane %v765_v56, %v6942_v36  ;;  %v780_v1 = vrot.slane %v766_v57, %v6942_v36 }
 0x1aa   : > { %v967_v2 = vcombine.low %v939_v58, %v946_v59  ;;  %v5803_v4 = vcombine.high %v939_v58, %v946_v59  ;;  %v983_v5 = vcombine.low %v955_v60, %v962_v61  ;;  %v5804_v6 = vcombine.high %v955_v60, %v962_v61 }
 0x1ab   : > { %v781_v7 = vcombine.low %v757_v62, %v773_v0  ;;  %v782_v8 = vcombine.high %v757_v62, %v773_v0  ;;  %v797_v9 = vcombine.low %v764_v63, %v780_v1  ;;  %v798_v10 = vcombine.high %v764_v63, %v780_v1 }
 0x1ac   : > { %v974_v11 = vrot.slane %v967_v2, %v6942_v36  ;;  %v982_v12 = vrot.slane %v5803_v4, %v6942_v36  ;;  %v990_v13 = vrot.slane %v983_v5, %v6942_v36  ;;  %v998_v14 = vrot.slane %v5804_v6, %v6942_v36  ;;  %v5797_v4 = vld [vmem:[%s6874_s25 + $0x2] ss:$0 sm:$0xff]  ;;  %v732_v5 = vpop.f32.mrb[4].mxu0 }
 0x1ad   : > { %v789_v15 = vrot.slane %v781_v7, %v6944_v43  ;;  %v796_v16 = vrot.slane %v782_v8, %v6944_v43  ;;  %v805_v17 = vrot.slane %v797_v9, %v6944_v43  ;;  %v812_v18 = vrot.slane %v798_v10, %v6944_v43  ;;  %v6064_v6 = vpop.f32.mrb[5].mxu0  ;;  %v7004_v10 = vld [vmem:[%s7922_s2] sm:$0xff] }
 0x1ae   : > { %v999_v20 = vcombine.low %v974_v11, %v982_v12  ;;  %v1015_v21 = vcombine.low %v990_v13, %v998_v14  ;;  %v1000_v22 = vcombine.high %v974_v11, %v982_v12  ;;  %v1016_v24 = vcombine.high %v990_v13, %v998_v14  ;;  %v735_v7 = vpop.f32.mrb[6].mxu0 }
 0x1af   : > { %v817_v25 = vcombine.low %v789_v15, %v796_v16  ;;  %v5801_v26 = vcombine.high %v789_v15, %v796_v16  ;;  %v833_v27 = vcombine.low %v805_v17, %v812_v18  ;;  %v5802_v28 = vcombine.high %v805_v17, %v812_v18  ;;  %v6065_v9 = vpop.f32.mrb[7].mxu0 }
 0x1b0   : > { %v1007_v29 = vrot.slane %v999_v20, %v6944_v43  ;;  %v1023_v30 = vrot.slane %v1015_v21, %v6944_v43  ;;  %v1014_v38 = vrot.slane %v1000_v22, %v6944_v43  ;;  %v1030_v39 = vrot.slane %v1016_v24, %v6944_v43 }
 0x1b1   : > { %v824_v31 = vrot.slane %v817_v25, %v6942_v36  ;;  %v832_v32 = vrot.slane %v5801_v26, %v6942_v36  ;;  %v840_v33 = vrot.slane %v833_v27, %v6942_v36  ;;  %v848_v34 = vrot.slane %v5802_v28, %v6942_v36 }
 0x1b2   : > { %v1031_v35 = vcombine.low %v1007_v29, %v1023_v30  ;;  %v1032_v37 = vcombine.high %v1007_v29, %v1023_v30  ;;  %v1033_v49 = vcombine.low %v1014_v38, %v1030_v39  ;;  %v1034_v50 = vcombine.high %v1014_v38, %v1030_v39 }
 0x1b3   : > { %v849_v40 = vcombine.low %v824_v31, %v832_v32  ;;  %v865_v41 = vcombine.low %v840_v33, %v848_v34  ;;  %v850_v51 = vcombine.high %v824_v31, %v832_v32  ;;  %v866_v52 = vcombine.high %v840_v33, %v848_v34 }
 0x1b4   : > { %v1035_v42 = vpack.c.bf16 %v1031_v35, %v1031_v35  ;;  %v1036_v44 = vpack.c.bf16 %v1032_v37, %v1032_v37  ;;  %v1037_v55 = vpack.c.bf16 %v1033_v49, %v1033_v49  ;;  %v1038_v56 = vpack.c.bf16 %v1034_v50, %v1034_v50 }
 0x1b5   : > { %v857_v45 = vrot.slane %v849_v40, %v6944_v43  ;;  %v873_v46 = vrot.slane %v865_v41, %v6944_v43  ;;  %v864_v59 = vrot.slane %v850_v51, %v6944_v43  ;;  %v880_v60 = vrot.slane %v866_v52, %v6944_v43 }
 0x1b6   : > { %v1194_v47 = vsel %vm1189_vm3, %v1035_v42, 0  ;;  %v1240_v48 = vsel %vm1189_vm3, %v1036_v44, 0  ;;  %v1286_v61 = vsel %vm1189_vm3, %v1037_v55, 0  ;;  %v1332_v62 = vsel %vm1189_vm3, %v1038_v56, 0 }
 0x1b7   : > { %6067 = vmatpush3.bf16.xpose.msra.mxu1 %v1194_v47  ;;  %6073 = vmatpush3.bf16.xpose.msra.mxu0 %v1240_v48  ;;  %v881_v53 = vcombine.low %v857_v45, %v873_v46  ;;  %v882_v54 = vcombine.high %v857_v45, %v873_v46  ;;  %v883_v63 = vcombine.low %v864_v59, %v880_v60  ;;  %vm1379_vm4 = vcmp.ne.s32.totalorder %v7004_v10, 0 }
 0x1b8   : > { %6078 = vmatprep.subr.bf16.mxu1 %v6688_v3  ;;  %6084 = vmatprep.subr.bf16.mxu0 %v6688_v3  ;;  %v884_v0 = vcombine.high %v864_v59, %v880_v60  ;;  %v6999_v8 = vadd.f32 %v5797_v4, %v735_v7  ;;  %v733_v42 = vadd.f32 %v5797_v4, %v732_v5 }
 0x1b9   : > { %v885_v57 = vpack.c.bf16 %v881_v53, %v881_v53  ;;  %v886_v58 = vpack.c.bf16 %v882_v54, %v882_v54  ;;  %v887_v1 = vpack.c.bf16 %v883_v63, %v883_v63 }
 0x1ba   : > { %v888_v2 = vpack.c.bf16 %v884_v0, %v884_v0 }
 0x1be   : > { %6069 = vmatmul.mubr.msk.bf16.vlgmr.msra.gmra.mrb[4].mxu1 %vm1189_vm3, %v885_v57  ;;  %6075 = vmatmul.mubr.msk.bf16.vlgmr.msra.gmra.mrb[8].mxu0 %vm1189_vm3, %v886_v58 }
 0x1bf   : > { %6079 = vmatpush3.bf16.xpose.msra.mxu1 %v1286_v61  ;;  %6085 = vmatpush3.bf16.xpose.msra.mxu0 %v1332_v62 }
 0x1c0   : > { %6080 = vmatprep.mubr.msk.bf16.mxu1 %vm6689_vm1, %v6688_v3  ;;  %6086 = vmatprep.mubr.msk.bf16.mxu0 %vm6689_vm1, %v6688_v3 }
 0x1c1   : > { %6090 = vmatprep.subr.bf16.mxu1 %v6688_v3  ;;  %6096 = vmatprep.subr.bf16.mxu0 %v6688_v3 }
 0x1c6   : > { %6081 = vmatmul.mubr.msk.bf16.vlgmr.msra.gmra.mrb[8].mxu1 %vm1189_vm3, %v887_v1  ;;  %6087 = vmatmul.mubr.msk.bf16.vlgmr.msra.gmra.mrb[12].mxu0 %vm1189_vm3, %v888_v2 }
 0x1c7   : > { %6092 = vmatprep.mubr.msk.bf16.mxu1 %vm6689_vm1, %v6688_v3  ;;  %6098 = vmatprep.mubr.msk.bf16.mxu0 %vm6689_vm1, %v6688_v3 }
 0x291   : > { %v1230_v11 = vpop.f32.mrb[4].mxu1  ;;  %v1276_v12 = vpop.f32.mrb[8].mxu0 }
 0x292   : > { %v1374_v13 = vmul.f32 0.35355338, %v1230_v11  ;;  %v1375_v14 = vmul.f32 0.35355338, %v1276_v12  ;;  %v6070_v15 = vpop.f32.mrb[5].mxu1  ;;  %v6076_v16 = vpop.f32.mrb[9].mxu0 }
 0x293   : > { %v1233_v17 = vpop.f32.mrb[6].mxu1  ;;  %v1279_v18 = vpop.f32.mrb[10].mxu0 }
 0x294   : > { %v6071_v20 = vpop.f32.mrb[7].mxu1  ;;  %v6077_v21 = vpop.f32.mrb[11].mxu0  ;;  %v1382_v22 = vsel %vm1379_vm4, -1e+10, %v1374_v13  ;;  %v1383_v24 = vsel %vm1379_vm4, -1e+10, %v1375_v14 }
 0x295   : > { %v1386_v25 = vsel %vm1189_vm3, %v1382_v22, -inf  ;;  %v1389_v26 = vsel %vm1189_vm3, %v1383_v24, -inf }
 0x296   : > { %1387 = vmax.xlane.f32.xlu0 %v1386_v25  ;;  %1390 = vmax.xlane.f32.xlu1 %v1389_v26 }
 0x299   : > { %v1322_v27 = vpop.f32.mrb[8].mxu1  ;;  %v1368_v28 = vpop.f32.mrb[12].mxu0 }
 0x29a   : > { %v1376_v29 = vmul.f32 0.35355338, %v1322_v27  ;;  %v1377_v30 = vmul.f32 0.35355338, %v1368_v28  ;;  %v6082_v31 = vpop.f32.mrb[9].mxu1  ;;  %v6088_v32 = vpop.f32.mrb[13].mxu0 }
 0x29b   : > { %v1325_v33 = vpop.f32.mrb[10].mxu1  ;;  %v1371_v34 = vpop.f32.mrb[14].mxu0 }
 0x29c   : > { %v6083_v35 = vpop.f32.mrb[11].mxu1  ;;  %v6089_v37 = vpop.f32.mrb[15].mxu0  ;;  %v1384_v38 = vsel %vm1379_vm4, -1e+10, %v1376_v29  ;;  %v1385_v40 = vsel %vm1379_vm4, -1e+10, %v1377_v30 }
 0x29d   : > { %v1392_v39 = vsel %vm1189_vm3, %v1384_v38, -inf  ;;  %v1395_v41 = vsel %vm1189_vm3, %v1385_v40, -inf }
 0x29e   : > { %1393 = vmax.xlane.f32.xlu0 %v1392_v39 }
 0x2a2   : > { %1396 = vmax.xlane.f32.xlu0 %v1395_v41 }
 0x2a7   : > { %1040 = vrot.lane.b32.xlu1 %v733_v42, %s6691_s12 }
 0x2ab   : > { %1046 = vrot.lane.b32.xlu1 %v733_v42, %s6690_s11 }
 0x2af   : > { %1930 = vrot.lane.b32.xlu1 %v6926_v19, %s6692_s13 }
 0x2b3   : > { %1933 = vrot.lane.b32.xlu1 %v6926_v19, %s6690_s11 }
 0x2b8   : > { %1043 = vrot.lane.b32.xlu0 %v733_v42, %s6692_s13 }
 0x2bc   : > { %1927 = vrot.lane.b32.xlu0 %v6926_v19, %s6691_s12 }
 0x2c0   : > { %1777 = vrot.lane.b32.xlu0 %v6930_v23, %s6691_s12 }
 0x323   : > { %v1388_v44 = vpop.xlane.xlu0 %1387  ;;  %v1391_v45 = vpop.xlane.xlu1 %1390 }
 0x324   : > { %v1398_v46 = vsub.f32 %v1382_v22, %v1388_v44  ;;  %v1399_v47 = vsub.f32 %v1383_v24, %v1391_v45 }
 0x326   : > { %v1402_v48 = vmul.f32 1.442695, %v1398_v46  ;;  %v1404_v49 = vmul.f32 1.442695, %v1399_v47 }
 0x327   : > { %v1041_v50 = vpop.permute.xlu1 %1040 }
 0x328   : > { %6453 = vpow2.f32 %v1402_v48 }
 0x329   : > { %6455 = vpow2.f32 %v1404_v49 }
 0x32b   : > { %v1394_v51 = vpop.xlane.xlu0 %1393  ;;  %v1047_v54 = vpop.permute.xlu1 %1046 }
 0x32c   : > { %v1400_v52 = vsub.f32 %v1384_v38, %v1394_v51  ;;  %v1065_v58 = vcombine.low %v1041_v50, %v1047_v54  ;;  %v1066_v59 = vcombine.high %v1041_v50, %v1047_v54 }
 0x32e   : > { %v1406_v53 = vmul.f32 1.442695, %v1400_v52  ;;  %v1073_v4 = vrot.slane %v1065_v58, %v6942_v36  ;;  %v1080_v5 = vrot.slane %v1066_v59, %v6942_v36 }
 0x32f   : > { %v1397_v55 = vpop.xlane.xlu0 %1396  ;;  %v1931_v50 = vpop.permute.xlu1 %1930 }
 0x330   : > { %6457 = vpow2.f32 %v1406_v53  ;;  %v1401_v56 = vsub.f32 %v1385_v40, %v1397_v55  ;;  %v1936_v55 = vcombine.low %v6926_v19, %v1931_v50 }
 0x332   : > { %v7030_v57 = vpop.eup %6453  ;;  %v1408_v60 = vmul.f32 1.442695, %v1401_v56  ;;  %v1937_v56 = vcombine.high %v6926_v19, %v1931_v50 }
 0x333   : > { %v7032_v61 = vpop.eup %6455  ;;  %v1044_v62 = vpop.permute.xlu0 %1043  ;;  %v1410_v63 = vsel %vm1189_vm3, %v7030_v57, 0.0 }
 0x334   : > { %6459 = vpow2.f32 %v1408_v60  ;;  %v1049_v0 = vcombine.low %v733_v42, %v1044_v62  ;;  %v1050_v1 = vcombine.high %v733_v42, %v1044_v62  ;;  %1411 = vadd.xlane.f32.xlu1 %v1410_v63  ;;  %v1413_v2 = vsel %vm1189_vm3, %v7032_v61, 0.0  ;;  %v1934_v52 = vpop.permute.xlu1 %1933 }
 0x335   : > { %1414 = vadd.xlane.f32.xlu0 %v1413_v2  ;;  %v1944_v60 = vrot.slane %v1936_v55, %v6942_v36  ;;  %v1951_v62 = vrot.slane %v1937_v56, %v6942_v36 }
 0x336   : > { %v1057_v6 = vrot.slane %v1049_v0, %v6942_v36  ;;  %v1064_v7 = vrot.slane %v1050_v1, %v6942_v36 }
 0x337   : > { %v1928_v51 = vpop.permute.xlu0 %1927 }
 0x338   : > { %v1081_v9 = vcombine.low %v1057_v6, %v1073_v4  ;;  %v1082_v11 = vcombine.high %v1057_v6, %v1073_v4  ;;  %v1097_v12 = vcombine.low %v1064_v7, %v1080_v5  ;;  %v1098_v13 = vcombine.high %v1064_v7, %v1080_v5 }
 0x339   : > { %v1952_v53 = vcombine.low %v1928_v51, %v1934_v52  ;;  %v1953_v54 = vcombine.high %v1928_v51, %v1934_v52 }
 0x33a   : > { %v7042_v14 = vpop.eup %6457  ;;  %v1089_v15 = vrot.slane %v1081_v9, %v6944_v43  ;;  %v1096_v16 = vrot.slane %v1082_v11, %v6944_v43  ;;  %v1105_v17 = vrot.slane %v1097_v12, %v6944_v43  ;;  %v1112_v18 = vrot.slane %v1098_v13, %v6944_v43 }
 0x33b   : > { %v1416_v20 = vsel %vm1189_vm3, %v7042_v14, 0.0  ;;  %v1960_v58 = vrot.slane %v1952_v53, %v6942_v36  ;;  %v1967_v59 = vrot.slane %v1953_v54, %v6942_v36  ;;  %v1778_v7 = vpop.permute.xlu0 %1777 }
 0x33c   : > { %v1117_v21 = vcombine.low %v1089_v15, %v1096_v16  ;;  %v5805_v22 = vcombine.high %v1089_v15, %v1096_v16  ;;  %v1133_v24 = vcombine.low %v1105_v17, %v1112_v18  ;;  %v5806_v25 = vcombine.high %v1105_v17, %v1112_v18  ;;  %1417 = vadd.xlane.f32.xlu1 %v1416_v20 }
 0x33d   : > { %v1968_v63 = vcombine.low %v1944_v60, %v1960_v58  ;;  %v1969_v0 = vcombine.high %v1944_v60, %v1960_v58  ;;  %v1984_v1 = vcombine.low %v1951_v62, %v1967_v59  ;;  %v1985_v2 = vcombine.high %v1951_v62, %v1967_v59 }
 0x33e   : > { %v7050_v26 = vpop.eup %6459  ;;  %v1124_v27 = vrot.slane %v1117_v21, %v6942_v36  ;;  %v1132_v28 = vrot.slane %v5805_v22, %v6942_v36  ;;  %v1140_v29 = vrot.slane %v1133_v24, %v6942_v36  ;;  %v1148_v30 = vrot.slane %v5806_v25, %v6942_v36 }
 0x33f   : > { %v1419_v31 = vsel %vm1189_vm3, %v7050_v26, 0.0  ;;  %v1976_v4 = vrot.slane %v1968_v63, %v6944_v43  ;;  %v1983_v5 = vrot.slane %v1969_v0, %v6944_v43  ;;  %v1992_v6 = vrot.slane %v1984_v1, %v6944_v43 }
 0x340   : > { %v1149_v32 = vcombine.low %v1124_v27, %v1132_v28  ;;  %v1165_v33 = vcombine.low %v1140_v29, %v1148_v30  ;;  %v1150_v34 = vcombine.high %v1124_v27, %v1132_v28  ;;  %1420 = vadd.xlane.f32.xlu0 %v1419_v31  ;;  %v1166_v39 = vcombine.high %v1140_v29, %v1148_v30 }
 0x341   : > { %v1999_v19 = vrot.slane %v1985_v2, %v6944_v43  ;;  %v2004_v9 = vcombine.low %v1976_v4, %v1983_v5  ;;  %v5819_v12 = vcombine.high %v1976_v4, %v1983_v5 }
 0x342   : > { %v1157_v35 = vrot.slane %v1149_v32, %v6944_v43  ;;  %v1173_v37 = vrot.slane %v1165_v33, %v6944_v43  ;;  %v1164_v38 = vrot.slane %v1150_v34, %v6944_v43  ;;  %v1180_v42 = vrot.slane %v1166_v39, %v6944_v43 }
 0x343   : > { %v2020_v13 = vcombine.low %v1992_v6, %v1999_v19  ;;  %v5820_v15 = vcombine.high %v1992_v6, %v1999_v19  ;;  %v2011_v17 = vrot.slane %v2004_v9, %v6942_v36  ;;  %v2019_v18 = vrot.slane %v5819_v12, %v6942_v36 }
 0x344   : > { %v1181_v40 = vcombine.low %v1157_v35, %v1173_v37  ;;  %v1182_v41 = vcombine.high %v1157_v35, %v1173_v37  ;;  %v7062_v46 = vcombine.low %v1164_v38, %v1180_v42  ;;  %v7064_v47 = vcombine.high %v1164_v38, %v1180_v42 }
 0x345   : > { %v7087_v20 = vrot.slane %v2020_v13, %v6942_v36  ;;  %v7090_v21 = vrot.slane %v5820_v15, %v6942_v36  ;;  %v2036_v24 = vcombine.low %v2011_v17, %v2019_v18 }
 0x346   : > { %v1185_v44 = vpack.c.bf16 %v1181_v40, %v1181_v40  ;;  %v1186_v45 = vpack.c.bf16 %v1182_v41, %v1182_v41  ;;  %v1187_v31 = vpack.c.bf16 %v7062_v46, %v7062_v46  ;;  %v1188_v34 = vpack.c.bf16 %v7064_v47, %v7064_v47 }
 0x347   : > { %v2052_v25 = vcombine.low %v7087_v20, %v7090_v21  ;;  %v2044_v35 = vrot.slane %v2036_v24, %v6944_v43  ;;  %v2053_v55 = vcombine.high %v7087_v20, %v7090_v21 }
 0x348   : > { %v1443_v48 = vsel %vm1441_vm5, %v1185_v44, 0  ;;  %v1489_v49 = vsel %vm1441_vm5, %v1186_v45, 0  ;;  %v1581_v41 = vsel %vm1441_vm5, %v1188_v34, 0 }
 0x349   : > { %6091 = vmatpush3.bf16.msra.mxu1 %v1443_v48  ;;  %6097 = vmatpush3.bf16.msra.mxu0 %v1489_v49  ;;  %v2060_v37 = vrot.slane %v2052_v25, %v6944_v43  ;;  %v2037_v48 = vcombine.high %v2011_v17, %v2019_v18 }
 0x34a   : > { %6102 = vmatprep.subr.bf16.mxu1 %v6688_v3  ;;  %6108 = vmatprep.subr.bf16.mxu0 %v6688_v3 }
 0x34b   : > { %v2068_v44 = vcombine.low %v2044_v35, %v2060_v37  ;;  %v2069_v54 = vcombine.high %v2044_v35, %v2060_v37  ;;  %v2051_v62 = vrot.slane %v2037_v48, %v6944_v43 }
 0x34d   : > { %1780 = vrot.lane.b32.xlu1 %v6930_v23, %s6692_s13  ;;  %v2072_v53 = vpack.c.bf16 %v2068_v44, %v2068_v44  ;;  %v2073_v19 = vpack.c.bf16 %v2069_v54, %v2069_v54 }
 0x34f   : > { %v2230_v6 = vsel %vm1189_vm3, %v2072_v53, 0  ;;  %v2276_v20 = vsel %vm1189_vm3, %v2073_v19, 0 }
 0x356   : > { %1783 = vrot.lane.b32.xlu0 %v6930_v23, %s6690_s11 }
 0x3c1   : > { %v1412_v11 = vpop.xlane.xlu1 %1411 }
 0x3c2   : > { %6461 = vrcp.f32 %v1412_v11  ;;  %v1415_v16 = vpop.xlane.xlu0 %1414 }
 0x3c3   : > { %6463 = vrcp.f32 %v1415_v16 }
 0x3c9   : > { %v1418_v22 = vpop.xlane.xlu1 %1417 }
 0x3ca   : > { %6465 = vrcp.f32 %v1418_v22 }
 0x3cc   : > { %v6462_v27 = vpop.eup %6461 }
 0x3cd   : > { %v6464_v28 = vpop.eup %6463  ;;  %v1426_v29 = vmul.f32 %v6462_v27, %v7030_v57  ;;  %v1781_v30 = vpop.permute.xlu1 %1780 }
 0x3ce   : > { %v1427_v32 = vmul.f32 %v6464_v28, %v7032_v61  ;;  %v1421_v33 = vpop.xlane.xlu0 %1420  ;;  %v1786_v57 = vcombine.low %v6930_v23, %v1781_v30  ;;  %v1787_v40 = vcombine.high %v6930_v23, %v1781_v30  ;;  %v1535_v61 = vsel %vm1441_vm5, %v1187_v31, 0 }
 0x3cf   : > { %1430 = vst.msk [vmem:[%s6891_s15] sm:$0xff] %vm1189_vm3, %v1426_v29  ;;  %6467 = vrcp.f32 %v1421_v33  ;;  %v1434_v38 = vpack.c.bf16 %v1426_v29, %v1426_v29 }
 0x3d0   : > { %1431 = vst.msk [vmem:[%s6891_s15 + $0x8] sm:$0xff] %vm1189_vm3, %v1427_v32  ;;  %v1435_v39 = vpack.c.bf16 %v1427_v32, %v1427_v32  ;;  %v1794_v23 = vrot.slane %v1786_v57, %v6942_v36  ;;  %v1801_v50 = vrot.slane %v1787_v40, %v6942_v36 }
 0x3d1   : > { %6093 = vmatmul.mubr.msk.bf16.vlgmr.msra.gmra.mrb[12].mxu1 %vm1189_vm3, %v1434_v38 }
 0x3d2   : > { %6099 = vmatmul.mubr.msk.bf16.vlgmr.msra.gmra.mrb[16].mxu0 %vm1189_vm3, %v1435_v39  ;;  %6103 = vmatpush3.bf16.msra.mxu1 %v1535_v61  ;;  %v1784_v42 = vpop.permute.xlu0 %1783 }
 0x3d3   : > { %6109 = vmatpush3.bf16.msra.mxu0 %v1581_v41  ;;  %v1802_v45 = vcombine.low %v1778_v7, %v1784_v42  ;;  %v1803_v46 = vcombine.high %v1778_v7, %v1784_v42  ;;  %6104 = vmatprep.mubr.msk.bf16.mxu1 %vm6689_vm1, %v6688_v3  ;;  %v2067_v7 = vrot.slane %v2053_v55, %v6944_v43 }
 0x3d4   : > { %v6466_v47 = vpop.eup %6465  ;;  %6114 = vmatprep.subr.bf16.mxu1 %v6688_v3  ;;  %6110 = vmatprep.mubr.msk.bf16.mxu0 %vm6689_vm1, %v6688_v3 }
 0x3d5   : > { %v1428_v49 = vmul.f32 %v6466_v47, %v7042_v14  ;;  %v1810_v51 = vrot.slane %v1802_v45, %v6942_v36  ;;  %v1817_v52 = vrot.slane %v1803_v46, %v6942_v36  ;;  %6120 = vmatprep.subr.bf16.mxu0 %v6688_v3  ;;  %v2070_v24 = vcombine.low %v2051_v62, %v2067_v7 }
 0x3d6   : > { %v2071_v25 = vcombine.high %v2051_v62, %v2067_v7 }
 0x3d7   : > { %1432 = vst.msk [vmem:[%s6891_s15 + $0x10] sm:$0xff] %vm1189_vm3, %v1428_v49  ;;  %v1818_v56 = vcombine.low %v1794_v23, %v1810_v51  ;;  %v1819_v58 = vcombine.high %v1794_v23, %v1810_v51  ;;  %v1834_v59 = vcombine.low %v1801_v50, %v1817_v52  ;;  %v1835_v60 = vcombine.high %v1801_v50, %v1817_v52 }
 0x3d8   : > { %v1436_v14 = vpack.c.bf16 %v1428_v49, %v1428_v49  ;;  %v2074_v33 = vpack.c.bf16 %v2070_v24, %v2070_v24  ;;  %v2075_v34 = vpack.c.bf16 %v2071_v25, %v2071_v25 }
 0x3d9   : > { %v6468_v63 = vpop.eup %6467  ;;  %v1826_v0 = vrot.slane %v1818_v56, %v6944_v43  ;;  %v1833_v1 = vrot.slane %v1819_v58, %v6944_v43  ;;  %v1842_v2 = vrot.slane %v1834_v59, %v6944_v43  ;;  %v1849_v4 = vrot.slane %v1835_v60, %v6944_v43 }
 0x3da   : > { %v1429_v5 = vmul.f32 %v6468_v63, %v7050_v26  ;;  %6105 = vmatmul.mubr.msk.bf16.vlgmr.msra.gmra.mrb[16].mxu1 %vm1189_vm3, %v1436_v14  ;;  %v2322_v39 = vsel %vm1189_vm3, %v2074_v33, 0  ;;  %v2368_v40 = vsel %vm1189_vm3, %v2075_v34, 0 }
 0x3db   : > { %v1854_v9 = vcombine.low %v1826_v0, %v1833_v1  ;;  %v5817_v11 = vcombine.high %v1826_v0, %v1833_v1  ;;  %v1870_v12 = vcombine.low %v1842_v2, %v1849_v4  ;;  %v5818_v13 = vcombine.high %v1842_v2, %v1849_v4  ;;  %6115 = vmatpush3.bf16.xpose.msra.mxu1 %v2230_v6 }
 0x3dc   : > { %1433 = vst.msk [vmem:[%s6891_s15 + $0x18] sm:$0xff] %vm1189_vm3, %v1429_v5  ;;  %v1437_v15 = vpack.c.bf16 %v1429_v5, %v1429_v5  ;;  %6116 = vmatprep.mubr.msk.bf16.mxu1 %vm6689_vm1, %v6688_v3  ;;  %6126 = vmatprep.subr.bf16.mxu1 %v6688_v3 }
 0x3dd   : > { %v1861_v26 = vrot.slane %v1854_v9, %v6942_v36  ;;  %v1869_v16 = vrot.slane %v5817_v11, %v6942_v36  ;;  %v1877_v17 = vrot.slane %v1870_v12, %v6942_v36  ;;  %v1885_v18 = vrot.slane %v5818_v13, %v6942_v36 }
 0x3de   : > { %6111 = vmatmul.mubr.msk.bf16.vlgmr.msra.gmra.mrb[20].mxu0 %vm1189_vm3, %v1437_v15 }
 0x3df   : > { %v1886_v21 = vcombine.low %v1861_v26, %v1869_v16  ;;  %v1902_v22 = vcombine.low %v1877_v17, %v1885_v18  ;;  %6121 = vmatpush3.bf16.xpose.msra.mxu0 %v2276_v20  ;;  %6122 = vmatprep.mubr.msk.bf16.mxu0 %vm6689_vm1, %v6688_v3  ;;  %v1887_v27 = vcombine.high %v1861_v26, %v1869_v16 }
 0x3e0   : > { %6132 = vmatprep.subr.bf16.mxu0 %v6688_v3  ;;  %v1903_v28 = vcombine.high %v1877_v17, %v1885_v18 }
 0x3e1   : > { %v1894_v29 = vrot.slane %v1886_v21, %v6944_v43  ;;  %v1910_v30 = vrot.slane %v1902_v22, %v6944_v43  ;;  %v1901_v38 = vrot.slane %v1887_v27, %v6944_v43 }
 0x3e2   : > { %v1917_v57 = vrot.slane %v1903_v28, %v6944_v43 }
 0x3e3   : > { %v1918_v31 = vcombine.low %v1894_v29, %v1910_v30  ;;  %v1919_v32 = vcombine.high %v1894_v29, %v1910_v30 }
 0x3e4   : > { %v1920_v61 = vcombine.low %v1901_v38, %v1917_v57  ;;  %v1921_v41 = vcombine.high %v1901_v38, %v1917_v57 }
 0x3e5   : > { %v1922_v35 = vpack.c.bf16 %v1918_v31, %v1918_v31  ;;  %v1923_v37 = vpack.c.bf16 %v1919_v32, %v1919_v32 }
 0x3e6   : > { %v1924_v42 = vpack.c.bf16 %v1920_v61, %v1920_v61  ;;  %v1925_v44 = vpack.c.bf16 %v1921_v41, %v1921_v41 }
 0x3e7   : > { %6117 = vmatmul.mubr.msk.bf16.vlgmr.msra.gmra.mrb[20].mxu1 %vm1189_vm3, %v1922_v35  ;;  %6123 = vmatmul.mubr.msk.bf16.vlgmr.msra.gmra.mrb[24].mxu0 %vm1189_vm3, %v1923_v37 }
 0x3e8   : > { %6127 = vmatpush3.bf16.xpose.msra.mxu1 %v2322_v39  ;;  %6133 = vmatpush3.bf16.xpose.msra.mxu0 %v2368_v40 }
 0x3e9   : > { %6128 = vmatprep.mubr.msk.bf16.mxu1 %vm6689_vm1, %v6688_v3  ;;  %6134 = vmatprep.mubr.msk.bf16.mxu0 %vm6689_vm1, %v6688_v3 }
 0x3ea   : > { %6138 = vmatprep.subr.bf16.mxu1 %v6688_v3  ;;  %6144 = vmatprep.subr.bf16.mxu0 %v6688_v3 }
 0x3ef   : > { %6129 = vmatmul.mubr.msk.bf16.vlgmr.msra.gmra.mrb[24].mxu1 %vm1189_vm3, %v1924_v42  ;;  %6135 = vmatmul.mubr.msk.bf16.vlgmr.msra.gmra.mrb[28].mxu0 %vm1189_vm3, %v1925_v44 }
 0x3f0   : > { %6140 = vmatprep.mubr.msk.bf16.mxu1 %vm6689_vm1, %v6688_v3  ;;  %6146 = vmatprep.mubr.msk.bf16.mxu0 %vm6689_vm1, %v6688_v3 }
 0x4a4   : > { %v1479_v45 = vpop.f32.mrb[12].mxu1 }
 0x4a5   : > { %v1525_v46 = vpop.f32.mrb[16].mxu0  ;;  %v6094_v47 = vpop.f32.mrb[13].mxu1 }
 0x4a6   : > { %v6100_v23 = vpop.f32.mrb[17].mxu0  ;;  %v1482_v48 = vpop.f32.mrb[14].mxu1 }
 0x4a7   : > { %v1528_v49 = vpop.f32.mrb[18].mxu0  ;;  %v6095_v50 = vpop.f32.mrb[15].mxu1 }
 0x4a8   : > { %v6101_v51 = vpop.f32.mrb[19].mxu0 }
 0x4ad   : > { %v1571_v52 = vpop.f32.mrb[16].mxu1 }
 0x4ae   : > { %v1623_v53 = vcombine.low %v1479_v45, %v1571_v52  ;;  %v1624_v54 = vcombine.high %v1479_v45, %v1571_v52  ;;  %v6106_v55 = vpop.f32.mrb[17].mxu1 }
 0x4af   : > { %v1574_v56 = vpop.f32.mrb[18].mxu1 }
 0x4b0   : > { %v6107_v58 = vpop.f32.mrb[19].mxu1  ;;  %v1631_v0 = vrot.slane %v1623_v53, %v6942_v36  ;;  %v1638_v1 = vrot.slane %v1624_v54, %v6942_v36 }
 0x4b1   : > { %v1617_v59 = vpop.f32.mrb[20].mxu0 }
 0x4b2   : > { %v1639_v60 = vcombine.low %v1525_v46, %v1617_v59  ;;  %v1640_v14 = vcombine.high %v1525_v46, %v1617_v59  ;;  %v6112_v62 = vpop.f32.mrb[21].mxu0 }
 0x4b3   : > { %v1620_v63 = vpop.f32.mrb[22].mxu0 }
 0x4b4   : > { %v1647_v2 = vrot.slane %v1639_v60, %v6942_v36  ;;  %v1654_v4 = vrot.slane %v1640_v14, %v6942_v36  ;;  %v6113_v5 = vpop.f32.mrb[23].mxu0 }
 0x4b6   : > { %v1655_v6 = vcombine.low %v1631_v0, %v1647_v2  ;;  %v1656_v19 = vcombine.high %v1631_v0, %v1647_v2  ;;  %v1671_v7 = vcombine.low %v1638_v1, %v1654_v4  ;;  %v1672_v9 = vcombine.high %v1638_v1, %v1654_v4 }
 0x4b8   : > { %v1663_v11 = vrot.slane %v1655_v6, %v6944_v43  ;;  %v1670_v12 = vrot.slane %v1656_v19, %v6944_v43  ;;  %v1679_v13 = vrot.slane %v1671_v7, %v6944_v43  ;;  %v1686_v15 = vrot.slane %v1672_v9, %v6944_v43 }
 0x4ba   : > { %v1691_v26 = vcombine.low %v1663_v11, %v1670_v12  ;;  %v5815_v16 = vcombine.high %v1663_v11, %v1670_v12  ;;  %v1707_v17 = vcombine.low %v1679_v13, %v1686_v15  ;;  %v5816_v18 = vcombine.high %v1679_v13, %v1686_v15  ;;  %v2266_v20 = vpop.f32.mrb[20].mxu1  ;;  %v2312_v21 = vpop.f32.mrb[24].mxu0 }
 0x4bb   : > { %v2410_v22 = vmul.f32 0.35355338, %v2266_v20  ;;  %v2411_v24 = vmul.f32 0.35355338, %v2312_v21  ;;  %v6118_v25 = vpop.f32.mrb[21].mxu1  ;;  %v6124_v27 = vpop.f32.mrb[25].mxu0 }
 0x4bc   : > { %v1698_v28 = vrot.slane %v1691_v26, %v6942_v36  ;;  %v1706_v29 = vrot.slane %v5815_v16, %v6942_v36  ;;  %v1714_v30 = vrot.slane %v1707_v17, %v6942_v36  ;;  %v1722_v31 = vrot.slane %v5816_v18, %v6942_v36  ;;  %v2269_v32 = vpop.f32.mrb[22].mxu1  ;;  %v2315_v33 = vpop.f32.mrb[26].mxu0 }
 0x4bd   : > { %v6119_v34 = vpop.f32.mrb[23].mxu1  ;;  %v6125_v35 = vpop.f32.mrb[27].mxu0  ;;  %v2418_v37 = vsel %vm1379_vm4, -1e+10, %v2410_v22  ;;  %v2419_v38 = vsel %vm1379_vm4, -1e+10, %v2411_v24 }
 0x4be   : > { %v2422_v57 = vsel %vm1189_vm3, %v2418_v37, -inf  ;;  %v2425_v39 = vsel %vm1189_vm3, %v2419_v38, -inf  ;;  %v1724_v40 = vcombine.high %v1698_v28, %v1706_v29  ;;  %v1740_v61 = vcombine.high %v1714_v30, %v1722_v31 }
 0x4bf   : > { %2423 = vmax.xlane.f32.xlu1 %v2422_v57  ;;  %2426 = vmax.xlane.f32.xlu0 %v2425_v39  ;;  %v1723_v41 = vcombine.low %v1698_v28, %v1706_v29  ;;  %v1739_v42 = vcombine.low %v1714_v30, %v1722_v31 }
 0x4c0   : > { %v7189_v44 = vrot.slane %v1724_v40, %v6944_v43  ;;  %v7192_v45 = vrot.slane %v1740_v61, %v6944_v43 }
 0x4c1   : > { %v7195_v46 = vrot.slane %v1723_v41, %v6944_v43  ;;  %v7198_v47 = vrot.slane %v1739_v42, %v6944_v43 }
 0x4c2   : > { %v2358_v23 = vpop.f32.mrb[24].mxu1  ;;  %v2404_v48 = vpop.f32.mrb[28].mxu0  ;;  %v1757_v49 = vcombine.low %v7189_v44, %v7192_v45  ;;  %v1758_v50 = vcombine.high %v7189_v44, %v7192_v45 }
 0x4c3   : > { %v2412_v51 = vmul.f32 0.35355338, %v2358_v23  ;;  %v2413_v52 = vmul.f32 0.35355338, %v2404_v48  ;;  %v6130_v53 = vpop.f32.mrb[25].mxu1  ;;  %v6136_v54 = vpop.f32.mrb[29].mxu0  ;;  %v1755_v55 = vcombine.low %v7195_v46, %v7198_v47  ;;  %v1756_v56 = vcombine.high %v7195_v46, %v7198_v47 }
 0x4c4   : > { %v2361_v58 = vpop.f32.mrb[26].mxu1  ;;  %v2407_v59 = vpop.f32.mrb[30].mxu0  ;;  %v5837_v46 = vld [vmem:[%s6874_s25 + $0x3] ss:$0 sm:$0xff] }
 0x4c5   : > { %v6131_v60 = vpop.f32.mrb[27].mxu1  ;;  %v6137_v14 = vpop.f32.mrb[31].mxu0  ;;  %v2420_v62 = vsel %vm1379_vm4, -1e+10, %v2412_v51  ;;  %v2421_v63 = vsel %vm1379_vm4, -1e+10, %v2413_v52 }
 0x4c6   : > { %v2428_v0 = vsel %vm1189_vm3, %v2420_v62, -inf  ;;  %v2431_v1 = vsel %vm1189_vm3, %v2421_v63, -inf }
 0x4c7   : > { %2429 = vmax.xlane.f32.xlu0 %v2428_v0  ;;  %2432 = vmax.xlane.f32.xlu1 %v2431_v1 }
 0x4d8   : > { %2080 = vrot.lane.b32.xlu1 %v6999_v8, %s6692_s13 }
 0x54c   : > { %v2424_v2 = vpop.xlane.xlu1 %2423  ;;  %v2427_v4 = vpop.xlane.xlu0 %2426 }
 0x54d   : > { %v2434_v5 = vsub.f32 %v2418_v37, %v2424_v2  ;;  %v2435_v6 = vsub.f32 %v2419_v38, %v2427_v4 }
 0x54f   : > { %v2438_v19 = vmul.f32 1.442695, %v2434_v5  ;;  %v2440_v7 = vmul.f32 1.442695, %v2435_v6 }
 0x551   : > { %6469 = vpow2.f32 %v2438_v19 }
 0x552   : > { %6471 = vpow2.f32 %v2440_v7 }
 0x554   : > { %v2430_v13 = vpop.xlane.xlu0 %2429  ;;  %v2433_v15 = vpop.xlane.xlu1 %2432 }
 0x555   : > { %v2436_v26 = vsub.f32 %v2420_v62, %v2430_v13  ;;  %v2437_v16 = vsub.f32 %v2421_v63, %v2433_v15 }
 0x557   : > { %v2442_v17 = vmul.f32 1.442695, %v2436_v26  ;;  %v2444_v18 = vmul.f32 1.442695, %v2437_v16 }
 0x558   : > { %v2081_v25 = vpop.permute.xlu1 %2080 }
 0x559   : > { %6473 = vpow2.f32 %v2442_v17  ;;  %v2086_v29 = vcombine.low %v6999_v8, %v2081_v25  ;;  %v2087_v30 = vcombine.high %v6999_v8, %v2081_v25 }
 0x55a   : > { %6475 = vpow2.f32 %v2444_v18 }
 0x55b   : > { %v7216_v9 = vpop.eup %6469  ;;  %v2094_v35 = vrot.slane %v2086_v29, %v6942_v36  ;;  %v2101_v37 = vrot.slane %v2087_v30, %v6942_v36 }
 0x55c   : > { %v7218_v10 = vpop.eup %6471  ;;  %v2446_v11 = vsel %vm1189_vm3, %v7216_v9, 0.0 }
 0x55d   : > { %2447 = vadd.xlane.f32.xlu0 %v2446_v11  ;;  %v2449_v12 = vsel %vm1189_vm3, %v7218_v10, 0.0 }
 0x55e   : > { %2450 = vadd.xlane.f32.xlu1 %v2449_v12 }
 0x563   : > { %v7228_v20 = vpop.eup %6473 }
 0x564   : > { %v7230_v21 = vpop.eup %6475  ;;  %v2452_v22 = vsel %vm1189_vm3, %v7228_v20, 0.0 }
 0x565   : > { %v2455_v24 = vsel %vm1189_vm3, %v7230_v21, 0.0 }
 0x56f   : > { %2083 = vrot.lane.b32.xlu1 %v6999_v8, %s6690_s11 }
 0x573   : > { %2077 = vrot.lane.b32.xlu0 %v6999_v8, %s6691_s12 }
 0x592   : > { %2453 = vadd.xlane.f32.xlu0 %v2452_v22 }
 0x593   : > { %2456 = vadd.xlane.f32.xlu1 %v2455_v24 }
 0x5ea   : > { %v2448_v27 = vpop.xlane.xlu0 %2447 }
 0x5eb   : > { %v2451_v28 = vpop.xlane.xlu1 %2450  ;;  %6477 = vrcp.f32 %v2448_v27 }
 0x5ec   : > { %6479 = vrcp.f32 %v2451_v28 }
 0x5ee   : > { %v2078_v31 = vpop.permute.xlu0 %2077 }
 0x5ef   : > { %v2084_v32 = vpop.permute.xlu1 %2083 }
 0x5f0   : > { %v2102_v33 = vcombine.low %v2078_v31, %v2084_v32  ;;  %v2103_v34 = vcombine.high %v2078_v31, %v2084_v32 }
 0x5f2   : > { %v2110_v38 = vrot.slane %v2102_v33, %v6942_v36  ;;  %v2117_v57 = vrot.slane %v2103_v34, %v6942_v36 }
 0x5f4   : > { %v2118_v39 = vcombine.low %v2094_v35, %v2110_v38  ;;  %v2119_v40 = vcombine.high %v2094_v35, %v2110_v38  ;;  %v2134_v61 = vcombine.low %v2101_v37, %v2117_v57  ;;  %v2135_v41 = vcombine.high %v2101_v37, %v2117_v57 }
 0x5f5   : > { %v6478_v5 = vpop.eup %6477 }
 0x5f6   : > { %v2126_v8 = vrot.slane %v2118_v39, %v6944_v43  ;;  %v2133_v42 = vrot.slane %v2119_v40, %v6944_v43  ;;  %v2142_v23 = vrot.slane %v2134_v61, %v6944_v43  ;;  %v2149_v48 = vrot.slane %v2135_v41, %v6944_v43  ;;  %v6480_v7 = vpop.eup %6479 }
 0x5f7   : > { %v2462_v26 = vmul.f32 %v6478_v5, %v7216_v9  ;;  %v2463_v16 = vmul.f32 %v6480_v7, %v7218_v10 }
 0x5f8   : > { %v2154_v51 = vcombine.low %v2126_v8, %v2133_v42  ;;  %v5821_v52 = vcombine.high %v2126_v8, %v2133_v42  ;;  %v2170_v53 = vcombine.low %v2142_v23, %v2149_v48  ;;  %v5822_v54 = vcombine.high %v2142_v23, %v2149_v48 }
 0x5f9   : > { %v2466_v28 = vpack.c.bf16 %v2462_v26, %v2462_v26  ;;  %v2467_v29 = vpack.c.bf16 %v2463_v16, %v2463_v16 }
 0x5fa   : > { %v2161_v58 = vrot.slane %v2154_v51, %v6942_v36  ;;  %v2169_v59 = vrot.slane %v5821_v52, %v6942_v36  ;;  %v2177_v60 = vrot.slane %v2170_v53, %v6942_v36  ;;  %v2185_v14 = vrot.slane %v5822_v54, %v6942_v36 }
 0x5fc   : > { %v2186_v62 = vcombine.low %v2161_v58, %v2169_v59  ;;  %v2187_v63 = vcombine.high %v2161_v58, %v2169_v59  ;;  %v2202_v0 = vcombine.low %v2177_v60, %v2185_v14  ;;  %v2203_v1 = vcombine.high %v2177_v60, %v2185_v14 }
 0x5fe   : > { %v2194_v2 = vrot.slane %v2186_v62, %v6944_v43  ;;  %v2201_v4 = vrot.slane %v2187_v63, %v6944_v43  ;;  %v2210_v6 = vrot.slane %v2202_v0, %v6944_v43  ;;  %v2217_v19 = vrot.slane %v2203_v1, %v6944_v43 }
 0x600   : > { %v2218_v11 = vcombine.low %v2194_v2, %v2210_v6  ;;  %v2219_v12 = vcombine.high %v2194_v2, %v2210_v6  ;;  %v2220_v13 = vcombine.low %v2201_v4, %v2217_v19  ;;  %v2221_v15 = vcombine.high %v2201_v4, %v2217_v19 }
 0x602   : > { %v2222_v17 = vpack.c.bf16 %v2218_v11, %v2218_v11  ;;  %v2223_v18 = vpack.c.bf16 %v2219_v12, %v2219_v12  ;;  %v2224_v25 = vpack.c.bf16 %v2220_v13, %v2220_v13  ;;  %v2225_v27 = vpack.c.bf16 %v2221_v15, %v2221_v15 }
 0x604   : > { %v2474_v22 = vsel %vm1441_vm5, %v2222_v17, 0  ;;  %v2520_v24 = vsel %vm1441_vm5, %v2223_v18, 0  ;;  %v2566_v9 = vsel %vm1441_vm5, %v2224_v25, 0  ;;  %v2612_v10 = vsel %vm1441_vm5, %v2225_v27, 0  ;;  %v6437_v18 = vld [vmem:[%s6869_s21 + $0x30] sm:$0xff]  }
 0x605   : > { %6139 = vmatpush3.bf16.msra.mxu1 %v2474_v22  ;;  %6145 = vmatpush3.bf16.msra.mxu0 %v2520_v24 }
 0x606   : > { %6150 = vmatprep.subr.bf16.mxu1 %v6688_v3  ;;  %6156 = vmatprep.subr.bf16.mxu0 %v6688_v3 }
 0x608   : > { %6141 = vmatmul.mubr.msk.bf16.vlgmr.msra.gmra.mrb[28].mxu1 %vm1189_vm3, %v2466_v28  ;;  %6147 = vmatmul.mubr.msk.bf16.vlgmr.msra.gmra.mrb[32].mxu0 %vm1189_vm3, %v2467_v29 }
 0x609   : > { %6151 = vmatpush3.bf16.msra.mxu1 %v2566_v9  ;;  %6157 = vmatpush3.bf16.msra.mxu0 %v2612_v10 }
 0x60a   : > { %6152 = vmatprep.mubr.msk.bf16.mxu1 %vm6689_vm1, %v6688_v3  ;;  %6158 = vmatprep.mubr.msk.bf16.mxu0 %vm6689_vm1, %v6688_v3 }
 0x60b   : > { %6162 = vmatprep.subr.bf16.mxu1 %v6688_v3  ;;  %6170 = vmatprep.subr.bf16.mxu0 %v6688_v3 }
 0x61f   : > { %v2454_v30 = vpop.xlane.xlu0 %2453 }
 0x620   : > { %6481 = vrcp.f32 %v2454_v30  ;;  %v2457_v31 = vpop.xlane.xlu1 %2456  ;;  %v6438_v30 = vld [vmem:[%s6869_s21 + $0x38] sm:$0xff]  }
 0x621   : > { %6483 = vrcp.f32 %v2457_v31 }
 0x62a   : > { %v6482_v32 = vpop.eup %6481 }
 0x62b   : > { %v6484_v33 = vpop.eup %6483  ;;  %v2464_v34 = vmul.f32 %v6482_v32, %v7228_v20 }
 0x62c   : > { %v2465_v35 = vmul.f32 %v6484_v33, %v7230_v21 }
 0x62d   : > { %v2468_v37 = vpack.c.bf16 %v2464_v34, %v2464_v34 }
 0x62e   : > { %v2469_v38 = vpack.c.bf16 %v2465_v35, %v2465_v35 }
 0x62f   : > { %6153 = vmatmul.mubr.msk.bf16.vlgmr.msra.gmra.mrb[32].mxu1 %vm1189_vm3, %v2468_v37 }
 0x630   : > { %6159 = vmatmul.mubr.msk.bf16.vlgmr.msra.gmra.mrb[36].mxu0 %vm1189_vm3, %v2469_v38  ;;  %6166 = vmatprep.mubr.msk.bf16.mxu1 %vm6689_vm1, %v6688_v3 }
 0x631   : > { %6174 = vmatprep.mubr.msk.bf16.mxu0 %vm6689_vm1, %v6688_v3  ;;  %6163 = vmatpush3.bf16.msra.mxu1 %v6437_v18 }
 0x632   : > { %6164 = vmatprep.subr.bf16.mxu1 %v6688_v3 }
 0x635   : > { %6165 = vmatpush3.bf16.msra.mxu1 %v6438_v30 }
 0x636   : > { %6178 = vmatprep.subr.bf16.mxu1 %v6688_v3 }
 0x6db   : > { %v2510_v57 = vpop.f32.mrb[28].mxu1  ;;  %v2556_v39 = vpop.f32.mrb[32].mxu0 }
 0x6dc   : > { %v6142_v40 = vpop.f32.mrb[29].mxu1  ;;  %v6148_v61 = vpop.f32.mrb[33].mxu0 }
 0x6dd   : > { %v2513_v41 = vpop.f32.mrb[30].mxu1  ;;  %v2559_v20 = vpop.f32.mrb[34].mxu0 }
 0x6de   : > { %v6143_v8 = vpop.f32.mrb[31].mxu1  ;;  %v6149_v21 = vpop.f32.mrb[35].mxu0 }
 0x702   : > { %v2602_v42 = vpop.f32.mrb[32].mxu1 }
 0x703   : > { %v2654_v23 = vcombine.low %v2510_v57, %v2602_v42  ;;  %v2655_v48 = vcombine.high %v2510_v57, %v2602_v42  ;;  %v2648_v51 = vpop.f32.mrb[36].mxu0  ;;  %v6154_v52 = vpop.f32.mrb[33].mxu1 }
 0x704   : > { %v2670_v53 = vcombine.low %v2556_v39, %v2648_v51  ;;  %v2671_v54 = vcombine.high %v2556_v39, %v2648_v51  ;;  %v6160_v58 = vpop.f32.mrb[37].mxu0  ;;  %v2605_v59 = vpop.f32.mrb[34].mxu1 }
 0x705   : > { %v2662_v60 = vrot.slane %v2654_v23, %v6942_v36  ;;  %v2669_v14 = vrot.slane %v2655_v48, %v6942_v36  ;;  %v2651_v62 = vpop.f32.mrb[38].mxu0  ;;  %v6155_v63 = vpop.f32.mrb[35].mxu1 }
 0x706   : > { %v2678_v0 = vrot.slane %v2670_v53, %v6942_v36  ;;  %v2685_v1 = vrot.slane %v2671_v54, %v6942_v36  ;;  %v6161_v2 = vpop.f32.mrb[39].mxu0  ;;  %v6529_v62 = vld [vmem:[#allocation2] sm:$0xff] }
 0x708   : > { %v2686_v4 = vcombine.low %v2662_v60, %v2678_v0  ;;  %v2687_v5 = vcombine.high %v2662_v60, %v2678_v0  ;;  %v2702_v6 = vcombine.low %v2669_v14, %v2685_v1  ;;  %v2703_v19 = vcombine.high %v2669_v14, %v2685_v1  ;;  %v6530_v1 = vld [vmem:[#allocation2 + $0x8] sm:$0xff] }
 0x70a   : > { %v2694_v7 = vrot.slane %v2686_v4, %v6944_v43  ;;  %v2701_v11 = vrot.slane %v2687_v5, %v6944_v43  ;;  %v2710_v12 = vrot.slane %v2702_v6, %v6944_v43  ;;  %v2717_v13 = vrot.slane %v2703_v19, %v6944_v43  ;;  %v6439_v5 = vld [vmem:[%s6869_s21 + $0x50] sm:$0xff]   ;;  %v6440_v6 = vld [vmem:[%s6869_s21 + $0x58] sm:$0xff]   ;;  %v544_v19 = vld [vmem:[%s7921_s1] sm:$0xff] }
 0x70c   : > { %v2722_v15 = vcombine.low %v2694_v7, %v2701_v11  ;;  %v5831_v26 = vcombine.high %v2694_v7, %v2701_v11  ;;  %v2738_v16 = vcombine.low %v2710_v12, %v2717_v13  ;;  %v5832_v17 = vcombine.high %v2710_v12, %v2717_v13  ;;  %v545_v7 = vld [vmem:[%s7921_s1 + $0x8] sm:$0xff] }
 0x70d   : > { %v7334_v11 = vpack.c.bf16 %v545_v7, %v544_v19  ;;  %v6443_v7 = vld [vmem:[%s6869_s21 + $0x60] sm:$0xff]  }
 0x70e   : > { %v2729_v22 = vrot.slane %v2722_v15, %v6942_v36  ;;  %v2737_v24 = vrot.slane %v5831_v26, %v6942_v36  ;;  %v2745_v25 = vrot.slane %v2738_v16, %v6942_v36  ;;  %v2753_v27 = vrot.slane %v5832_v17, %v6942_v36 }
 0x710   : > { %v2755_v28 = vcombine.high %v2729_v22, %v2737_v24  ;;  %v2771_v29 = vcombine.high %v2745_v25, %v2753_v27  ;;  %v2754_v9 = vcombine.low %v2729_v22, %v2737_v24  ;;  %v2770_v10 = vcombine.low %v2745_v25, %v2753_v27  ;;  %v6441_v27 = vld [vmem:[%s6869_s21 + $0x40] sm:$0xff]  }
 0x711   : > { %6171 = vmatpush3.bf16.msra.mxu0 %v6441_v27 }
 0x712   : > { %v2769_v31 = vrot.slane %v2755_v28, %v6944_v43  ;;  %v2785_v32 = vrot.slane %v2771_v29, %v6944_v43  ;;  %v2762_v33 = vrot.slane %v2754_v9, %v6944_v43  ;;  %v2778_v34 = vrot.slane %v2770_v10, %v6944_v43  ;;  %v6442_v28 = vld [vmem:[%s6869_s21 + $0x48] sm:$0xff]   ;;  %6172 = vmatprep.subr.bf16.mxu0 %v6688_v3  ;;  %v5855_v29 = vld [vmem:[%s6874_s25 + $0x5] ss:$0 sm:$0xff] }
 0x714   : > { %v2788_v35 = vcombine.low %v2769_v31, %v2785_v32  ;;  %v2787_v37 = vcombine.high %v2762_v33, %v2778_v34  ;;  %v2786_v38 = vcombine.low %v2762_v33, %v2778_v34  ;;  %v2789_v57 = vcombine.high %v2769_v31, %v2785_v32 }
 0x715   : > { %6173 = vmatpush3.bf16.msra.mxu0 %v6442_v28 }
 0x716   : > { %v6406_v39 = vpack.i.bf16 %v2788_v35, %v1757_v49  ;;  %v6401_v40 = vpack.i.bf16 %v2787_v37, %v1756_v56  ;;  %v6411_v61 = vpack.i.bf16 %v2789_v57, %v1758_v50  ;;  %6186 = vmatprep.subr.bf16.mxu0 %v6688_v3 }
 0x718   : > { %6407 = vrot.lane.b32.xlu1 %v6406_v39, %s6695_s30  ;;  %6402 = vrot.lane.b32.xlu0 %v6401_v40, %s6696_s27 }
 0x71c   : > { %6412 = vrot.lane.b32.xlu0 %v6411_v61, %s6697_s10  ;;  %v5841_v61 = vld [vmem:[%s6874_s25 + $0x8] ss:$0 sm:$0xff] }
 0x78a   : > { %v6408_v41 = vpop.permute.xlu1 %6407  ;;  %v6403_v20 = vpop.permute.xlu0 %6402 }
 0x78b   : > { %v6405_v49 = vunpack.i.h.bf16 %v6403_v20  ;;  %v6404_v8 = vunpack.i.l.bf16 %v6403_v20  ;;  %v6410_v21 = vunpack.i.h.bf16 %v6408_v41  ;;  %v6409_v56 = vunpack.i.l.bf16 %v6408_v41 }
 0x78d   : > { %v1771_v44 = vsel %vm1189_vm3, %v1755_v55, %v6404_v8  ;;  %v2802_v45 = vsel %vm1189_vm3, %v2786_v38, %v6405_v49 }
 0x78e   : > { %v6413_v50 = vpop.permute.xlu0 %6412  ;;  %v1773_v48 = vsel %vm1772_vm6, %v1771_v44, %v6409_v56  ;;  %v2803_v51 = vsel %vm1772_vm6, %v2802_v45, %v6410_v21  ;;  %v5842_v21 = vld [vmem:[%s6874_s25 + $0x9] ss:$0 sm:$0xff] }
 0x78f   : > { %v6415_v42 = vunpack.i.h.bf16 %v6413_v50  ;;  %v6414_v23 = vunpack.i.l.bf16 %v6413_v50 }
 0x791   : > { %v1775_v52 = vsel %vm1774_vm7, %v1773_v48, %v6414_v23  ;;  %v2804_v53 = vsel %vm1774_vm7, %v2803_v51, %v6415_v42 }
 0x792   : > { %v2805_v54 = vpack.c.bf16 %v2804_v53, %v1775_v52 }
 0x794   : > { %6167 = vmatmul.mubr.msk.bf16.vlgmr.msra.gmra.mrb[36].mxu1 %vm568_vm2, %v2805_v54 }
 0x795   : > { %6182 = vmatprep.mubr.msk.bf16.mxu1 %vm6689_vm1, %v6688_v3  ;;  %6179 = vmatpush3.bf16.msra.mxu1 %v6439_v5 }
 0x796   : > { %6180 = vmatprep.subr.bf16.mxu1 %v6688_v3 }
 0x799   : > { %6181 = vmatpush3.bf16.msra.mxu1 %v6440_v6 }
 0x79a   : > { %6194 = vmatprep.subr.bf16.mxu1 %v6688_v3 }
 0x79c   : > { %6183 = vmatmul.mubr.msk.bf16.vlgmr.msra.gmra.mrb[40].mxu1 %vm568_vm2, %v7334_v11 }
 0x79d   : > { %6196 = vmatprep.mubr.msk.bf16.mxu1 %vm6689_vm1, %v6688_v3 }
 0x867   : > { %v2865_v47 = vpop.f32.mrb[36].mxu1 }
 0x868   : > { %v2866_v55 = vadd.f32 %v5837_v46, %v2865_v47  ;;  %v6168_v58 = vpop.f32.mrb[37].mxu1 }
 0x869   : > { %v2868_v59 = vpop.f32.mrb[38].mxu1 }
 0x86a   : > { %v2869_v60 = vadd.f32 %v5837_v46, %v2868_v59  ;;  %v6169_v14 = vpop.f32.mrb[39].mxu1  ;;  %v2872_v63 = vadd.f32 %v6529_v62, %v2866_v55 }
 0x86c   : > { %v2876_v0 = vsel %vm568_vm2, %v2872_v63, 0.0  ;;  %v2873_v2 = vadd.f32 %v6530_v1, %v2869_v60 }
 0x86d   : > { %2877 = vadd.xlane.f32.xlu1 %v2876_v0 }
 0x86e   : > { %v2879_v4 = vsel %vm568_vm2, %v2873_v2, 0.0 }
 0x86f   : > { %2880 = vadd.xlane.f32.xlu0 %v2879_v4  ;;  %v3042_v9 = vpop.f32.mrb[40].mxu1 }
 0x870   : > { %v3043_v10 = vadd.f32 %v5855_v29, %v3042_v9  ;;  %v6184_v30 = vpop.f32.mrb[41].mxu1 }
 0x871   : > { %v3045_v31 = vpop.f32.mrb[42].mxu1 }
 0x872   : > { %v7350_v32 = vadd.f32 %v5855_v29, %v3045_v31  ;;  %v6185_v33 = vpop.f32.mrb[43].mxu1 }
 0x8fa   : > { %v2878_v12 = vpop.xlane.xlu1 %2877 }
 0x8fb   : > { %v2883_v13 = vmul.f32 0.03125, %v2878_v12 }
 0x8fc   : > { %v2881_v15 = vpop.xlane.xlu0 %2880 }
 0x8fd   : > { %v2885_v26 = vsub.f32 %v2872_v63, %v2883_v13  ;;  %v2884_v16 = vmul.f32 0.03125, %v2881_v15 }
 0x8ff   : > { %v2886_v17 = vsub.f32 %v2873_v2, %v2884_v16  ;;  %v2887_v18 = vmul.f32 %v2885_v26, %v2885_v26  ;;  %v6444_v16 = vld [vmem:[%s6869_s21 + $0x68] sm:$0xff]  }
 0x901   : > { %v2889_v22 = vsel %vm568_vm2, %v2887_v18, 0.0  ;;  %v2888_v24 = vmul.f32 %v2886_v17, %v2886_v17 }
 0x902   : > { %2890 = vadd.xlane.f32.xlu0 %v2889_v22 }
 0x903   : > { %v2892_v25 = vsel %vm568_vm2, %v2888_v24, 0.0 }
 0x904   : > { %2893 = vadd.xlane.f32.xlu1 %v2892_v25 }
 0x915   : > { %3266 = vrot.lane.b32.xlu1 %v3043_v10, %s6692_s13 }
 0x918   : > { %3263 = vrot.lane.b32.xlu0 %v3043_v10, %s6691_s12 }
 0x919   : > { %3269 = vrot.lane.b32.xlu1 %v3043_v10, %s6690_s11 }
 0x98f   : > { %v2891_v34 = vpop.xlane.xlu0 %2890 }
 0x990   : > { %v2895_v35 = vmul.f32 0.03125, %v2891_v34 }
 0x991   : > { %v2894_v37 = vpop.xlane.xlu1 %2893 }
 0x992   : > { %v2897_v38 = vadd.f32 1e-05, %v2895_v35  ;;  %v2896_v57 = vmul.f32 0.03125, %v2894_v37 }
 0x993   : > { %v3264_v48 = vpop.permute.xlu0 %3263 }
 0x994   : > { %6485 = vrsqrt.f32 %v2897_v38  ;;  %v2898_v39 = vadd.f32 1e-05, %v2896_v57 }
 0x995   : > { %v3267_v42 = vpop.permute.xlu1 %3266 }
 0x996   : > { %6487 = vrsqrt.f32 %v2898_v39  ;;  %v3272_v51 = vcombine.low %v3043_v10, %v3267_v42  ;;  %v3273_v52 = vcombine.high %v3043_v10, %v3267_v42 }
 0x998   : > { %v3280_v46 = vrot.slane %v3272_v51, %v6942_v36  ;;  %v3287_v47 = vrot.slane %v3273_v52, %v6942_v36 }
 0x999   : > { %v3270_v23 = vpop.permute.xlu1 %3269 }
 0x99a   : > { %v3288_v53 = vcombine.low %v3264_v48, %v3270_v23  ;;  %v3289_v54 = vcombine.high %v3264_v48, %v3270_v23 }
 0x99c   : > { %v3296_v55 = vrot.slane %v3288_v53, %v6942_v36  ;;  %v3303_v58 = vrot.slane %v3289_v54, %v6942_v36 }
 0x99e   : > { %v6486_v40 = vpop.eup %6485  ;;  %v3304_v59 = vcombine.low %v3280_v46, %v3296_v55  ;;  %v3305_v60 = vcombine.high %v3280_v46, %v3296_v55  ;;  %v3320_v14 = vcombine.low %v3287_v47, %v3303_v58  ;;  %v3321_v62 = vcombine.high %v3287_v47, %v3303_v58 }
 0x99f   : > { %v2901_v41 = vmul.f32 %v6486_v40, %v2885_v26 }
 0x9a0   : > { %v6488_v20 = vpop.eup %6487  ;;  %v3312_v63 = vrot.slane %v3304_v59, %v6944_v43  ;;  %v3319_v0 = vrot.slane %v3305_v60, %v6944_v43  ;;  %v3328_v1 = vrot.slane %v3320_v14, %v6944_v43  ;;  %v3335_v2 = vrot.slane %v3321_v62, %v6944_v43 }
 0x9a1   : > { %v2907_v49 = vmul.f32 %v5841_v61, %v2901_v41  ;;  %v2902_v8 = vmul.f32 %v6488_v20, %v2886_v17  ;;  %v7403_v20 = vld [vmem:[%s6874_s25 + $0x6] ss:$0 sm:$0xff] }
 0x9a2   : > { %v3340_v4 = vcombine.low %v3312_v63, %v3319_v0  ;;  %v5869_v5 = vcombine.high %v3312_v63, %v3319_v0  ;;  %v3356_v6 = vcombine.low %v3328_v1, %v3335_v2  ;;  %v5870_v19 = vcombine.high %v3328_v1, %v3335_v2 }
 0x9a3   : > { %v2908_v56 = vmul.f32 %v5841_v61, %v2902_v8  ;;  %v7355_v44 = vadd.f32 %v5842_v21, %v2907_v49 }
 0x9a4   : > { %v3347_v12 = vrot.slane %v3340_v4, %v6942_v36  ;;  %v3355_v13 = vrot.slane %v5869_v5, %v6942_v36  ;;  %v3363_v15 = vrot.slane %v3356_v6, %v6942_v36  ;;  %v3371_v26 = vrot.slane %v5870_v19, %v6942_v36 }
 0x9a5   : > { %v7357_v45 = vadd.f32 %v5842_v21, %v2908_v56 }
 0x9a6   : > { %v3372_v17 = vcombine.low %v3347_v12, %v3355_v13  ;;  %v3388_v18 = vcombine.low %v3363_v15, %v3371_v26  ;;  %v3373_v22 = vcombine.high %v3347_v12, %v3355_v13  ;;  %v3389_v24 = vcombine.high %v3363_v15, %v3371_v26 }
 0x9a7   : > { %v2915_v50 = vpack.c.bf16 %v7357_v45, %v7355_v44 }
 0x9a8   : > { %v3380_v25 = vrot.slane %v3372_v17, %v6944_v43  ;;  %v3396_v27 = vrot.slane %v3388_v18, %v6944_v43  ;;  %v3387_v28 = vrot.slane %v3373_v22, %v6944_v43  ;;  %v3403_v29 = vrot.slane %v3389_v24, %v6944_v43 }
 0x9a9   : > { %6175 = vmatmul.mubr.msk.bf16.vlgmr.msra.gmra.mrb[40].mxu0 %vm568_vm2, %v2915_v50 }
 0x9aa   : > { %6190 = vmatprep.mubr.msk.bf16.mxu0 %vm6689_vm1, %v6688_v3  ;;  %6187 = vmatpush3.bf16.msra.mxu0 %v6443_v7  ;;  %v3404_v9 = vcombine.low %v3380_v25, %v3396_v27  ;;  %v3405_v10 = vcombine.high %v3380_v25, %v3396_v27  ;;  %v7388_v30 = vcombine.low %v3387_v28, %v3403_v29 }
 0x9ab   : > { %6188 = vmatprep.subr.bf16.mxu0 %v6688_v3  ;;  %v7390_v31 = vcombine.high %v3387_v28, %v3403_v29 }
 0x9ac   : > { %v3408_v33 = vpack.c.bf16 %v3404_v9, %v3404_v9  ;;  %v3409_v34 = vpack.c.bf16 %v3405_v10, %v3405_v10  ;;  %v3410_v28 = vpack.c.bf16 %v7388_v30, %v7388_v30 }
 0x9ad   : > { %v3411_v29 = vpack.c.bf16 %v7390_v31, %v7390_v31 }
 0x9ae   : > { %6189 = vmatpush3.bf16.msra.mxu0 %v6444_v16  ;;  %v3566_v35 = vsel %vm1189_vm3, %v3408_v33, 0  ;;  %v3612_v37 = vsel %vm1189_vm3, %v3409_v34, 0 }
 0x9af   : > { %6200 = vmatprep.subr.bf16.mxu0 %v6688_v3  ;;  %6195 = vmatpush3.bf16.xpose.msra.mxu1 %v3566_v35  ;;  %v3658_v35 = vsel %vm1189_vm3, %v3410_v28, 0 }
 0x9b0   : > { %6206 = vmatprep.subr.bf16.mxu1 %v6688_v3 }
 0x9b1   : > { %6191 = vmatmul.mubr.msk.bf16.vlgmr.msra.gmra.mrb[44].mxu0 %vm568_vm2, %v7334_v11  ;;  %v5847_v11 = vld [vmem:[%s6874_s25 + $0x4] ss:$0 sm:$0xff] }
 0x9b2   : > { %6202 = vmatprep.mubr.msk.bf16.mxu0 %vm6689_vm1, %v6688_v3 }
 0x9b7   : > { %6201 = vmatpush3.bf16.xpose.msra.mxu0 %v3612_v37  ;;  %v3704_v37 = vsel %vm1189_vm3, %v3411_v29, 0 }
 0x9b8   : > { %6212 = vmatprep.subr.bf16.mxu0 %v6688_v3 }
 0xa7c   : > { %v2976_v38 = vpop.f32.mrb[40].mxu0 }
 0xa7d   : > { %v2977_v57 = vadd.f32 %v5847_v11, %v2976_v38  ;;  %v6176_v39 = vpop.f32.mrb[41].mxu0 }
 0xa7e   : > { %v2979_v40 = vpop.f32.mrb[42].mxu0 }
 0xa7f   : > { %v7397_v61 = vadd.f32 %v5847_v11, %v2979_v40  ;;  %3116 = vrot.lane.b32.xlu1 %v2977_v57, %s6692_s13  ;;  %3113 = vrot.lane.b32.xlu0 %v2977_v57, %s6691_s12  ;;  %v6177_v41 = vpop.f32.mrb[43].mxu0 }
 0xa83   : > { %3119 = vrot.lane.b32.xlu0 %v2977_v57, %s6690_s11 }
 0xa84   : > { %v7405_v49 = vpop.f32.mrb[44].mxu0 }
 0xa85   : > { %v6192_v8 = vpop.f32.mrb[45].mxu0 }
 0xa86   : > { %v3108_v21 = vpop.f32.mrb[46].mxu0 }
 0xa87   : > { %v7408_v56 = vadd.f32 %v7403_v20, %v3108_v21  ;;  %v6193_v50 = vpop.f32.mrb[47].mxu0 }
 0xaf1   : > { %v3117_v42 = vpop.permute.xlu1 %3116  ;;  %v3114_v23 = vpop.permute.xlu0 %3113 }
 0xaf2   : > { %v3122_v48 = vcombine.low %v2977_v57, %v3117_v42  ;;  %v3123_v51 = vcombine.high %v2977_v57, %v3117_v42  ;;  %v3750_v57 = vld [vmem:[%s7923_s3] sm:$0xff] }
 0xaf3   : > { %vm3751_vm8 = vcmp.ne.s32.totalorder %v3750_v57, 0 }
 0xaf4   : > { %v3130_v46 = vrot.slane %v3122_v48, %v6942_v36  ;;  %v3137_v47 = vrot.slane %v3123_v51, %v6942_v36 }
 0xaf5   : > { %v3120_v52 = vpop.permute.xlu0 %3119 }
 0xaf6   : > { %v3138_v53 = vcombine.low %v3114_v23, %v3120_v52  ;;  %v3139_v54 = vcombine.high %v3114_v23, %v3120_v52 }
 0xaf8   : > { %v3146_v55 = vrot.slane %v3138_v53, %v6942_v36  ;;  %v3153_v58 = vrot.slane %v3139_v54, %v6942_v36 }
 0xafa   : > { %v3154_v59 = vcombine.low %v3130_v46, %v3146_v55  ;;  %v3155_v60 = vcombine.high %v3130_v46, %v3146_v55  ;;  %v3170_v14 = vcombine.low %v3137_v47, %v3153_v58  ;;  %v3171_v62 = vcombine.high %v3137_v47, %v3153_v58 }
 0xafc   : > { %v3162_v63 = vrot.slane %v3154_v59, %v6944_v43  ;;  %v3169_v0 = vrot.slane %v3155_v60, %v6944_v43  ;;  %v3178_v1 = vrot.slane %v3170_v14, %v6944_v43  ;;  %v3185_v2 = vrot.slane %v3171_v62, %v6944_v43 }
 0xafe   : > { %v3190_v4 = vcombine.low %v3162_v63, %v3169_v0  ;;  %v5867_v5 = vcombine.high %v3162_v63, %v3169_v0  ;;  %v3206_v6 = vcombine.low %v3178_v1, %v3185_v2  ;;  %v5868_v19 = vcombine.high %v3178_v1, %v3185_v2 }
 0xb00   : > { %v3197_v7 = vrot.slane %v3190_v4, %v6942_v36  ;;  %v3205_v12 = vrot.slane %v5867_v5, %v6942_v36  ;;  %v3213_v13 = vrot.slane %v3206_v6, %v6942_v36  ;;  %v3221_v15 = vrot.slane %v5868_v19, %v6942_v36 }
 0xb01   : > { %v3106_v19 = vadd.f32 %v7403_v20, %v7405_v49 }
 0xb02   : > { %v3222_v26 = vcombine.low %v3197_v7, %v3205_v12  ;;  %v3238_v16 = vcombine.low %v3213_v13, %v3221_v15  ;;  %v3223_v17 = vcombine.high %v3197_v7, %v3205_v12  ;;  %v3239_v18 = vcombine.high %v3213_v13, %v3221_v15 }
 0xb04   : > { %v3230_v22 = vrot.slane %v3222_v26, %v6944_v43  ;;  %v3246_v24 = vrot.slane %v3238_v16, %v6944_v43  ;;  %v3237_v33 = vrot.slane %v3223_v17, %v6944_v43  ;;  %v3253_v34 = vrot.slane %v3239_v18, %v6944_v43 }
 0xb06   : > { %v3254_v25 = vcombine.low %v3230_v22, %v3246_v24  ;;  %v3255_v27 = vcombine.high %v3230_v22, %v3246_v24  ;;  %v3256_v30 = vcombine.low %v3237_v33, %v3253_v34  ;;  %v3257_v31 = vcombine.high %v3237_v33, %v3253_v34 }
 0xb08   : > { %v3258_v9 = vpack.c.bf16 %v3254_v25, %v3254_v25  ;;  %v3259_v10 = vpack.c.bf16 %v3255_v27, %v3255_v27  ;;  %v3260_v11 = vpack.c.bf16 %v3256_v30, %v3256_v30  ;;  %v3261_v38 = vpack.c.bf16 %v3257_v31, %v3257_v31 }
 0xb0a   : > { %6197 = vmatmul.mubr.msk.bf16.vlgmr.msra.gmra.mrb[44].mxu1 %vm1189_vm3, %v3258_v9  ;;  %6203 = vmatmul.mubr.msk.bf16.vlgmr.msra.gmra.mrb[48].mxu0 %vm1189_vm3, %v3259_v10 }
 0xb0b   : > { %6207 = vmatpush3.bf16.xpose.msra.mxu1 %v3658_v35  ;;  %6213 = vmatpush3.bf16.xpose.msra.mxu0 %v3704_v37 }
 0xb0c   : > { %6208 = vmatprep.mubr.msk.bf16.mxu1 %vm6689_vm1, %v6688_v3  ;;  %6214 = vmatprep.mubr.msk.bf16.mxu0 %vm6689_vm1, %v6688_v3 }
 0xb0d   : > { %6218 = vmatprep.subr.bf16.mxu1 %v6688_v3  ;;  %6224 = vmatprep.subr.bf16.mxu0 %v6688_v3 }
 0xb12   : > { %6209 = vmatmul.mubr.msk.bf16.vlgmr.msra.gmra.mrb[48].mxu1 %vm1189_vm3, %v3260_v11  ;;  %6215 = vmatmul.mubr.msk.bf16.vlgmr.msra.gmra.mrb[52].mxu0 %vm1189_vm3, %v3261_v38 }
 0xb13   : > { %6220 = vmatprep.mubr.msk.bf16.mxu1 %vm6689_vm1, %v6688_v3  ;;  %6226 = vmatprep.mubr.msk.bf16.mxu0 %vm6689_vm1, %v6688_v3 }
 0xbdd   : > { %v3602_v39 = vpop.f32.mrb[44].mxu1  ;;  %v3648_v40 = vpop.f32.mrb[48].mxu0 }
 0xbde   : > { %v3746_v41 = vmul.f32 0.35355338, %v3602_v39  ;;  %v3747_v8 = vmul.f32 0.35355338, %v3648_v40  ;;  %v6198_v21 = vpop.f32.mrb[45].mxu1  ;;  %v6204_v50 = vpop.f32.mrb[49].mxu0 }
 0xbdf   : > { %v3605_v42 = vpop.f32.mrb[46].mxu1  ;;  %v3651_v23 = vpop.f32.mrb[50].mxu0 }
 0xbe0   : > { %v6199_v48 = vpop.f32.mrb[47].mxu1  ;;  %v6205_v51 = vpop.f32.mrb[51].mxu0  ;;  %v3754_v52 = vsel %vm3751_vm8, -1e+10, %v3746_v41  ;;  %v3755_v53 = vsel %vm3751_vm8, -1e+10, %v3747_v8 }
 0xbe1   : > { %v3758_v54 = vsel %vm1189_vm3, %v3754_v52, -inf  ;;  %v3761_v46 = vsel %vm1189_vm3, %v3755_v53, -inf }
 0xbe2   : > { %3759 = vmax.xlane.f32.xlu1 %v3758_v54  ;;  %3762 = vmax.xlane.f32.xlu0 %v3761_v46 }
 0xbe5   : > { %v3694_v47 = vpop.f32.mrb[48].mxu1  ;;  %v3740_v55 = vpop.f32.mrb[52].mxu0 }
 0xbe6   : > { %v3748_v58 = vmul.f32 0.35355338, %v3694_v47  ;;  %v3749_v59 = vmul.f32 0.35355338, %v3740_v55  ;;  %v6210_v60 = vpop.f32.mrb[49].mxu1  ;;  %v6216_v14 = vpop.f32.mrb[53].mxu0 }
 0xbe7   : > { %v3697_v62 = vpop.f32.mrb[50].mxu1  ;;  %v3743_v63 = vpop.f32.mrb[54].mxu0 }
 0xbe8   : > { %v6211_v0 = vpop.f32.mrb[51].mxu1  ;;  %v6217_v1 = vpop.f32.mrb[55].mxu0  ;;  %v3756_v2 = vsel %vm3751_vm8, -1e+10, %v3748_v58  ;;  %v3757_v4 = vsel %vm3751_vm8, -1e+10, %v3749_v59 }
 0xbe9   : > { %v3764_v5 = vsel %vm1189_vm3, %v3756_v2, -inf  ;;  %v3767_v6 = vsel %vm1189_vm3, %v3757_v4, -inf }
 0xbea   : > { %3765 = vmax.xlane.f32.xlu0 %v3764_v5  ;;  %3768 = vmax.xlane.f32.xlu1 %v3767_v6 }
 0xbfb   : > { %3416 = vrot.lane.b32.xlu1 %v3106_v19, %s6692_s13 }
 0xbff   : > { %3419 = vrot.lane.b32.xlu1 %v3106_v19, %s6690_s11 }
 0xc00   : > { %3413 = vrot.lane.b32.xlu0 %v3106_v19, %s6691_s12 }
 0xc03   : > { %4299 = vrot.lane.b32.xlu1 %v7350_v32, %s6692_s13 }
 0xc04   : > { %4296 = vrot.lane.b32.xlu0 %v7350_v32, %s6691_s12 }
 0xc07   : > { %4146 = vrot.lane.b32.xlu1 %v7397_v61, %s6691_s12 }
 0xc08   : > { %4302 = vrot.lane.b32.xlu0 %v7350_v32, %s6690_s11 }
 0xc6f   : > { %v3760_v7 = vpop.xlane.xlu1 %3759  ;;  %v3763_v20 = vpop.xlane.xlu0 %3762 }
 0xc70   : > { %v3770_v49 = vsub.f32 %v3754_v52, %v3760_v7  ;;  %v3771_v12 = vsub.f32 %v3755_v53, %v3763_v20 }
 0xc72   : > { %v3774_v13 = vmul.f32 1.442695, %v3770_v49  ;;  %v3776_v15 = vmul.f32 1.442695, %v3771_v12 }
 0xc74   : > { %6489 = vpow2.f32 %v3774_v13 }
 0xc75   : > { %6491 = vpow2.f32 %v3776_v15 }
 0xc77   : > { %v3766_v26 = vpop.xlane.xlu0 %3765  ;;  %v3769_v16 = vpop.xlane.xlu1 %3768 }
 0xc78   : > { %v3772_v17 = vsub.f32 %v3756_v2, %v3766_v26  ;;  %v3773_v18 = vsub.f32 %v3757_v4, %v3769_v16 }
 0xc7a   : > { %v3778_v22 = vmul.f32 1.442695, %v3772_v17  ;;  %v3780_v24 = vmul.f32 1.442695, %v3773_v18 }
 0xc7b   : > { %v3417_v25 = vpop.permute.xlu1 %3416  ;;  %v3414_v10 = vpop.permute.xlu0 %3413 }
 0xc7c   : > { %6493 = vpow2.f32 %v3778_v22  ;;  %v3422_v28 = vcombine.low %v3106_v19, %v3417_v25  ;;  %v3423_v29 = vcombine.high %v3106_v19, %v3417_v25 }
 0xc7d   : > { %6495 = vpow2.f32 %v3780_v24 }
 0xc7e   : > { %v7470_v27 = vpop.eup %6489  ;;  %v3430_v31 = vrot.slane %v3422_v28, %v6942_v36  ;;  %v3437_v11 = vrot.slane %v3423_v29, %v6942_v36 }
 0xc7f   : > { %v7472_v9 = vpop.eup %6491  ;;  %v3420_v33 = vpop.permute.xlu1 %3419  ;;  %v3782_v34 = vsel %vm1189_vm3, %v7470_v27, 0.0 }
 0xc80   : > { %v3438_v35 = vcombine.low %v3414_v10, %v3420_v33  ;;  %v3439_v37 = vcombine.high %v3414_v10, %v3420_v33  ;;  %3783 = vadd.xlane.f32.xlu0 %v3782_v34  ;;  %v3785_v30 = vsel %vm1189_vm3, %v7472_v9, 0.0  ;;  %v4297_v16 = vpop.permute.xlu0 %4296 }
 0xc81   : > { %3786 = vadd.xlane.f32.xlu1 %v3785_v30 }
 0xc82   : > { %v3446_v38 = vrot.slane %v3438_v35, %v6942_v36  ;;  %v3453_v57 = vrot.slane %v3439_v37, %v6942_v36 }
 0xc83   : > { %v4300_v18 = vpop.permute.xlu1 %4299 }
 0xc84   : > { %v3454_v39 = vcombine.low %v3430_v31, %v3446_v38  ;;  %v3455_v40 = vcombine.high %v3430_v31, %v3446_v38  ;;  %v3470_v41 = vcombine.low %v3437_v11, %v3453_v57  ;;  %v3471_v8 = vcombine.high %v3437_v11, %v3453_v57  ;;  %v4303_v17 = vpop.permute.xlu0 %4302 }
 0xc85   : > { %v4321_v22 = vcombine.low %v4297_v16, %v4303_v17  ;;  %v4322_v24 = vcombine.high %v4297_v16, %v4303_v17  ;;  %v4305_v25 = vcombine.low %v7350_v32, %v4300_v18  ;;  %v4306_v28 = vcombine.high %v7350_v32, %v4300_v18 }
 0xc86   : > { %v3462_v21 = vrot.slane %v3454_v39, %v6944_v43  ;;  %v3469_v50 = vrot.slane %v3455_v40, %v6944_v43  ;;  %v3478_v42 = vrot.slane %v3470_v41, %v6944_v43  ;;  %v3485_v23 = vrot.slane %v3471_v8, %v6944_v43  ;;  %v7486_v48 = vpop.eup %6493 }
 0xc87   : > { %v7488_v46 = vpop.eup %6495  ;;  %v3788_v60 = vsel %vm1189_vm3, %v7486_v48, 0.0  ;;  %v4329_v29 = vrot.slane %v4321_v22, %v6942_v36  ;;  %v4336_v10 = vrot.slane %v4322_v24, %v6942_v36  ;;  %v4313_v33 = vrot.slane %v4305_v25, %v6942_v36  ;;  %v4147_v11 = vpop.permute.xlu1 %4146 }
 0xc88   : > { %v3490_v51 = vcombine.low %v3462_v21, %v3469_v50  ;;  %v5871_v52 = vcombine.high %v3462_v21, %v3469_v50  ;;  %v3506_v53 = vcombine.low %v3478_v42, %v3485_v23  ;;  %v5872_v54 = vcombine.high %v3478_v42, %v3485_v23  ;;  %3789 = vadd.xlane.f32.xlu0 %v3788_v60 }
 0xc89   : > { %v3791_v14 = vsel %vm1189_vm3, %v7488_v46, 0.0  ;;  %v4320_v34 = vrot.slane %v4306_v28, %v6942_v36  ;;  %v4337_v35 = vcombine.low %v4313_v33, %v4329_v29  ;;  %v4338_v37 = vcombine.high %v4313_v33, %v4329_v29 }
 0xc8a   : > { %v3497_v47 = vrot.slane %v3490_v51, %v6942_v36  ;;  %v3505_v55 = vrot.slane %v5871_v52, %v6942_v36  ;;  %v3513_v58 = vrot.slane %v3506_v53, %v6942_v36  ;;  %v3521_v59 = vrot.slane %v5872_v54, %v6942_v36  ;;  %3792 = vadd.xlane.f32.xlu1 %v3791_v14 }
 0xc8b   : > { %v4353_v30 = vcombine.low %v4320_v34, %v4336_v10  ;;  %v4354_v31 = vcombine.high %v4320_v34, %v4336_v10  ;;  %v4345_v38 = vrot.slane %v4337_v35, %v6944_v43  ;;  %v4352_v57 = vrot.slane %v4338_v37, %v6944_v43 }
 0xc8c   : > { %v3522_v62 = vcombine.low %v3497_v47, %v3505_v55  ;;  %v3538_v63 = vcombine.low %v3513_v58, %v3521_v59  ;;  %v3523_v2 = vcombine.high %v3497_v47, %v3505_v55  ;;  %v3539_v4 = vcombine.high %v3513_v58, %v3521_v59 }
 0xc8d   : > { %v4361_v39 = vrot.slane %v4353_v30, %v6944_v43  ;;  %v4368_v32 = vrot.slane %v4354_v31, %v6944_v43  ;;  %v4373_v8 = vcombine.low %v4345_v38, %v4352_v57  ;;  %v5885_v21 = vcombine.high %v4345_v38, %v4352_v57 }
 0xc8e   : > { %v3530_v0 = vrot.slane %v3522_v62, %v6944_v43  ;;  %v3546_v1 = vrot.slane %v3538_v63, %v6944_v43  ;;  %v3537_v19 = vrot.slane %v3523_v2, %v6944_v43  ;;  %v3553_v7 = vrot.slane %v3539_v4, %v6944_v43 }
 0xc8f   : > { %v4389_v50 = vcombine.low %v4361_v39, %v4368_v32  ;;  %v5886_v42 = vcombine.high %v4361_v39, %v4368_v32  ;;  %v7523_v23 = vrot.slane %v4373_v8, %v6942_v36  ;;  %v7526_v51 = vrot.slane %v5885_v21, %v6942_v36 }
 0xc90   : > { %v3554_v5 = vcombine.low %v3530_v0, %v3546_v1  ;;  %v3555_v6 = vcombine.high %v3530_v0, %v3546_v1  ;;  %v3556_v12 = vcombine.low %v3537_v19, %v3553_v7  ;;  %v7502_v13 = vcombine.high %v3537_v19, %v3553_v7 }
 0xc91   : > { %v7529_v52 = vrot.slane %v4389_v50, %v6942_v36  ;;  %v7532_v53 = vrot.slane %v5886_v42, %v6942_v36  ;;  %v4405_v59 = vcombine.low %v7523_v23, %v7526_v51  ;;  %v4406_v18 = vcombine.high %v7523_v23, %v7526_v51 }
 0xc92   : > { %v3558_v20 = vpack.c.bf16 %v3554_v5, %v3554_v5  ;;  %v3559_v49 = vpack.c.bf16 %v3555_v6, %v3555_v6  ;;  %v3560_v58 = vpack.c.bf16 %v3556_v12, %v3556_v12  ;;  %v3561_v63 = vpack.c.bf16 %v7502_v13, %v7502_v13 }
 0xc93   : > { %v4421_v60 = vcombine.low %v7529_v52, %v7532_v53  ;;  %v4413_v4 = vrot.slane %v4405_v59, %v6944_v43  ;;  %v4422_v33 = vcombine.high %v7529_v52, %v7532_v53 }
 0xc94   : > { %v3814_v15 = vsel %vm1441_vm5, %v3558_v20, 0  ;;  %v3860_v26 = vsel %vm1441_vm5, %v3559_v49, 0  ;;  %v3906_v2 = vsel %vm1441_vm5, %v3560_v58, 0  ;;  %v3952_v6 = vsel %vm1441_vm5, %v3561_v63, 0 }
 0xc95   : > { %6219 = vmatpush3.bf16.msra.mxu1 %v3814_v15  ;;  %6225 = vmatpush3.bf16.msra.mxu0 %v3860_v26  ;;  %v4436_v50 = vrot.slane %v4422_v33, %v6944_v43 }
 0xc96   : > { %6230 = vmatprep.subr.bf16.mxu1 %v6688_v3  ;;  %6236 = vmatprep.subr.bf16.mxu0 %v6688_v3 }
 0xc9b   : > { %4152 = vrot.lane.b32.xlu1 %v7397_v61, %s6690_s11 }
 0xc9e   : > { %4149 = vrot.lane.b32.xlu0 %v7397_v61, %s6692_s13 }
 0xd0d   : > { %v3784_v40 = vpop.xlane.xlu0 %3783 }
 0xd0e   : > { %6497 = vrcp.f32 %v3784_v40  ;;  %v3787_v41 = vpop.xlane.xlu1 %3786 }
 0xd0f   : > { %6499 = vrcp.f32 %v3787_v41  ;;  %v4420_v41 = vrot.slane %v4406_v18, %v6944_v43 }
 0xd11   : > { %v4440_v58 = vcombine.high %v4420_v41, %v4436_v50 }
 0xd15   : > { %v3790_v62 = vpop.xlane.xlu0 %3789 }
 0xd16   : > { %6501 = vrcp.f32 %v3790_v62 }
 0xd17   : > { %v3793_v0 = vpop.xlane.xlu1 %3792 }
 0xd18   : > { %v6498_v54 = vpop.eup %6497  ;;  %6503 = vrcp.f32 %v3793_v0 }
 0xd19   : > { %v6500_v47 = vpop.eup %6499  ;;  %v3798_v55 = vmul.f32 %v6498_v54, %v7470_v27  ;;  %v4150_v5 = vpop.permute.xlu0 %4149 }
 0xd1a   : > { %v3799_v14 = vmul.f32 %v6500_v47, %v7472_v9  ;;  %v4429_v9 = vrot.slane %v4421_v60, %v6944_v43  ;;  %v4155_v19 = vcombine.low %v7397_v61, %v4150_v5  ;;  %v4156_v7 = vcombine.high %v7397_v61, %v4150_v5 }
 0xd1b   : > { %3802 = vst.msk [vmem:[%s6893_s16] sm:$0xff] %vm1189_vm3, %v3798_v55  ;;  %v3806_v1 = vpack.c.bf16 %v3798_v55, %v3798_v55  ;;  %v4153_v20 = vpop.permute.xlu1 %4152  ;;  %v4439_v55 = vcombine.low %v4420_v41, %v4436_v50 }
 0xd1c   : > { %3803 = vst.msk [vmem:[%s6893_s16 + $0x8] sm:$0xff] %vm1189_vm3, %v3799_v14  ;;  %v3807_v27 = vpack.c.bf16 %v3799_v14, %v3799_v14  ;;  %v4171_v49 = vcombine.low %v4147_v11, %v4153_v20  ;;  %v4172_v12 = vcombine.high %v4147_v11, %v4153_v20  ;;  %v4163_v13 = vrot.slane %v4155_v19, %v6942_v36 }
 0xd1d   : > { %6221 = vmatmul.mubr.msk.bf16.vlgmr.msra.gmra.mrb[52].mxu1 %vm1189_vm3, %v3806_v1  ;;  %v4170_v15 = vrot.slane %v4156_v7, %v6942_v36  ;;  %v4437_v26 = vcombine.low %v4413_v4, %v4429_v9  ;;  %v4438_v17 = vcombine.high %v4413_v4, %v4429_v9  ;;  %v4443_v1 = vpack.c.bf16 %v4439_v55, %v4439_v55 }
 0xd1e   : > { %6227 = vmatmul.mubr.msk.bf16.vlgmr.msra.gmra.mrb[56].mxu0 %vm1189_vm3, %v3807_v27  ;;  %6231 = vmatpush3.bf16.msra.mxu1 %v3906_v2  ;;  %v4179_v61 = vrot.slane %v4171_v49, %v6942_v36  ;;  %v4186_v16 = vrot.slane %v4172_v12, %v6942_v36  ;;  %v4444_v27 = vpack.c.bf16 %v4440_v58, %v4440_v58 }
 0xd1f   : > { %6237 = vmatpush3.bf16.msra.mxu0 %v3952_v6  ;;  %6232 = vmatprep.mubr.msk.bf16.mxu1 %vm6689_vm1, %v6688_v3  ;;  %v4441_v10 = vpack.c.bf16 %v4437_v26, %v4437_v26  ;;  %v4442_v57 = vpack.c.bf16 %v4438_v17, %v4438_v17  ;;  %v4691_v6 = vsel %vm1189_vm3, %v4443_v1, 0 }
 0xd20   : > { %6238 = vmatprep.mubr.msk.bf16.mxu0 %vm6689_vm1, %v6688_v3  ;;  %6242 = vmatprep.subr.bf16.mxu1 %v6688_v3  ;;  %v4187_v22 = vcombine.low %v4163_v13, %v4179_v61  ;;  %v4188_v24 = vcombine.high %v4163_v13, %v4179_v61  ;;  %v4203_v25 = vcombine.low %v4170_v15, %v4186_v16  ;;  %v6502_v29 = vpop.eup %6501  ;;  %v4737_v19 = vsel %vm1189_vm3, %v4444_v27, 0 }
 0xd21   : > { %6248 = vmatprep.subr.bf16.mxu0 %v6688_v3  ;;  %v4204_v28 = vcombine.high %v4170_v15, %v4186_v16  ;;  %v3800_v35 = vmul.f32 %v6502_v29, %v7486_v48  ;;  %v4599_v23 = vsel %vm1189_vm3, %v4441_v10, 0  ;;  %v4645_v53 = vsel %vm1189_vm3, %v4442_v57, 0 }
 0xd22   : > { %v6504_v34 = vpop.eup %6503  ;;  %v4195_v37 = vrot.slane %v4187_v22, %v6944_v43  ;;  %v4202_v30 = vrot.slane %v4188_v24, %v6944_v43  ;;  %v4211_v31 = vrot.slane %v4203_v25, %v6944_v43 }
 0xd23   : > { %v3801_v11 = vmul.f32 %v6504_v34, %v7488_v46  ;;  %v4218_v38 = vrot.slane %v4204_v28, %v6944_v43  ;;  %3804 = vst.msk [vmem:[%s6893_s16 + $0x10] sm:$0xff] %vm1189_vm3, %v3800_v35  ;;  %v3808_v40 = vpack.c.bf16 %v3800_v35, %v3800_v35 }
 0xd24   : > { %v4223_v39 = vcombine.low %v4195_v37, %v4202_v30  ;;  %v5883_v32 = vcombine.high %v4195_v37, %v4202_v30 }
 0xd25   : > { %3805 = vst.msk [vmem:[%s6893_s16 + $0x18] sm:$0xff] %vm1189_vm3, %v3801_v11  ;;  %v4239_v48 = vcombine.low %v4211_v31, %v4218_v38  ;;  %v5884_v8 = vcombine.high %v4211_v31, %v4218_v38  ;;  %v3809_v21 = vpack.c.bf16 %v3801_v11, %v3801_v11  ;;  %6233 = vmatmul.mubr.msk.bf16.vlgmr.msra.gmra.mrb[56].mxu1 %vm1189_vm3, %v3808_v40 }
 0xd26   : > { %v4230_v42 = vrot.slane %v4223_v39, %v6942_v36  ;;  %v4238_v46 = vrot.slane %v5883_v32, %v6942_v36  ;;  %6244 = vmatprep.mubr.msk.bf16.mxu1 %vm6689_vm1, %v6688_v3 }
 0xd27   : > { %v4246_v51 = vrot.slane %v4239_v48, %v6942_v36  ;;  %v4254_v52 = vrot.slane %v5884_v8, %v6942_v36  ;;  %6239 = vmatmul.mubr.msk.bf16.vlgmr.msra.gmra.mrb[60].mxu0 %vm1189_vm3, %v3809_v21  ;;  %6243 = vmatpush3.bf16.xpose.msra.mxu1 %v4599_v23  ;;  %v5893_v23 = vld [vmem:[%s7923_s3 + $0x8] sm:$0xff] }
 0xd28   : > { %v4255_v54 = vcombine.low %v4230_v42, %v4238_v46  ;;  %6249 = vmatpush3.bf16.xpose.msra.mxu0 %v4645_v53  ;;  %6250 = vmatprep.mubr.msk.bf16.mxu0 %vm6689_vm1, %v6688_v3  ;;  %v4256_v60 = vcombine.high %v4230_v42, %v4238_v46  ;;  %vm4785_vm9 = vcmp.ne.s32.totalorder %v5893_v23, 0 }
 0xd29   : > { %v4271_v47 = vcombine.low %v4246_v51, %v4254_v52  ;;  %6254 = vmatprep.subr.bf16.mxu1 %v6688_v3  ;;  %6260 = vmatprep.subr.bf16.mxu0 %v6688_v3  ;;  %v4272_v14 = vcombine.high %v4246_v51, %v4254_v52 }
 0xd2a   : > { %v4263_v59 = vrot.slane %v4255_v54, %v6944_v43  ;;  %v4270_v9 = vrot.slane %v4256_v60, %v6944_v43 }
 0xd2b   : > { %v4279_v62 = vrot.slane %v4271_v47, %v6944_v43  ;;  %v4286_v5 = vrot.slane %v4272_v14, %v6944_v43 }
 0xd2d   : > { %v4287_v63 = vcombine.low %v4263_v59, %v4279_v62  ;;  %v4288_v0 = vcombine.high %v4263_v59, %v4279_v62  ;;  %v4289_v7 = vcombine.low %v4270_v9, %v4286_v5  ;;  %v4290_v20 = vcombine.high %v4270_v9, %v4286_v5 }
 0xd2f   : > { %v4291_v2 = vpack.c.bf16 %v4287_v63, %v4287_v63  ;;  %v4292_v4 = vpack.c.bf16 %v4288_v0, %v4288_v0  ;;  %v4293_v49 = vpack.c.bf16 %v4289_v7, %v4289_v7  ;;  %v4294_v12 = vpack.c.bf16 %v4290_v20, %v4290_v20 }
 0xd31   : > { %6245 = vmatmul.mubr.msk.bf16.vlgmr.msra.gmra.mrb[60].mxu1 %vm1189_vm3, %v4291_v2  ;;  %6251 = vmatmul.mubr.msk.bf16.vlgmr.msra.gmra.mrb[64].mxu0 %vm1189_vm3, %v4292_v4 }
 0xd32   : > { %6255 = vmatpush3.bf16.xpose.msra.mxu1 %v4691_v6  ;;  %6261 = vmatpush3.bf16.xpose.msra.mxu0 %v4737_v19 }
 0xd33   : > { %6256 = vmatprep.mubr.msk.bf16.mxu1 %vm6689_vm1, %v6688_v3  ;;  %6262 = vmatprep.mubr.msk.bf16.mxu0 %vm6689_vm1, %v6688_v3 }
 0xd34   : > { %6266 = vmatprep.subr.bf16.mxu1 %v6688_v3  ;;  %6272 = vmatprep.subr.bf16.mxu0 %v6688_v3 }
 0xd39   : > { %6257 = vmatmul.mubr.msk.bf16.vlgmr.msra.gmra.mrb[64].mxu1 %vm1189_vm3, %v4293_v49  ;;  %6263 = vmatmul.mubr.msk.bf16.vlgmr.msra.gmra.mrb[68].mxu0 %vm1189_vm3, %v4294_v12 }
 0xd3a   : > { %6268 = vmatprep.mubr.msk.bf16.mxu1 %vm6689_vm1, %v6688_v3  ;;  %6274 = vmatprep.mubr.msk.bf16.mxu0 %vm6689_vm1, %v6688_v3 }
 0xdf0   : > { %v3850_v13 = vpop.f32.mrb[52].mxu1 }
 0xdf1   : > { %v3896_v15 = vpop.f32.mrb[56].mxu0  ;;  %v6222_v26 = vpop.f32.mrb[53].mxu1 }
 0xdf2   : > { %v6228_v61 = vpop.f32.mrb[57].mxu0  ;;  %v3853_v16 = vpop.f32.mrb[54].mxu1 }
 0xdf3   : > { %v3899_v17 = vpop.f32.mrb[58].mxu0  ;;  %v6223_v18 = vpop.f32.mrb[55].mxu1 }
 0xdf4   : > { %v6229_v22 = vpop.f32.mrb[59].mxu0 }
 0xdf8   : > { %v3942_v24 = vpop.f32.mrb[56].mxu1 }
 0xdf9   : > { %v3994_v25 = vcombine.low %v3850_v13, %v3942_v24  ;;  %v3995_v28 = vcombine.high %v3850_v13, %v3942_v24  ;;  %v6234_v10 = vpop.f32.mrb[57].mxu1 }
 0xdfa   : > { %v3988_v29 = vpop.f32.mrb[60].mxu0  ;;  %v3945_v37 = vpop.f32.mrb[58].mxu1 }
 0xdfb   : > { %v4010_v33 = vcombine.low %v3896_v15, %v3988_v29  ;;  %v4011_v34 = vcombine.high %v3896_v15, %v3988_v29  ;;  %v6240_v35 = vpop.f32.mrb[61].mxu0  ;;  %v4002_v30 = vrot.slane %v3994_v25, %v6942_v36  ;;  %v4009_v31 = vrot.slane %v3995_v28, %v6942_v36  ;;  %v6235_v38 = vpop.f32.mrb[59].mxu1 }
 0xdfc   : > { %v3991_v11 = vpop.f32.mrb[62].mxu0 }
 0xdfd   : > { %v4018_v57 = vrot.slane %v4010_v33, %v6942_v36  ;;  %v4025_v39 = vrot.slane %v4011_v34, %v6942_v36  ;;  %v6241_v32 = vpop.f32.mrb[63].mxu0 }
 0xdff   : > { %v4026_v40 = vcombine.low %v4002_v30, %v4018_v57  ;;  %v4027_v41 = vcombine.high %v4002_v30, %v4018_v57  ;;  %v4042_v48 = vcombine.low %v4009_v31, %v4025_v39  ;;  %v4043_v8 = vcombine.high %v4009_v31, %v4025_v39 }
 0xe01   : > { %v4034_v21 = vrot.slane %v4026_v40, %v6944_v43  ;;  %v4041_v50 = vrot.slane %v4027_v41, %v6944_v43  ;;  %v4050_v42 = vrot.slane %v4042_v48, %v6944_v43  ;;  %v4057_v46 = vrot.slane %v4043_v8, %v6944_v43 }
 0xe03   : > { %v4062_v51 = vcombine.low %v4034_v21, %v4041_v50  ;;  %v5881_v52 = vcombine.high %v4034_v21, %v4041_v50  ;;  %v4078_v53 = vcombine.low %v4050_v42, %v4057_v46  ;;  %v5882_v54 = vcombine.high %v4050_v42, %v4057_v46 }
 0xe04   : > { %v4635_v47 = vpop.f32.mrb[60].mxu1  ;;  %v4681_v55 = vpop.f32.mrb[64].mxu0 }
 0xe05   : > { %v4069_v58 = vrot.slane %v4062_v51, %v6942_v36  ;;  %v4077_v59 = vrot.slane %v5881_v52, %v6942_v36  ;;  %v4085_v60 = vrot.slane %v4078_v53, %v6942_v36  ;;  %v4093_v14 = vrot.slane %v5882_v54, %v6942_v36  ;;  %v6246_v62 = vpop.f32.mrb[61].mxu1  ;;  %v6252_v63 = vpop.f32.mrb[65].mxu0 }
 0xe06   : > { %v4779_v0 = vmul.f32 0.35355338, %v4635_v47  ;;  %v4780_v1 = vmul.f32 0.35355338, %v4681_v55  ;;  %v4638_v27 = vpop.f32.mrb[62].mxu1  ;;  %v4684_v2 = vpop.f32.mrb[66].mxu0 }
 0xe07   : > { %v6247_v4 = vpop.f32.mrb[63].mxu1  ;;  %v6253_v9 = vpop.f32.mrb[67].mxu0  ;;  %v4095_v5 = vcombine.high %v4069_v58, %v4077_v59  ;;  %v4111_v6 = vcombine.high %v4085_v60, %v4093_v14  ;;  %v4094_v19 = vcombine.low %v4069_v58, %v4077_v59  ;;  %v4110_v7 = vcombine.low %v4085_v60, %v4093_v14 }
 0xe08   : > { %v4788_v20 = vsel %vm4785_vm9, -1e+10, %v4779_v0  ;;  %v4789_v49 = vsel %vm4785_vm9, -1e+10, %v4780_v1 }
 0xe09   : > { %v4792_v12 = vsel %vm1189_vm3, %v4788_v20, -inf  ;;  %v4795_v13 = vsel %vm1189_vm3, %v4789_v49, -inf  ;;  %v7634_v15 = vrot.slane %v4095_v5, %v6944_v43  ;;  %v7637_v26 = vrot.slane %v4111_v6, %v6944_v43 }
 0xe0a   : > { %4793 = vmax.xlane.f32.xlu0 %v4792_v12  ;;  %4796 = vmax.xlane.f32.xlu1 %v4795_v13  ;;  %v7640_v61 = vrot.slane %v4094_v19, %v6944_v43  ;;  %v7643_v16 = vrot.slane %v4110_v7, %v6944_v43 }
 0xe0b   : > { %v4128_v17 = vcombine.low %v7634_v15, %v7637_v26  ;;  %v4129_v18 = vcombine.high %v7634_v15, %v7637_v26 }
 0xe0c   : > { %v4727_v22 = vpop.f32.mrb[64].mxu1  ;;  %v4773_v24 = vpop.f32.mrb[68].mxu0  ;;  %v4126_v25 = vcombine.low %v7640_v61, %v7643_v16  ;;  %v4127_v28 = vcombine.high %v7640_v61, %v7643_v16  ;;  %v5904_v61 = vld [vmem:[%s6874_s25 + $0x7] ss:$0 sm:$0xff] }
 0xe0d   : > { %v4781_v29 = vmul.f32 0.35355338, %v4727_v22  ;;  %v4782_v10 = vmul.f32 0.35355338, %v4773_v24  ;;  %v6258_v33 = vpop.f32.mrb[65].mxu1  ;;  %v6264_v34 = vpop.f32.mrb[69].mxu0 }
 0xe0e   : > { %v4730_v35 = vpop.f32.mrb[66].mxu1  ;;  %v4776_v37 = vpop.f32.mrb[70].mxu0 }
 0xe0f   : > { %v6259_v30 = vpop.f32.mrb[67].mxu1  ;;  %v6265_v31 = vpop.f32.mrb[71].mxu0  ;;  %v4790_v11 = vsel %vm4785_vm9, -1e+10, %v4781_v29  ;;  %v4791_v57 = vsel %vm4785_vm9, -1e+10, %v4782_v10 }
 0xe10   : > { %v4798_v38 = vsel %vm1189_vm3, %v4790_v11, -inf  ;;  %v4801_v39 = vsel %vm1189_vm3, %v4791_v57, -inf }
 0xe11   : > { %4799 = vmax.xlane.f32.xlu0 %v4798_v38 }
 0xe15   : > { %4802 = vmax.xlane.f32.xlu0 %v4801_v39 }
 0xe1b   : > { %4446 = vrot.lane.b32.xlu1 %v7408_v56, %s6691_s12 }
 0xe97   : > { %v4794_v32 = vpop.xlane.xlu0 %4793  ;;  %v4797_v40 = vpop.xlane.xlu1 %4796 }
 0xe98   : > { %v4804_v41 = vsub.f32 %v4788_v20, %v4794_v32  ;;  %v4805_v48 = vsub.f32 %v4789_v49, %v4797_v40 }
 0xe9a   : > { %v4808_v8 = vmul.f32 1.442695, %v4804_v41  ;;  %v4810_v21 = vmul.f32 1.442695, %v4805_v48 }
 0xe9b   : > { %v4447_v62 = vpop.permute.xlu1 %4446 }
 0xe9c   : > { %6505 = vpow2.f32 %v4808_v8 }
 0xe9d   : > { %6507 = vpow2.f32 %v4810_v21 }
 0xe9e   : > { %v4800_v51 = vpop.xlane.xlu0 %4799 }
 0xe9f   : > { %v4806_v53 = vsub.f32 %v4790_v11, %v4800_v51 }
 0xea1   : > { %v4812_v47 = vmul.f32 1.442695, %v4806_v53 }
 0xea2   : > { %v4803_v52 = vpop.xlane.xlu0 %4802 }
 0xea3   : > { %v4807_v54 = vsub.f32 %v4791_v57, %v4803_v52  ;;  %6509 = vpow2.f32 %v4812_v47 }
 0xea5   : > { %v4814_v55 = vmul.f32 1.442695, %v4807_v54 }
 0xea6   : > { %v7659_v50 = vpop.eup %6505 }
 0xea7   : > { %v7661_v42 = vpop.eup %6507  ;;  %v4816_v46 = vsel %vm1189_vm3, %v7659_v50, 0.0  ;;  %6511 = vpow2.f32 %v4814_v55 }
 0xea8   : > { %4817 = vadd.xlane.f32.xlu1 %v4816_v46  ;;  %v4819_v23 = vsel %vm1189_vm3, %v7661_v42, 0.0 }
 0xea9   : > { %4820 = vadd.xlane.f32.xlu0 %v4819_v23 }
 0xead   : > { %v7671_v58 = vpop.eup %6509 }
 0xeae   : > { %v4822_v60 = vsel %vm1189_vm3, %v7671_v58, 0.0 }
 0xeb1   : > { %v7673_v59 = vpop.eup %6511 }
 0xeb2   : > { %v4825_v14 = vsel %vm1189_vm3, %v7673_v59, 0.0 }
 0xeb9   : > { %4452 = vrot.lane.b32.xlu1 %v7408_v56, %s6690_s11 }
 0xebf   : > { %4449 = vrot.lane.b32.xlu0 %v7408_v56, %s6692_s13 }
 0xedd   : > { %4823 = vadd.xlane.f32.xlu1 %v4822_v60 }
 0xede   : > { %4826 = vadd.xlane.f32.xlu0 %v4825_v14 }
 0xf35   : > { %v4818_v63 = vpop.xlane.xlu1 %4817 }
 0xf36   : > { %v4821_v0 = vpop.xlane.xlu0 %4820  ;;  %6513 = vrcp.f32 %v4818_v63 }
 0xf37   : > { %6515 = vrcp.f32 %v4821_v0 }
 0xf39   : > { %v4453_v1 = vpop.permute.xlu1 %4452 }
 0xf3a   : > { %v4471_v27 = vcombine.low %v4447_v62, %v4453_v1  ;;  %v4472_v2 = vcombine.high %v4447_v62, %v4453_v1  ;;  %v4450_v4 = vpop.permute.xlu0 %4449 }
 0xf3b   : > { %v4455_v9 = vcombine.low %v7408_v56, %v4450_v4  ;;  %v4456_v5 = vcombine.high %v7408_v56, %v4450_v4 }
 0xf3c   : > { %v4479_v6 = vrot.slane %v4471_v27, %v6942_v36  ;;  %v4486_v19 = vrot.slane %v4472_v2, %v6942_v36 }
 0xf3d   : > { %v4463_v7 = vrot.slane %v4455_v9, %v6942_v36  ;;  %v4470_v20 = vrot.slane %v4456_v5, %v6942_v36 }
 0xf3f   : > { %v4487_v49 = vcombine.low %v4463_v7, %v4479_v6  ;;  %v4488_v12 = vcombine.high %v4463_v7, %v4479_v6  ;;  %v4503_v13 = vcombine.low %v4470_v20, %v4486_v19  ;;  %v4504_v22 = vcombine.high %v4470_v20, %v4486_v19 }
 0xf40   : > { %v6514_v8 = vpop.eup %6513 }
 0xf41   : > { %v4495_v24 = vrot.slane %v4487_v49, %v6944_v43  ;;  %v4502_v29 = vrot.slane %v4488_v12, %v6944_v43  ;;  %v4511_v56 = vrot.slane %v4503_v13, %v6944_v43  ;;  %v4518_v10 = vrot.slane %v4504_v22, %v6944_v43  ;;  %v6516_v23 = vpop.eup %6515 }
 0xf42   : > { %v4832_v47 = vmul.f32 %v6514_v8, %v7659_v50  ;;  %v4833_v55 = vmul.f32 %v6516_v23, %v7661_v42 }
 0xf43   : > { %v4523_v33 = vcombine.low %v4495_v24, %v4502_v29  ;;  %v5887_v34 = vcombine.high %v4495_v24, %v4502_v29  ;;  %v4539_v35 = vcombine.low %v4511_v56, %v4518_v10  ;;  %v5888_v37 = vcombine.high %v4511_v56, %v4518_v10 }
 0xf44   : > { %v4836_v27 = vpack.c.bf16 %v4832_v47, %v4832_v47  ;;  %v4837_v2 = vpack.c.bf16 %v4833_v55, %v4833_v55 }
 0xf45   : > { %v4530_v30 = vrot.slane %v4523_v33, %v6942_v36  ;;  %v4538_v31 = vrot.slane %v5887_v34, %v6942_v36  ;;  %v4546_v11 = vrot.slane %v4539_v35, %v6942_v36  ;;  %v4554_v38 = vrot.slane %v5888_v37, %v6942_v36 }
 0xf47   : > { %v4555_v57 = vcombine.low %v4530_v30, %v4538_v31  ;;  %v4556_v39 = vcombine.high %v4530_v30, %v4538_v31  ;;  %v4571_v32 = vcombine.low %v4546_v11, %v4554_v38  ;;  %v4572_v40 = vcombine.high %v4546_v11, %v4554_v38 }
 0xf49   : > { %v4563_v41 = vrot.slane %v4555_v57, %v6944_v43  ;;  %v4570_v48 = vrot.slane %v4556_v39, %v6944_v43  ;;  %v4579_v21 = vrot.slane %v4571_v32, %v6944_v43  ;;  %v4586_v46 = vrot.slane %v4572_v40, %v6944_v43 }
 0xf4b   : > { %v4587_v51 = vcombine.low %v4563_v41, %v4579_v21  ;;  %v4588_v52 = vcombine.high %v4563_v41, %v4579_v21  ;;  %v4589_v53 = vcombine.low %v4570_v48, %v4586_v46  ;;  %v4590_v54 = vcombine.high %v4570_v48, %v4586_v46 }
 0xf4d   : > { %v4591_v60 = vpack.c.bf16 %v4587_v51, %v4587_v51  ;;  %v4592_v14 = vpack.c.bf16 %v4588_v52, %v4588_v52  ;;  %v4593_v0 = vpack.c.bf16 %v4589_v53, %v4589_v53  ;;  %v4594_v1 = vpack.c.bf16 %v4590_v54, %v4590_v54 }
 0xf4f   : > { %v4844_v62 = vsel %vm1441_vm5, %v4591_v60, 0  ;;  %v4890_v63 = vsel %vm1441_vm5, %v4592_v14, 0  ;;  %v4936_v50 = vsel %vm1441_vm5, %v4593_v0, 0  ;;  %v4982_v42 = vsel %vm1441_vm5, %v4594_v1, 0 }
 0xf50   : > { %6267 = vmatpush3.bf16.msra.mxu1 %v4844_v62  ;;  %6273 = vmatpush3.bf16.msra.mxu0 %v4890_v63  ;;  %v6445_v63 = vld [vmem:[%s6869_s21 + $0x70] sm:$0xff]  }
 0xf51   : > { %6278 = vmatprep.subr.bf16.mxu1 %v6688_v3  ;;  %6284 = vmatprep.subr.bf16.mxu0 %v6688_v3 }
 0xf53   : > { %6269 = vmatmul.mubr.msk.bf16.vlgmr.msra.gmra.mrb[68].mxu1 %vm1189_vm3, %v4836_v27  ;;  %6275 = vmatmul.mubr.msk.bf16.vlgmr.msra.gmra.mrb[72].mxu0 %vm1189_vm3, %v4837_v2 }
 0xf54   : > { %6279 = vmatpush3.bf16.msra.mxu1 %v4936_v50  ;;  %6285 = vmatpush3.bf16.msra.mxu0 %v4982_v42 }
 0xf55   : > { %6280 = vmatprep.mubr.msk.bf16.mxu1 %vm6689_vm1, %v6688_v3  ;;  %6286 = vmatprep.mubr.msk.bf16.mxu0 %vm6689_vm1, %v6688_v3 }
 0xf56   : > { %6290 = vmatprep.subr.bf16.mxu1 %v6688_v3  ;;  %6298 = vmatprep.subr.bf16.mxu0 %v6688_v3 }
 0xf6a   : > { %v4824_v4 = vpop.xlane.xlu1 %4823 }
 0xf6b   : > { %6517 = vrcp.f32 %v4824_v4  ;;  %v4827_v9 = vpop.xlane.xlu0 %4826 }
 0xf6c   : > { %6519 = vrcp.f32 %v4827_v9 }
 0xf75   : > { %v6518_v5 = vpop.eup %6517 }
 0xf76   : > { %v6520_v6 = vpop.eup %6519  ;;  %v4834_v19 = vmul.f32 %v6518_v5, %v7671_v58  ;;  %v6446_v5 = vld [vmem:[%s6869_s21 + $0x78] sm:$0xff]  }
 0xf77   : > { %v4835_v7 = vmul.f32 %v6520_v6, %v7673_v59 }
 0xf78   : > { %v4838_v20 = vpack.c.bf16 %v4834_v19, %v4834_v19 }
 0xf79   : > { %v4839_v49 = vpack.c.bf16 %v4835_v7, %v4835_v7 }
 0xf7a   : > { %6281 = vmatmul.mubr.msk.bf16.vlgmr.msra.gmra.mrb[72].mxu1 %vm1189_vm3, %v4838_v20 }
 0xf7b   : > { %6287 = vmatmul.mubr.msk.bf16.vlgmr.msra.gmra.mrb[76].mxu0 %vm1189_vm3, %v4839_v49  ;;  %6294 = vmatprep.mubr.msk.bf16.mxu1 %vm6689_vm1, %v6688_v3 }
 0xf7c   : > { %6302 = vmatprep.mubr.msk.bf16.mxu0 %vm6689_vm1, %v6688_v3  ;;  %6291 = vmatpush3.bf16.msra.mxu1 %v6445_v63 }
 0xf7d   : > { %6292 = vmatprep.subr.bf16.mxu1 %v6688_v3 }
 0xf80   : > { %6293 = vmatpush3.bf16.msra.mxu1 %v6446_v5 }
 0xf81   : > { %6306 = vmatprep.subr.bf16.mxu1 %v6688_v3 }
0x1026   : > { %v4880_v12 = vpop.f32.mrb[68].mxu1  ;;  %v4926_v13 = vpop.f32.mrb[72].mxu0 }
0x1027   : > { %v6270_v22 = vpop.f32.mrb[69].mxu1  ;;  %v6276_v24 = vpop.f32.mrb[73].mxu0 }
0x1028   : > { %v4883_v29 = vpop.f32.mrb[70].mxu1  ;;  %v4929_v58 = vpop.f32.mrb[74].mxu0 }
0x1029   : > { %v6271_v56 = vpop.f32.mrb[71].mxu1  ;;  %v6277_v59 = vpop.f32.mrb[75].mxu0 }
0x104d   : > { %v4972_v10 = vpop.f32.mrb[72].mxu1 }
0x104e   : > { %v5024_v33 = vcombine.low %v4880_v12, %v4972_v10  ;;  %v5025_v34 = vcombine.high %v4880_v12, %v4972_v10  ;;  %v5018_v35 = vpop.f32.mrb[76].mxu0  ;;  %v6282_v37 = vpop.f32.mrb[73].mxu1 }
0x104f   : > { %v5040_v30 = vcombine.low %v4926_v13, %v5018_v35  ;;  %v5041_v31 = vcombine.high %v4926_v13, %v5018_v35  ;;  %v6288_v11 = vpop.f32.mrb[77].mxu0  ;;  %v4975_v38 = vpop.f32.mrb[74].mxu1 }
0x1050   : > { %v5032_v57 = vrot.slane %v5024_v33, %v6942_v36  ;;  %v5039_v39 = vrot.slane %v5025_v34, %v6942_v36  ;;  %v5021_v32 = vpop.f32.mrb[78].mxu0  ;;  %v6283_v40 = vpop.f32.mrb[75].mxu1 }
0x1051   : > { %v5048_v41 = vrot.slane %v5040_v30, %v6942_v36  ;;  %v5055_v48 = vrot.slane %v5041_v31, %v6942_v36  ;;  %v6289_v8 = vpop.f32.mrb[79].mxu0 }
0x1053   : > { %v5056_v21 = vcombine.low %v5032_v57, %v5048_v41  ;;  %v5057_v46 = vcombine.high %v5032_v57, %v5048_v41  ;;  %v5072_v23 = vcombine.low %v5039_v39, %v5055_v48  ;;  %v5073_v51 = vcombine.high %v5039_v39, %v5055_v48 }
0x1055   : > { %v5064_v52 = vrot.slane %v5056_v21, %v6944_v43  ;;  %v5071_v53 = vrot.slane %v5057_v46, %v6944_v43  ;;  %v5080_v54 = vrot.slane %v5072_v23, %v6944_v43  ;;  %v5087_v47 = vrot.slane %v5073_v51, %v6944_v43 }
0x1057   : > { %v5092_v55 = vcombine.low %v5064_v52, %v5071_v53  ;;  %v5898_v60 = vcombine.high %v5064_v52, %v5071_v53  ;;  %v5108_v14 = vcombine.low %v5080_v54, %v5087_v47  ;;  %v5899_v62 = vcombine.high %v5080_v54, %v5087_v47  ;;  %v6447_v47 = vld [vmem:[%s6879_s26] sm:$0xff]  }
0x1058   : > { %6299 = vmatpush3.bf16.msra.mxu0 %v6447_v47  ;;  %v5921_v47 = vld [vmem:[%s6874_s25 + $0xd] ss:$0 sm:$0xff] }
0x1059   : > { %v5099_v0 = vrot.slane %v5092_v55, %v6942_v36  ;;  %v5107_v1 = vrot.slane %v5898_v60, %v6942_v36  ;;  %v5115_v27 = vrot.slane %v5108_v14, %v6942_v36  ;;  %v5123_v2 = vrot.slane %v5899_v62, %v6942_v36  ;;  %v6448_v55 = vld [vmem:[%s6879_s26 + $0x8] sm:$0xff]   ;;  %6300 = vmatprep.subr.bf16.mxu0 %v6688_v3  ;;  %v6449_v60 = vld [vmem:[%s6889_s20] sm:$0xff]  }
0x105a   : > { %v6450_v14 = vld [vmem:[%s6889_s20 + $0x8] sm:$0xff]  }
0x105b   : > { %v5125_v50 = vcombine.high %v5099_v0, %v5107_v1  ;;  %v5141_v42 = vcombine.high %v5115_v27, %v5123_v2  ;;  %v5124_v4 = vcombine.low %v5099_v0, %v5107_v1  ;;  %v5140_v9 = vcombine.low %v5115_v27, %v5123_v2 }
0x105c   : > { %6301 = vmatpush3.bf16.msra.mxu0 %v6448_v55 }
0x105d   : > { %v5139_v6 = vrot.slane %v5125_v50, %v6944_v43  ;;  %v5155_v19 = vrot.slane %v5141_v42, %v6944_v43  ;;  %v5132_v7 = vrot.slane %v5124_v4, %v6944_v43  ;;  %v5148_v20 = vrot.slane %v5140_v9, %v6944_v43  ;;  %v5908_v4 = vld [vmem:[%s6874_s25 + $0xa] ss:$0 sm:$0xff] }
0x105f   : > { %v5158_v36 = vcombine.low %v5139_v6, %v5155_v19  ;;  %v5157_v49 = vcombine.high %v5132_v7, %v5148_v20  ;;  %v5156_v12 = vcombine.low %v5132_v7, %v5148_v20  ;;  %v5159_v13 = vcombine.high %v5139_v6, %v5155_v19  ;;  %v5909_v19 = vld [vmem:[%s6874_s25 + $0xb] ss:$0 sm:$0xff] }
0x1061   : > { %v6421_v22 = vpack.i.bf16 %v5158_v36, %v4128_v17  ;;  %v6416_v24 = vpack.i.bf16 %v5157_v49, %v4127_v28  ;;  %v6426_v29 = vpack.i.bf16 %v5159_v13, %v4129_v18  ;;  %v6452_v13 = vld [vmem:[%s6889_s20 + $0x18] sm:$0xff]  }
0x1063   : > { %6422 = vrot.lane.b32.xlu1 %v6421_v22, %s6695_s30  ;;  %6417 = vrot.lane.b32.xlu0 %v6416_v24, %s6696_s27  ;;  %v5910_v22 = vld [vmem:[%s526_s28] ss:$0 sm:$0xff] }
0x1067   : > { %6427 = vrot.lane.b32.xlu1 %v6426_v29, %s6697_s10 }
0x10d5   : > { %v6423_v43 = vpop.permute.xlu1 %6422  ;;  %v6418_v58 = vpop.permute.xlu0 %6417 }
0x10d6   : > { %v6420_v56 = vunpack.i.h.bf16 %v6418_v58  ;;  %v6419_v59 = vunpack.i.l.bf16 %v6418_v58  ;;  %v6425_v17 = vunpack.i.h.bf16 %v6423_v43  ;;  %v6424_v10 = vunpack.i.l.bf16 %v6423_v43 }
0x10d8   : > { %v4142_v28 = vsel %vm1189_vm3, %v4126_v25, %v6419_v59  ;;  %v5172_v15 = vsel %vm1189_vm3, %v5156_v12, %v6420_v56  ;;  %v6451_v12 = vld [vmem:[%s6889_s20 + $0x10] sm:$0xff]  }
0x10d9   : > { %v6428_v26 = vpop.permute.xlu1 %6427  ;;  %v4143_v34 = vsel %vm1772_vm6, %v4142_v28, %v6424_v10  ;;  %v5173_v35 = vsel %vm1772_vm6, %v5172_v15, %v6425_v17  ;;  %v5914_v15 = vld [vmem:[%s6874_s25 + $0xe] ss:$0 sm:$0xff] }
0x10da   : > { %v6430_v18 = vunpack.i.h.bf16 %v6428_v26  ;;  %v6429_v33 = vunpack.i.l.bf16 %v6428_v26 }
0x10dc   : > { %v4144_v37 = vsel %vm1774_vm7, %v4143_v34, %v6429_v33  ;;  %v5174_v30 = vsel %vm1774_vm7, %v5173_v35, %v6430_v18 }
0x10dd   : > { %v5175_v31 = vpack.c.bf16 %v5174_v30, %v4144_v37 }
0x10df   : > { %6295 = vmatmul.mubr.msk.bf16.vlgmr.msra.gmra.mrb[76].mxu1 %vm568_vm2, %v5175_v31 }
0x10e0   : > { %6314 = vmatprep.mubr.msk.bf16.mxu1 %vm6689_vm1, %v6688_v3  ;;  %6307 = vmatpush3.bf16.msra.mxu1 %v6449_v60 }
0x10e1   : > { %6308 = vmatprep.subr.bf16.mxu1 %v6688_v3 }
0x10e4   : > { %6309 = vmatpush3.bf16.msra.mxu1 %v6450_v14 }
0x10e5   : > { %6310 = vmatprep.subr.bf16.mxu1 %v6688_v3 }
0x10e8   : > { %6311 = vmatpush3.bf16.msra.mxu1 %v6451_v12 }
0x10e9   : > { %6312 = vmatprep.subr.bf16.mxu1 %v6688_v3 }
0x10ec   : > { %6313 = vmatpush3.bf16.msra.mxu1 %v6452_v13 }
0x11b2   : > { %v5235_v16 = vpop.f32.mrb[76].mxu1 }
0x11b3   : > { %v5236_v25 = vadd.f32 %v5904_v61, %v5235_v16  ;;  %v6296_v11 = vpop.f32.mrb[77].mxu1 }
0x11b4   : > { %v5238_v38 = vpop.f32.mrb[78].mxu1 }
0x11b5   : > { %v5239_v57 = vadd.f32 %v5904_v61, %v5238_v38  ;;  %v6297_v39 = vpop.f32.mrb[79].mxu1  ;;  %v5242_v32 = vadd.f32 %v5236_v25, %v7355_v44 }
0x11b7   : > { %v5246_v40 = vsel %vm568_vm2, %v5242_v32, 0.0  ;;  %v5243_v41 = vadd.f32 %v5239_v57, %v7357_v45 }
0x11b8   : > { %5247 = vadd.xlane.f32.xlu0 %v5246_v40 }
0x11b9   : > { %v5249_v48 = vsel %vm568_vm2, %v5243_v41, 0.0 }
0x11ba   : > { %5250 = vadd.xlane.f32.xlu1 %v5249_v48 }
0x1245   : > { %v5248_v8 = vpop.xlane.xlu0 %5247 }
0x1246   : > { %v5252_v21 = vmul.f32 0.03125, %v5248_v8 }
0x1247   : > { %v5251_v46 = vpop.xlane.xlu1 %5250 }
0x1248   : > { %v5254_v23 = vsub.f32 %v5242_v32, %v5252_v21  ;;  %v5253_v51 = vmul.f32 0.03125, %v5251_v46 }
0x124a   : > { %v5255_v52 = vsub.f32 %v5243_v41, %v5253_v51  ;;  %v5256_v53 = vmul.f32 %v5254_v23, %v5254_v23 }
0x124c   : > { %v5258_v44 = vsel %vm568_vm2, %v5256_v53, 0.0  ;;  %v5257_v54 = vmul.f32 %v5255_v52, %v5255_v52 }
0x124d   : > { %5259 = vadd.xlane.f32.xlu0 %v5258_v44  ;;  %v5920_v44 = vld [vmem:[%s6874_s25 + $0xc] ss:$0 sm:$0xff] }
0x124e   : > { %v5261_v45 = vsel %vm568_vm2, %v5257_v54, 0.0 }
0x1251   : > { %5262 = vadd.xlane.f32.xlu0 %v5261_v45 }
0x12da   : > { %v5260_v62 = vpop.xlane.xlu0 %5259 }
0x12db   : > { %v5264_v63 = vmul.f32 0.03125, %v5260_v62 }
0x12dd   : > { %v5266_v0 = vadd.f32 1e-05, %v5264_v63 }
0x12de   : > { %v5263_v1 = vpop.xlane.xlu0 %5262 }
0x12df   : > { %6521 = vrsqrt.f32 %v5266_v0  ;;  %v5265_v27 = vmul.f32 0.03125, %v5263_v1  ;;  %v6531_v0 = vld [vmem:[%s7929_s9] sm:$0xff] (!%p5922_p9)   ;;  %v6698_v1 = vmov (!%p5922_p9), 0.0  }
0x12e0   : > { %6318 = vmatprep.subr.bf16.mxu0 (!%p5922_p9), %v6698_v1 }
0x12e1   : > { %v5267_v2 = vadd.f32 1e-05, %v5265_v27  ;;  %v6532_v27 = vld [vmem:[%s7929_s9 + $0x8] sm:$0xff] (!%p5922_p9)  }
0x12e3   : > { %6523 = vrsqrt.f32 %v5267_v2 }
0x12e9   : > { %v6522_v50 = vpop.eup %6521 }
0x12ea   : > { %v5270_v42 = vmul.f32 %v6522_v50, %v5254_v23  ;;  %v5923_v50 = vld [vmem:[#allocation3] ss:$0 sm:$0xff] (!%p5922_p9) }
0x12ec   : > { %v5276_v5 = vmul.f32 %v5908_v4, %v5270_v42 }
0x12ed   : > { %v6524_v9 = vpop.eup %6523 }
0x12ee   : > { %v5271_v6 = vmul.f32 %v6524_v9, %v5255_v52  ;;  %v5282_v20 = vadd.f32 %v5909_v19, %v5276_v5 }
0x12f0   : > { %v5277_v7 = vmul.f32 %v5908_v4, %v5271_v6 }
0x12f2   : > { %v5283_v36 = vadd.f32 %v5909_v19, %v5277_v7 }
0x12f4   : > { %v5284_v49 = vpack.c.bf16 %v5283_v36, %v5282_v20 }
0x12f6   : > { %6303 = vmatmul.mubr.msk.bf16.vlgmr.msra.gmra.mrb[80].mxu0 %vm568_vm2, %v5284_v49 }
0x12f7   : > { %6319 = vmatpush3.bf16.msra.mxu0 (!%p5922_p9), %v6531_v0  ;;  %6322 = vmatprep.mubr.msk.bf16.mxu0 (!%p5922_p9), %vm6699_vm11, %v6698_v1 }
0x12f8   : > { %6320 = vmatprep.subr.bf16.mxu0 (!%p5922_p9), %v6698_v1 }
0x12fb   : > { %6321 = vmatpush3.bf16.msra.mxu0 (!%p5922_p9), %v6532_v27 }
0x13c9   : > { %v5345_v24 = vpop.f32.mrb[80].mxu0 }
0x13ca   : > { %v5346_v29 = vadd.f32 %v5910_v22, %v5345_v24  ;;  %v6304_v43 = vpop.f32.mrb[81].mxu0 }
0x13cb   : > { %v5348_v58 = vpop.f32.mrb[82].mxu0 }
0x13cc   : > { %v5349_v56 = vadd.f32 %v5910_v22, %v5348_v58  ;;  %v6305_v59 = vpop.f32.mrb[83].mxu0  ;;  %v5352_v17 = vmax.f32 %v5346_v29, 0.0 }
0x13ce   : > { %v5353_v10 = vmax.f32 %v5349_v56, 0.0 }
0x13d0   : > { %v5354_v28 = vpack.c.bf16 %v5353_v10, %v5352_v17 }
0x13d2   : > { %6315 = vmatmul.mubr.msk.bf16.vlgmr.msra.gmra.mrb[80].mxu1 %vm5392_vm10, %v5354_v28 }
0x14a5   : > { %v5430_v3 = vpop.f32.mrb[80].mxu1 }
0x14a6   : > { %v5431_v26 = vadd.f32 %v5914_v15, %v5430_v3  ;;  %v6316_v18 = vpop.f32.mrb[81].mxu1 }
0x14a7   : > { %v5433_v33 = vpop.f32.mrb[82].mxu1 }
0x14a8   : > { %v5434_v34 = vadd.f32 %v5914_v15, %v5433_v33  ;;  %v6317_v35 = vpop.f32.mrb[83].mxu1  ;;  %v5437_v37 = vadd.f32 %v5431_v26, %v5282_v20 }
0x14aa   : > { %v5441_v30 = vsel %vm568_vm2, %v5437_v37, 0.0  ;;  %v5438_v31 = vadd.f32 %v5434_v34, %v5283_v36 }
0x14ab   : > { %5442 = vadd.xlane.f32.xlu1 %v5441_v30 }
0x14ac   : > { %v5444_v61 = vsel %vm568_vm2, %v5438_v31, 0.0 }
0x14ad   : > { %5445 = vadd.xlane.f32.xlu0 %v5444_v61 }
0x1538   : > { %v5443_v16 = vpop.xlane.xlu1 %5442 }
0x1539   : > { %v5447_v25 = vmul.f32 0.03125, %v5443_v16 }
0x153a   : > { %v5446_v11 = vpop.xlane.xlu0 %5445 }
0x153b   : > { %v5449_v38 = vsub.f32 %v5437_v37, %v5447_v25  ;;  %v5448_v57 = vmul.f32 0.03125, %v5446_v11 }
0x153d   : > { %v5450_v39 = vsub.f32 %v5438_v31, %v5448_v57  ;;  %v5451_v32 = vmul.f32 %v5449_v38, %v5449_v38 }
0x153f   : > { %v5453_v40 = vsel %vm568_vm2, %v5451_v32, 0.0  ;;  %v5452_v41 = vmul.f32 %v5450_v39, %v5450_v39 }
0x1540   : > { %5454 = vadd.xlane.f32.xlu1 %v5453_v40 }
0x1541   : > { %v5456_v48 = vsel %vm568_vm2, %v5452_v41, 0.0 }
0x1542   : > { %5457 = vadd.xlane.f32.xlu0 %v5456_v48 }
0x15cd   : > { %v5455_v8 = vpop.xlane.xlu1 %5454 }
0x15ce   : > { %v5459_v21 = vmul.f32 0.03125, %v5455_v8 }
0x15cf   : > { %v5458_v46 = vpop.xlane.xlu0 %5457 }
0x15d0   : > { %v5461_v23 = vadd.f32 1e-05, %v5459_v21  ;;  %v5460_v51 = vmul.f32 0.03125, %v5458_v46 }
0x15d2   : > { %6525 = vrsqrt.f32 %v5461_v23  ;;  %v5462_v52 = vadd.f32 1e-05, %v5460_v51 }
0x15d4   : > { %6527 = vrsqrt.f32 %v5462_v52 }
0x15dc   : > { %v6526_v53 = vpop.eup %6525 }
0x15dd   : > { %v5465_v54 = vmul.f32 %v6526_v53, %v5449_v38 }
0x15de   : > { %v6528_v45 = vpop.eup %6527 }
0x15df   : > { %v5471_v55 = vmul.f32 %v5920_v44, %v5465_v54  ;;  %v5466_v60 = vmul.f32 %v6528_v45, %v5450_v39  ;;  %5484 = sbr.rel (%p5922_p9) target bundleno = 5824 (0x16c0), region = 76 }
0x15e1   : > { %v5477_v14 = vadd.f32 %v5921_v47, %v5471_v55  ;;  %v5472_v62 = vmul.f32 %v5920_v44, %v5466_v60 }
0x15e3   : > { %5479 = vst.msk [vmem:[#allocation2] sm:$0xff] %vm568_vm2, %v5477_v14  ;;  %v5478_v63 = vadd.f32 %v5921_v47, %v5472_v62 }
0x15e5   : > { %5480 = vst.msk [vmem:[#allocation2 + $0x8] sm:$0xff] %vm568_vm2, %v5478_v63  ;;  %v5485_v2 = vpack.c.bf16 (!%p5922_p9), %v5478_v63, %v5477_v14 }
0x15e7   : > { %6323 = vmatmul.mubr.msk.bf16.vlgmr.msra.gmra.mrb[0].mxu0 %vm568_vm2, %v5485_v2 }
0x16ba   : > { %v5546_v42 = vpop.f32.mrb[0].mxu0 }
0x16bb   : > { %v5547_v4 = vadd.f32 %v5923_v50, %v5546_v42  ;;  %v6324_v9 = vpop.f32.mrb[1].mxu0 }
0x16bc   : > { %v5549_v5 = vpop.f32.mrb[2].mxu0 }
0x16bd   : > { %5553 = vst [vmem:[#allocation6] sm:$0xff] %v5547_v4  ;;  %v5550_v6 = vadd.f32 %v5923_v50, %v5549_v5  ;;  %v6325_v19 = vpop.f32.mrb[3].mxu0 }
0x16bf   : > { %5554 = vst [vmem:[#allocation6 + $0x8] sm:$0xff] %v5550_v6 }
0x16c0 PF: > { %s5555_s11 = sand.u32 1, %s6793_s29   ;;  %s5941_s12 = sshll.u32 %s6793_s29, 9 }
0x16c1   : > { %s7968_s10 = sld [smem:[#allocation21_spill]]  ;;  %s5587_s24 = sshll.u32 %s6891_s15, 4  ;;  %s7815_s24 = int_to_ptr.vmem [resolvable:$true] %s5587_s24 }
0x16c2   : > { %s7969_s19 = sld [smem:[#allocation22_spill]]  ;;  %s7822_s21 = scalar_lea.sflag [#allocation8], %s5555_s11 }
0x16c3   : > { %s6561_s28 = scalar_lea.vmem %s7815_s24, 512  ;;  %p7970_p11 = scmp.ne.s32.totalorder %s7958_s18, 0 }
0x16c4   : > { %p6562_p10 = scmp.ne.s32.totalorder %s7815_s24, %s6561_s28  ;;  %s6700_s23 = smov [#allocation7]  }
0x16c5   : > { %s6565_s25 = sshll.u32 %s6700_s23, 4  ;;  %s6566_s25 = int_to_ptr.vmem [resolvable:$false] %s6565_s25 }
0x16c6   : > { %p6563_p13 = pnand %p6562_p10, %p7970_p11  ;;  %s6567_s15 = scalar_lea.vmem %s6566_s25, 1024 }
0x16c7   : > { %s7812_s17 = scalar_lea.hbm %s7968_s10, %s5941_s12  ;;  %p6568_p4 = scmp.lt.s32.totalorder %s7815_s24, %s6566_s25 }
0x16c8   : > { %s7820_s26 = scalar_lea.hbm %s7969_s19, %s5941_s12  ;;  %p6564_p1 = pneg %p6563_p13 }
0x16c9   : > { %p6569_p7 = scmp.lt.s32.totalorder %s6567_s15, %s6561_s28 }
0x16cb   : > { %p6570_p8 = por %p6569_p7, %p6568_p4 }
0x16cd   : > { %p6571_p12 = pnand %p6570_p8, %p6564_p1 }
0x16cf   : > { %6574 = shalt.err (!%p6571_p12)
}
0x16d0   : > { %s6575_s20 = scalar_lea.hbm %s7812_s17, 512  ;;  %s6579_s13 = scalar_lea.hbm %s7968_s10, 1536 }
0x16d1   : > { %p6576_p0 = scmp.ne.s32.totalorder %s7812_s17, %s6575_s20  ;;  %p6580_p5 = scmp.lt.u32.totalorder %s7812_s17, %s7968_s10 }
0x16d2   : > { %p6581_p6 = scmp.lt.u32.totalorder %s6579_s13, %s6575_s20  ;;  %p6583_p10 = scmp.lt.u32.totalorder %s6575_s20, %s7812_s17 }
0x16d3   : > { %p6577_p3 = pnand %p6576_p0, %p7970_p11 }
0x16d4   : > { %p6582_p9 = por %p6581_p6, %p6580_p5 }
0x16d5   : > { %p6578_p2 = pneg %p6577_p3 }
0x16d6   : > { %p6584_p13 = por %p6583_p10, %p6582_p9 }
0x16d8   : > { %p6585_p1 = pnand %p6584_p13, %p6578_p2 }
0x16da   : > { %6588 = shalt.err (!%p6585_p1)
}
0x16db   : > { %s6701_s14 = smov 128   ;;  %s5603_s28 = sshll.u32 %s6893_s16, 4  ;;  %s7850_s28 = int_to_ptr.vmem [resolvable:$true] %s5603_s28 }
0x16dc   : > { %6332 = dma.vmem_to_hbm [thread:$0]  (%p7970_p11), %s7815_s24, 512, %s7812_s17, %s7822_s21, %s6701_s14, %s6701_s14, %s6696_s27  }
0x16dd   : > { %s6702_s23 = smov [#allocation6]   ;;  %p7971_p7 = scmp.eq.s32.totalorder %s6793_s29, 2 }
0x16de   : > { %s5571_s25 = sshll.u32 %s6702_s23, 4  ;;  %s5572_s25 = int_to_ptr.vmem [resolvable:$true] %s5571_s25 }
0x16df   : > { %s6589_s15 = scalar_lea.vmem %s5572_s25, 256  ;;  %p6596_p0 = scmp.lt.s32.totalorder %s5572_s25, %s5572_s25 }
0x16e0   : > { %p6590_p4 = scmp.ne.s32.totalorder %s5572_s25, %s6589_s15  ;;  %p6597_p3 = scmp.lt.s32.totalorder %s6589_s15, %s6589_s15 }
0x16e2   : > { %p6591_p8 = pnand %p6590_p4, %p7971_p7  ;;  %p6598_p2 = por %p6597_p3, %p6596_p0 }
0x16e4   : > { %p6592_p12 = pneg %p6591_p8 }
0x16e6   : > { %p6599_p5 = pnand %p6598_p2, %p6592_p12 }
0x16e8   : > { %6602 = shalt.err (!%p6599_p5)
}
0x16e9   : > { %s7972_s12 = sld [smem:[#allocation20_spill]]  ;;  %p7973_p9 = pmov %p7971_p7 }
0x16ef   : > { %s6603_s16 = scalar_lea.hbm %s7972_s12, 256 }
0x16f0   : > { %p6604_p6 = scmp.ne.s32.totalorder %s7972_s12, %s6603_s16  ;;  %p6609_p1 = scmp.lt.u32.totalorder %s6603_s16, %s7972_s12 }
0x16f2   : > { %p6605_p10 = pnand %p6604_p6, %p7973_p9 }
0x16f4   : > { %p6606_p13 = pneg %p6605_p10 }
0x16f6   : > { %p6611_p4 = pnand %p6609_p1, %p6606_p13 }
0x16f8   : > { %6614 = shalt.err (!%p6611_p4)
}
0x16f9   : > { %6331 = dma.vmem_to_hbm [thread:$0]  (%p7971_p7), %s5572_s25, 256, %s7972_s12, [#allocation5], %s6701_s14, %s6701_s14, %s6696_s27  }
0x16fa   : > { %s6615_s15 = scalar_lea.vmem %s7850_s28, 512  ;;  %s6703_s20 = smov [#allocation9]  }
0x16fb   : > { %p6616_p8 = scmp.ne.s32.totalorder %s7850_s28, %s6615_s15  ;;  %s6619_s11 = sshll.u32 %s6703_s20, 4  ;;  %s6620_s11 = int_to_ptr.vmem [resolvable:$false] %s6619_s11 }
0x16fc   : > { %s6621_s16 = scalar_lea.vmem %s6620_s11, 1024  ;;  %p6622_p3 = scmp.lt.s32.totalorder %s7850_s28, %s6620_s11 }
0x16fd   : > { %p6617_p12 = pnand %p6616_p8, %p7970_p11  ;;  %p6623_p2 = scmp.lt.s32.totalorder %s6621_s16, %s6615_s15 }
0x16ff   : > { %p6618_p0 = pneg %p6617_p12  ;;  %p6624_p5 = por %p6623_p2, %p6622_p3 }
0x1701   : > { %p6625_p6 = pnand %p6624_p5, %p6618_p0 }
0x1703   : > { %6628 = shalt.err (!%p6625_p6)
}
0x1704   : > { %s6629_s25 = scalar_lea.hbm %s7820_s26, 512  ;;  %s6633_s13 = scalar_lea.hbm %s7969_s19, 1536 }
0x1705   : > { %p6630_p9 = scmp.ne.s32.totalorder %s7820_s26, %s6629_s25  ;;  %p6634_p1 = scmp.lt.u32.totalorder %s7820_s26, %s7969_s19 }
0x1706   : > { %p6635_p4 = scmp.lt.u32.totalorder %s6633_s13, %s6629_s25  ;;  %p6637_p8 = scmp.lt.u32.totalorder %s6629_s25, %s7820_s26 }
0x1707   : > { %p6631_p10 = pnand %p6630_p9, %p7970_p11 }
0x1708   : > { %p6636_p7 = por %p6635_p4, %p6634_p1 }
0x1709   : > { %p6632_p13 = pneg %p6631_p10 }
0x170a   : > { %p6638_p12 = por %p6637_p8, %p6636_p7 }
0x170c   : > { %p6639_p0 = pnand %p6638_p12, %p6632_p13 }
0x170e   : > { %6642 = shalt.err (!%p6639_p0)
}
0x170f   : > { %6333 = dma.vmem_to_hbm [thread:$0]  (%p7970_p11), %s7850_s28, 512, %s7820_s26, %s7822_s21, %s6701_s14, %s6701_s14, %s6696_s27  }
0x1710   : > { %p7974_p3 = scmp.eq.s32.totalorder %s6793_s29, 2 }
0x1712   : > { %6664 = dma.done.wait (%p7974_p3), [#allocation5], 256   ;;  %p7975_p2 = pmov %p7974_p3 }
0x1714   : > { %6666 = vsyncadd (%p7975_p2), [#allocation5], 4294967040 }
0x1715 PF: > { %s7976_s23 = sld [smem:[#allocation15_spill]]  ;;  %s7977_s15 = sld [smem:[#allocation18_spill]] }
0x171b   : > { %p6353_p5 = scmp.ge.s32.totalorder %s7976_s23, 2  ;;  %s7978_s20 = sadd.s32 4294967294, %s7976_s23  }
0x171c   : > { %s5622_s18 = sand.u32 1, %s7978_s20   ;;  %p7979_p6 = scmp.ne.s32.totalorder %s7977_s15, 0 }
0x171d   : > { %s5623_s11 = scalar_lea.sflag [#allocation8], %s5622_s18 }
0x171e   : > { %p6343_p9 = pnand %p6353_p5, %p7979_p6 }
0x1720   : > { %6668 = dma.done.wait (!%p6343_p9), %s5623_s11, 1024  }
0x1721   : > { %6670 = vsyncadd (!%p6343_p9), %s5623_s11, 4294966272  ;;  %s7980_s28 = sld [smem:[#allocation16_spill]]  ;;  %s7981_s25 = sld [smem:[#allocation13_spill]] }
0x1722   : > { %s7982_s26 = sld [smem:[#allocation14_spill]]  ;;  %s7983_s27 = sld [smem:[#allocation17_spill]] }
0x1727   : > { %p26_p11 = scmp.ge.s32.totalorder %s7980_s28, 5  }
0x1729   :  { %28 = sbr.rel (!%p26_p11) target bundleno = 10 (0xa), region = 156 }
0x1730   :  { %5637 = vsyncpa [#allocation4], 1 }
0x1731   :  { %5639 = vsyncpa [#allocation4 + $0x1], 1 }
0x1732   :  { %5640 = vsyncpa [#allocation5], 1 }
0x1733   :  { %5642 = vsyncpa [#allocation5 + $0x1], 1 }
0x1734   :  { %5643 = vsyncpa [#allocation8], 1 }
0x1735   :  { %5645 = vsyncpa [#allocation8 + $0x1], 1 }

</bundles_post_ra>
